<compile_context>
chip_gen: v7x
topology: tpu7x:2x2x1
jax: 0.10.0
libtpu: 0.0.40
codegen_flags: <defaults>
</compile_context>

<pallas_src>
import jax
import jax.numpy as jnp
from jax.experimental import pallas as pl
from jax.experimental.pallas import tpu as pltpu

# ----------------------------- problem sizes -----------------------------
N, C_IN, T, V = 2, 16, 8, 16          # batch, channels, frames, joints
C_OUT = 16                            # in == out  -> identity residuals
S = 3                                 # adjacency subsets
R = 8                                 # CTRGC rel_channels (in_channels <= 16 -> 8)
KS = 5
DILS = (1, 2)
NB = len(DILS) + 2                    # number of MSTCN branches
CB = C_OUT // NB                      # per-branch channels
TV = T * V
EPS = 1e-5
assert C_OUT % NB == 0 and TV == 128


# ============================ Pallas kernels =============================

def _gcn_front_kernel(x_ref, mm_ref, w12_ref, b12_ref, ru_ref, rv_ref,
                      w4_ref, b4_ref, w3_ref, b3_ref, abd_ref, sh_ref,
                      x3o_ref, dyno_ref, zao_ref):
    """Per sample: all GCN 1x1 convs, CTRGC dynamic adjacency, and the static-A part
    of the aggregation.  Everything channel-first with T*V = 128 in the lane dim."""
    f32 = jnp.float32
    x_cf = x_ref[0]                                                     # (C_IN, TV)

    # conv3 for all subsets (GCN BatchNorm scale pre-folded into the weights).
    x3 = jnp.dot(w3_ref[...], x_cf, preferred_element_type=f32) + b3_ref[...]   # (S*Co, TV)
    x3o_ref[0] = x3

    # Static-adjacency term:  za[o, t*V+u] = sum_s sum_v A[s,u,v] * x3_s[o, t*V+v]
    # done as lane-dense matmuls with kron(I_T, A_s^T); GCN BN shift added here.
    za = jnp.dot(x3[0:C_OUT], abd_ref[0], preferred_element_type=f32)
    for s in range(1, S):
        za = za + jnp.dot(x3[s * C_OUT:(s + 1) * C_OUT], abd_ref[s],
                          preferred_element_type=f32)
    zao_ref[0] = za + sh_ref[...]

    # T-mean of x (one matmul) then conv1/conv2 for all subsets (one matmul).
    xm = jnp.dot(x_cf, mm_ref[...], preferred_element_type=f32)          # (C_IN, V)
    x12 = jnp.dot(w12_ref[...], xm, preferred_element_type=f32) + b12_ref[...]  # (2*S*R, V)

    # Per subset: tanh(x1m[u] - x2m[v]) and conv4 (alpha pre-folded into w4/b4).
    for s in range(S):
        x1m = x12[s * R:(s + 1) * R, :]                                  # (R, V)
        x2m = x12[S * R + s * R: S * R + (s + 1) * R, :]                 # (R, V)
        du = jnp.dot(x1m, ru_ref[...], preferred_element_type=f32)       # (R, V*V) -> [r, u*V+v]=x1m[r,u]
        dv = jnp.dot(x2m, rv_ref[...], preferred_element_type=f32)       # (R, V*V) -> [r, u*V+v]=x2m[r,v]
        d = jnp.tanh(du - dv)                                            # (R, V*V)
        dyn = jnp.dot(w4_ref[s * C_OUT:(s + 1) * C_OUT, :], d,
                      preferred_element_type=f32) + b4_ref[s * C_OUT:(s + 1) * C_OUT, :]
        dyno_ref[0, s * C_OUT:(s + 1) * C_OUT, :] = dyn                  # (Co, V*V)


def _gcn_front(x_flat, pk):
    return pl.pallas_call(
        _gcn_front_kernel,
        out_shape=(jax.ShapeDtypeStruct((N, S * C_OUT, TV), jnp.float32),
                   jax.ShapeDtypeStruct((N, S * C_OUT, V * V), jnp.float32),
                   jax.ShapeDtypeStruct((N, C_OUT, TV), jnp.float32)),
        grid=(N,),
        in_specs=[
            pl.BlockSpec((1, C_IN, TV), lambda n: (n, 0, 0)),
            pl.BlockSpec((TV, V), lambda n: (0, 0)),
            pl.BlockSpec((2 * S * R, C_IN), lambda n: (0, 0)),
            pl.BlockSpec((2 * S * R, 1), lambda n: (0, 0)),
            pl.BlockSpec((V, V * V), lambda n: (0, 0)),
            pl.BlockSpec((V, V * V), lambda n: (0, 0)),
            pl.BlockSpec((S * C_OUT, R), lambda n: (0, 0)),
            pl.BlockSpec((S * C_OUT, 1), lambda n: (0, 0)),
            pl.BlockSpec((S * C_OUT, C_IN), lambda n: (0, 0)),
            pl.BlockSpec((S * C_OUT, 1), lambda n: (0, 0)),
            pl.BlockSpec((S, TV, TV), lambda n: (0, 0, 0)),
            pl.BlockSpec((C_OUT, 1), lambda n: (0, 0)),
        ],
        out_specs=(pl.BlockSpec((1, S * C_OUT, TV), lambda n: (n, 0, 0)),
                   pl.BlockSpec((1, S * C_OUT, V * V), lambda n: (n, 0, 0)),
                   pl.BlockSpec((1, C_OUT, TV), lambda n: (n, 0, 0))),
        compiler_params=pltpu.CompilerParams(dimension_semantics=("parallel",)),
    )(x_flat, pk['mmean'], pk['w12'], pk['b12'], pk['ru'], pk['rv'],
      pk['w4'], pk['b4'], pk['w3'], pk['b3'], pk['abd'], pk['gcn_shift'])


def _gcn_agg_kernel(x3_ref, dyn_ref, za_ref, x_ref, o_ref):
    """Per sample: dynamic-adjacency contraction (all 3 subsets unrolled in-kernel),
    add static-A term (already BN-affined), identity residual, ReLU."""
    x3 = x3_ref[0]                         # (S*Co, T, V)
    dyn = dyn_ref[0]                       # (S*Co, U, V)
    zd = jnp.einsum('ctv,cuv->ctu', x3, dyn, preferred_element_type=jnp.float32)
    zs = zd[0:C_OUT] + zd[C_OUT:2 * C_OUT] + zd[2 * C_OUT:3 * C_OUT]     # (Co, T, U)
    o_ref[0] = jnp.maximum(za_ref[0] + zs + x_ref[0], 0.0)


def _gcn_aggregate(x3, dyn, za, x):
    return pl.pallas_call(
        _gcn_agg_kernel,
        out_shape=jax.ShapeDtypeStruct((N, C_OUT, T, V), jnp.float32),
        grid=(N,),
        in_specs=[
            pl.BlockSpec((1, S * C_OUT, T, V), lambda n: (n, 0, 0, 0)),
            pl.BlockSpec((1, S * C_OUT, V, V), lambda n: (n, 0, 0, 0)),
            pl.BlockSpec((1, C_OUT, T, V), lambda n: (n, 0, 0, 0)),
            pl.BlockSpec((1, C_IN, T, V), lambda n: (n, 0, 0, 0)),
        ],
        out_specs=pl.BlockSpec((1, C_OUT, T, V), lambda n: (n, 0, 0, 0)),
        compiler_params=pltpu.CompilerParams(dimension_semantics=("parallel",)),
    )(x3, dyn, za, x)


def _mstcn_kernel(g_ref, x_ref, wpw_ref, bpw_ref, wt_ref, psc_ref, psh_ref, o_ref):
    """Per sample: full MSTCN (4 branches) + block identity residual + ReLU, channel-first
    (C, T*V=128) layout, no HBM intermediates, single unmasked 128-lane output store."""
    f32 = jnp.float32
    g = g_ref[0]                                                         # (Co, TV)
    # All four branch 1x1 convs (+ their BN) as one matmul.
    pw = jnp.dot(wpw_ref[...], g, preferred_element_type=f32) + bpw_ref[...]    # (Co, TV)
    pwr = jnp.maximum(pw, 0.0)

    def shift_t(p, delta, fill):
        # result[:, t*V+v] = p[:, (t+delta)*V+v], `fill` where t+delta falls outside [0, T).
        w = delta * V
        rows = p.shape[0]
        if delta > 0:
            return jnp.concatenate(
                [p[:, w:], jnp.full((rows, w), fill, f32)], axis=1)
        return jnp.concatenate(
            [jnp.full((rows, -w), fill, f32), p[:, :TV + w]], axis=1)

    outs = []
    # Dilated (KS,1) temporal conv branches (zero temporal padding).
    for j, dil in enumerate(DILS):
        pj = pwr[j * CB:(j + 1) * CB, :]                                 # (CB, TV)
        pad = (KS + (KS - 1) * (dil - 1) - 1) // 2
        acc = jnp.zeros((CB, TV), f32)
        for k in range(KS):
            delta = k * dil - pad
            src = pj if delta == 0 else shift_t(pj, delta, 0.0)
            acc = acc + jnp.dot(wt_ref[j, k], src, preferred_element_type=f32)
        outs.append(acc)

    # MaxPool (3,1) branch (-inf temporal padding).
    p2 = pwr[2 * CB:3 * CB, :]
    outs.append(jnp.maximum(jnp.maximum(shift_t(p2, -1, -jnp.inf), p2),
                            shift_t(p2, 1, -jnp.inf)))

    # Plain 1x1 branch (BN already folded, no ReLU).
    outs.append(pw[3 * CB:4 * CB, :])

    y = jnp.concatenate(outs, axis=0)                                    # (Co, TV)
    y = y * psc_ref[...] + psh_ref[...] + x_ref[0]                       # branch BNs + residual
    o_ref[0] = jnp.maximum(y, 0.0)


def _mstcn(g_flat, x_flat, pk):
    return pl.pallas_call(
        _mstcn_kernel,
        out_shape=jax.ShapeDtypeStruct((N, C_OUT, TV), jnp.float32),
        grid=(N,),
        in_specs=[
            pl.BlockSpec((1, C_OUT, TV), lambda n: (n, 0, 0)),
            pl.BlockSpec((1, C_IN, TV), lambda n: (n, 0, 0)),
            pl.BlockSpec((C_OUT, C_OUT), lambda n: (0, 0)),
            pl.BlockSpec((C_OUT, 1), lambda n: (0, 0)),
            pl.BlockSpec((len(DILS), KS, CB, CB), lambda n: (0, 0, 0, 0)),
            pl.BlockSpec((C_OUT, 1), lambda n: (0, 0)),
            pl.BlockSpec((C_OUT, 1), lambda n: (0, 0)),
        ],
        out_specs=pl.BlockSpec((1, C_OUT, TV), lambda n: (n, 0, 0)),
        compiler_params=pltpu.CompilerParams(dimension_semantics=("parallel",)),
    )(g_flat, x_flat, pk['wpw'], pk['bpw'], pk['wt'], pk['psc'], pk['psh'])


# ======================== parameter setup (glue) =========================

def init_params(key):
    keys = iter(jax.random.split(key, 128))

    def nrm(shape, s=0.3):
        return jax.random.normal(next(keys), shape, jnp.float32) * s

    def bn_params(c):
        g = 1.0 + 0.1 * jax.random.normal(next(keys), (c,), jnp.float32)
        b = 0.1 * jax.random.normal(next(keys), (c,), jnp.float32)
        m = 0.1 * jax.random.normal(next(keys), (c,), jnp.float32)
        v = 0.5 + jax.random.uniform(next(keys), (c,), jnp.float32)
        return (g, b, m, v)

    P = {}
    P['A'] = nrm((S, V, V), 0.3)
    P['alpha'] = jnp.float32(0.5)
    P['gcn_w1'] = nrm((S, R, C_IN));   P['gcn_b1'] = nrm((S, R), 0.1)
    P['gcn_w2'] = nrm((S, R, C_IN));   P['gcn_b2'] = nrm((S, R), 0.1)
    P['gcn_w3'] = nrm((S, C_OUT, C_IN)); P['gcn_b3'] = nrm((S, C_OUT), 0.1)
    P['gcn_w4'] = nrm((S, C_OUT, R));  P['gcn_b4'] = nrm((S, C_OUT), 0.1)
    P['gcn_bn'] = bn_params(C_OUT)
    P['tcn_pw_w'] = [nrm((CB, C_OUT)) for _ in range(NB)]
    P['tcn_pw_b'] = [nrm((CB,), 0.1) for _ in range(NB)]
    P['tcn_pw_bn'] = [bn_params(CB) for _ in range(NB)]
    P['tcn_t_w'] = [nrm((CB, CB, KS)) for _ in range(len(DILS))]
    P['tcn_t_b'] = [nrm((CB,), 0.1) for _ in range(len(DILS))]
    P['tcn_t_bn'] = [bn_params(CB) for _ in range(len(DILS))]
    P['tcn_mp_bn'] = bn_params(CB)
    return P


def _fold_bn(bn, conv_b=None):
    g, b, m, v = bn
    sc = g / jnp.sqrt(v + EPS)
    sh = b - m * sc
    if conv_b is not None:
        sh = sh + conv_b * sc
    return sc, sh


def pack_params(P):
    """Fold BN / alpha / biases into packed, kernel-ready weight blocks."""
    pk = {}
    gcn_sc, gcn_sh = _fold_bn(P['gcn_bn'])
    alpha = jnp.asarray(P['alpha'], jnp.float32)

    # conv1/conv2 stacked across subsets (rows: [x1m s0..s2 | x2m s0..s2]).
    pk['w12'] = jnp.concatenate([P['gcn_w1'].reshape(S * R, C_IN),
                                 P['gcn_w2'].reshape(S * R, C_IN)], axis=0)
    pk['b12'] = jnp.concatenate([P['gcn_b1'].reshape(S * R),
                                 P['gcn_b2'].reshape(S * R)], axis=0).reshape(2 * S * R, 1)
    # conv3 stacked, GCN BN scale folded per output channel.
    pk['w3'] = (P['gcn_w3'] * gcn_sc[None, :, None]).reshape(S * C_OUT, C_IN)
    pk['b3'] = (P['gcn_b3'] * gcn_sc[None, :]).reshape(S * C_OUT, 1)
    # conv4 stacked, alpha folded.
    pk['w4'] = (P['gcn_w4'] * alpha).reshape(S * C_OUT, R)
    pk['b4'] = (P['gcn_b4'] * alpha).reshape(S * C_OUT, 1)
    # Block-diagonal adjacency:  abd[s] = kron(I_T, A_s^T)  (lane-dense A-term matmul).
    pk['abd'] = jnp.stack([jnp.kron(jnp.eye(T, dtype=jnp.float32), P['A'][s].T)
                           for s in range(S)], axis=0)
    pk['gcn_shift'] = gcn_sh.reshape(C_OUT, 1)
    # T-mean matrix and the (u,v) replication matrices for the tanh-diff.
    pk['mmean'] = jnp.tile(jnp.eye(V, dtype=jnp.float32), (T, 1)) / float(T)
    cols = jnp.arange(V * V, dtype=jnp.int32)
    rows = jnp.arange(V, dtype=jnp.int32)[:, None]
    pk['ru'] = (rows == (cols // V)[None, :]).astype(jnp.float32)        # (V, V*V)
    pk['rv'] = (rows == (cols % V)[None, :]).astype(jnp.float32)         # (V, V*V)

    # MSTCN: branch 1x1 convs stacked with their BN folded.
    wpw, bpw = [], []
    for j in range(NB):
        sc, sh = _fold_bn(P['tcn_pw_bn'][j], P['tcn_pw_b'][j])
        wpw.append(P['tcn_pw_w'][j] * sc[:, None])
        bpw.append(sh)
    pk['wpw'] = jnp.concatenate(wpw, axis=0)                             # (C_OUT, C_OUT)
    pk['bpw'] = jnp.concatenate(bpw, axis=0).reshape(C_OUT, 1)

    # Temporal conv taps: wt[j, k, o, i] = W_j[o, i, k].
    pk['wt'] = jnp.stack([jnp.transpose(P['tcn_t_w'][j], (2, 0, 1))
                          for j in range(len(DILS))], axis=0)            # (2, KS, CB, CB)

    # Per-final-channel post affine (tconv BN + bias for branches 0/1, maxpool BN for branch 2).
    psc, psh = [], []
    for j in range(len(DILS)):
        sc, sh = _fold_bn(P['tcn_t_bn'][j], P['tcn_t_b'][j])
        psc.append(sc); psh.append(sh)
    scm, shm = _fold_bn(P['tcn_mp_bn'])
    psc.append(scm); psh.append(shm)
    psc.append(jnp.ones((CB,), jnp.float32)); psh.append(jnp.zeros((CB,), jnp.float32))
    pk['psc'] = jnp.concatenate(psc).reshape(C_OUT, 1)
    pk['psh'] = jnp.concatenate(psh).reshape(C_OUT, 1)
    return pk


# ========================= CTRGCNBlock (Pallas) ==========================

def ctrgcn_block_pallas(x, P):
    """x: (N, C_IN, T, V) float32 -> (N, C_OUT, T, V).  Only free (contiguous) host reshapes."""
    pk = pack_params(P)
    n_, c_, t_, v_ = x.shape
    x_flat = x.reshape(n_, c_, t_ * v_)                                  # free reshape

    x3, dyn, za = _gcn_front(x_flat, pk)
    g = _gcn_aggregate(x3.reshape(n_, S * C_OUT, t_, v_),                # free reshapes
                       dyn.reshape(n_, S * C_OUT, v_, v_),
                       za.reshape(n_, C_OUT, t_, v_),
                       x)
    y = _mstcn(g.reshape(n_, C_OUT, t_ * v_), x_flat, pk)
    return y.reshape(n_, C_OUT, t_, v_)


# ===================== pure-JAX reference (for checking) =====================

def _bn_eval(y, bn):
    g, b, m, v = bn
    return (y - m[None, :, None, None]) / jnp.sqrt(v[None, :, None, None] + EPS) \
        * g[None, :, None, None] + b[None, :, None, None]


def reference_forward(x, P):
    ysum = 0.0
    for i in range(S):
        x1 = jnp.einsum('rc,nctv->nrtv', P['gcn_w1'][i], x) + P['gcn_b1'][i][None, :, None, None]
        x2 = jnp.einsum('rc,nctv->nrtv', P['gcn_w2'][i], x) + P['gcn_b2'][i][None, :, None, None]
        x3 = jnp.einsum('oc,nctv->notv', P['gcn_w3'][i], x) + P['gcn_b3'][i][None, :, None, None]
        x1 = x1.mean(axis=2); x2 = x2.mean(axis=2)
        d = jnp.tanh(x1[:, :, :, None] - x2[:, :, None, :])
        dyn = jnp.einsum('or,nruv->nouv', P['gcn_w4'][i], d) + P['gcn_b4'][i][None, :, None, None]
        dyn = dyn * P['alpha'] + P['A'][i][None, None]
        ysum = ysum + jnp.einsum('ncuv,nctv->nctu', dyn, x3)
    g = jnp.maximum(_bn_eval(ysum, P['gcn_bn']) + x, 0.0)

    branch_outs = []
    for j, dil in enumerate(DILS):
        p = jnp.einsum('oc,nctv->notv', P['tcn_pw_w'][j], g) + P['tcn_pw_b'][j][None, :, None, None]
        p = jnp.maximum(_bn_eval(p, P['tcn_pw_bn'][j]), 0.0)
        pad = (KS + (KS - 1) * (dil - 1) - 1) // 2
        pp = jnp.pad(p, ((0, 0), (0, 0), (pad, pad), (0, 0)))
        out = P['tcn_t_b'][j][None, :, None, None]
        for k in range(KS):
            out = out + jnp.einsum('oi,nitv->notv', P['tcn_t_w'][j][:, :, k],
                                   pp[:, :, k * dil:k * dil + T, :])
        branch_outs.append(_bn_eval(out, P['tcn_t_bn'][j]))
    p = jnp.einsum('oc,nctv->notv', P['tcn_pw_w'][2], g) + P['tcn_pw_b'][2][None, :, None, None]
    p = jnp.maximum(_bn_eval(p, P['tcn_pw_bn'][2]), 0.0)
    pp = jnp.pad(p, ((0, 0), (0, 0), (1, 1), (0, 0)), constant_values=-jnp.inf)
    mp = jnp.maximum(jnp.maximum(pp[:, :, 0:T], pp[:, :, 1:T + 1]), pp[:, :, 2:T + 2])
    branch_outs.append(_bn_eval(mp, P['tcn_mp_bn']))
    p = jnp.einsum('oc,nctv->notv', P['tcn_pw_w'][3], g) + P['tcn_pw_b'][3][None, :, None, None]
    branch_outs.append(_bn_eval(p, P['tcn_pw_bn'][3]))
    tcn_out = jnp.concatenate(branch_outs, axis=1)
    return jnp.maximum(tcn_out + x, 0.0)


# ================================= main ==================================

if __name__ == "__main__":
    key = jax.random.PRNGKey(0)
    kp, kx = jax.random.split(key)
    P = init_params(kp)
    x = jax.random.normal(kx, (N, C_IN, T, V), jnp.float32)

    fwd = jax.jit(ctrgcn_block_pallas)
    y = jax.block_until_ready(fwd(x, P))

    y_ref = reference_forward(x, P)
    err = float(jnp.max(jnp.abs(y - y_ref)))
    # default TPU matmul precision; tolerance kept consistent with the validated baseline
    if err > 1e-2:
        raise AssertionError(f"Pallas vs reference mismatch: max abs err = {err}")
    print("KERNEL_OK")
</pallas_src>

<mosaic_0001>
module attributes {stable_mosaic.version = 11 : i64} {
  func.func @_gcn_front_kernel(%arg0: i32, %arg1: memref<1x16x128xf32, #tpu.memory_space<vmem>>, %arg2: memref<128x16xf32, #tpu.memory_space<vmem>>, %arg3: memref<48x16xf32, #tpu.memory_space<vmem>>, %arg4: memref<48x1xf32, #tpu.memory_space<vmem>>, %arg5: memref<16x256xf32, #tpu.memory_space<vmem>>, %arg6: memref<16x256xf32, #tpu.memory_space<vmem>>, %arg7: memref<48x8xf32, #tpu.memory_space<vmem>>, %arg8: memref<48x1xf32, #tpu.memory_space<vmem>>, %arg9: memref<48x16xf32, #tpu.memory_space<vmem>>, %arg10: memref<48x1xf32, #tpu.memory_space<vmem>>, %arg11: memref<3x128x128xf32, #tpu.memory_space<vmem>>, %arg12: memref<16x1xf32, #tpu.memory_space<vmem>>, %arg13: memref<1x48x128xf32, #tpu.memory_space<vmem>>, %arg14: memref<1x48x256xf32, #tpu.memory_space<vmem>>, %arg15: memref<1x16x128xf32, #tpu.memory_space<vmem>>) attributes {dimension_semantics = [#tpu.dimension_semantics<parallel>], iteration_bounds = array<i64: 2>, scalar_prefetch = 0 : i64, scratch_operands = 0 : i64, tpu.core_type = #tpu.core_type<tc>, window_params = [{transform_indices = @transform_0, window_bounds = array<i64: 1, 16, 128>}, {pipeline_mode = #tpu.pipeline_mode<synchronous>, transform_indices = @transform_1, window_bounds = array<i64: 128, 16>}, {pipeline_mode = #tpu.pipeline_mode<synchronous>, transform_indices = @transform_2, window_bounds = array<i64: 48, 16>}, {pipeline_mode = #tpu.pipeline_mode<synchronous>, transform_indices = @transform_3, window_bounds = array<i64: 48, 1>}, {pipeline_mode = #tpu.pipeline_mode<synchronous>, transform_indices = @transform_4, window_bounds = array<i64: 16, 256>}, {pipeline_mode = #tpu.pipeline_mode<synchronous>, transform_indices = @transform_5, window_bounds = array<i64: 16, 256>}, {pipeline_mode = #tpu.pipeline_mode<synchronous>, transform_indices = @transform_6, window_bounds = array<i64: 48, 8>}, {pipeline_mode = #tpu.pipeline_mode<synchronous>, transform_indices = @transform_7, window_bounds = array<i64: 48, 1>}, {pipeline_mode = #tpu.pipeline_mode<synchronous>, transform_indices = @transform_8, window_bounds = array<i64: 48, 16>}, {pipeline_mode = #tpu.pipeline_mode<synchronous>, transform_indices = @transform_9, window_bounds = array<i64: 48, 1>}, {pipeline_mode = #tpu.pipeline_mode<synchronous>, transform_indices = @transform_10, window_bounds = array<i64: 3, 128, 128>}, {pipeline_mode = #tpu.pipeline_mode<synchronous>, transform_indices = @transform_11, window_bounds = array<i64: 16, 1>}, {transform_indices = @transform_12, window_bounds = array<i64: 1, 48, 128>}, {transform_indices = @transform_13, window_bounds = array<i64: 1, 48, 256>}, {transform_indices = @transform_14, window_bounds = array<i64: 1, 16, 128>}]} {
    %c0 = arith.constant 0 : index
    %c0_0 = arith.constant 0 : index
    %c0_1 = arith.constant 0 : index
    %0 = vector.load %arg1[%c0, %c0_0, %c0_1] : memref<1x16x128xf32, #tpu.memory_space<vmem>>, vector<1x16x128xf32>
    %1 = vector.shape_cast %0 : vector<1x16x128xf32> to vector<16x128xf32>
    %c0_2 = arith.constant 0 : index
    %c0_3 = arith.constant 0 : index
    %2 = vector.load %arg9[%c0_2, %c0_3] : memref<48x16xf32, #tpu.memory_space<vmem>>, vector<48x16xf32>
    %cst = arith.constant dense<0.000000e+00> : vector<48x128xf32>
    %3 = tpu.matmul %2, %1, %cst {dimension_numbers = #tpu.dot_dimension_numbers<[1], [0], [0], [1], [0, 0, 1, 1], [], []>} : vector<48x16xf32>, vector<16x128xf32>, vector<48x128xf32> -> vector<48x128xf32>
    %c0_4 = arith.constant 0 : index
    %c0_5 = arith.constant 0 : index
    %4 = vector.load %arg10[%c0_4, %c0_5] : memref<48x1xf32, #tpu.memory_space<vmem>>, vector<48x1xf32>
    %5 = vector.broadcast %4 : vector<48x1xf32> to vector<48x128xf32>
    %6 = arith.addf %3, %5 : vector<48x128xf32>
    %c0_6 = arith.constant 0 : index
    %c0_7 = arith.constant 0 : index
    %c0_8 = arith.constant 0 : index
    %7 = vector.load %arg13[%c0_6, %c0_7, %c0_8] : memref<1x48x128xf32, #tpu.memory_space<vmem>>, vector<1x48x128xf32>
    %8 = vector.shape_cast %7 : vector<1x48x128xf32> to vector<48x128xf32>
    %9 = vector.shape_cast %6 : vector<48x128xf32> to vector<1x48x128xf32>
    tpu.vector_store %arg13[%c0_6, %c0_7, %c0_8], %9 {strides = array<i32>} : memref<1x48x128xf32, #tpu.memory_space<vmem>>, vector<1x48x128xf32>,
    %10 = vector.extract_strided_slice %6 {offsets = [0, 0], sizes = [16, 128], strides = [1, 1]} : vector<48x128xf32> to vector<16x128xf32>
    %c0_9 = arith.constant 0 : index
    %c0_10 = arith.constant 0 : index
    %c0_11 = arith.constant 0 : index
    %11 = vector.load %arg11[%c0_9, %c0_10, %c0_11] : memref<3x128x128xf32, #tpu.memory_space<vmem>>, vector<1x128x128xf32>
    %12 = vector.shape_cast %11 : vector<1x128x128xf32> to vector<128x128xf32>
    %cst_12 = arith.constant dense<0.000000e+00> : vector<16x128xf32>
    %13 = tpu.matmul %10, %12, %cst_12 {dimension_numbers = #tpu.dot_dimension_numbers<[1], [0], [0], [1], [0, 0, 1, 1], [], []>} : vector<16x128xf32>, vector<128x128xf32>, vector<16x128xf32> -> vector<16x128xf32>
    %14 = vector.extract_strided_slice %6 {offsets = [16, 0], sizes = [16, 128], strides = [1, 1]} : vector<48x128xf32> to vector<16x128xf32>
    %c1 = arith.constant 1 : index
    %c0_13 = arith.constant 0 : index
    %c0_14 = arith.constant 0 : index
    %15 = vector.load %arg11[%c1, %c0_13, %c0_14] : memref<3x128x128xf32, #tpu.memory_space<vmem>>, vector<1x128x128xf32>
    %16 = vector.shape_cast %15 : vector<1x128x128xf32> to vector<128x128xf32>
    %cst_15 = arith.constant dense<0.000000e+00> : vector<16x128xf32>
    %17 = tpu.matmul %14, %16, %cst_15 {dimension_numbers = #tpu.dot_dimension_numbers<[1], [0], [0], [1], [0, 0, 1, 1], [], []>} : vector<16x128xf32>, vector<128x128xf32>, vector<16x128xf32> -> vector<16x128xf32>
    %18 = arith.addf %13, %17 : vector<16x128xf32>
    %19 = vector.extract_strided_slice %6 {offsets = [32, 0], sizes = [16, 128], strides = [1, 1]} : vector<48x128xf32> to vector<16x128xf32>
    %c2 = arith.constant 2 : index
    %c0_16 = arith.constant 0 : index
    %c0_17 = arith.constant 0 : index
    %20 = vector.load %arg11[%c2, %c0_16, %c0_17] : memref<3x128x128xf32, #tpu.memory_space<vmem>>, vector<1x128x128xf32>
    %21 = vector.shape_cast %20 : vector<1x128x128xf32> to vector<128x128xf32>
    %cst_18 = arith.constant dense<0.000000e+00> : vector<16x128xf32>
    %22 = tpu.matmul %19, %21, %cst_18 {dimension_numbers = #tpu.dot_dimension_numbers<[1], [0], [0], [1], [0, 0, 1, 1], [], []>} : vector<16x128xf32>, vector<128x128xf32>, vector<16x128xf32> -> vector<16x128xf32>
    %23 = arith.addf %18, %22 : vector<16x128xf32>
    %c0_19 = arith.constant 0 : index
    %c0_20 = arith.constant 0 : index
    %24 = vector.load %arg12[%c0_19, %c0_20] : memref<16x1xf32, #tpu.memory_space<vmem>>, vector<16x1xf32>
    %25 = vector.broadcast %24 : vector<16x1xf32> to vector<16x128xf32>
    %26 = arith.addf %23, %25 : vector<16x128xf32>
    %c0_21 = arith.constant 0 : index
    %c0_22 = arith.constant 0 : index
    %c0_23 = arith.constant 0 : index
    %27 = vector.load %arg15[%c0_21, %c0_22, %c0_23] : memref<1x16x128xf32, #tpu.memory_space<vmem>>, vector<1x16x128xf32>
    %28 = vector.shape_cast %27 : vector<1x16x128xf32> to vector<16x128xf32>
    %29 = vector.shape_cast %26 : vector<16x128xf32> to vector<1x16x128xf32>
    tpu.vector_store %arg15[%c0_21, %c0_22, %c0_23], %29 {strides = array<i32>} : memref<1x16x128xf32, #tpu.memory_space<vmem>>, vector<1x16x128xf32>,
    %c0_24 = arith.constant 0 : index
    %c0_25 = arith.constant 0 : index
    %30 = vector.load %arg2[%c0_24, %c0_25] : memref<128x16xf32, #tpu.memory_space<vmem>>, vector<128x16xf32>
    %cst_26 = arith.constant dense<0.000000e+00> : vector<16x16xf32>
    %31 = tpu.matmul %1, %30, %cst_26 {dimension_numbers = #tpu.dot_dimension_numbers<[1], [0], [0], [1], [0, 0, 1, 1], [], []>} : vector<16x128xf32>, vector<128x16xf32>, vector<16x16xf32> -> vector<16x16xf32>
    %c0_27 = arith.constant 0 : index
    %c0_28 = arith.constant 0 : index
    %32 = vector.load %arg3[%c0_27, %c0_28] : memref<48x16xf32, #tpu.memory_space<vmem>>, vector<48x16xf32>
    %cst_29 = arith.constant dense<0.000000e+00> : vector<48x16xf32>
    %33 = tpu.matmul %32, %31, %cst_29 {dimension_numbers = #tpu.dot_dimension_numbers<[1], [0], [0], [1], [0, 0, 1, 1], [], []>} : vector<48x16xf32>, vector<16x16xf32>, vector<48x16xf32> -> vector<48x16xf32>
    %c0_30 = arith.constant 0 : index
    %c0_31 = arith.constant 0 : index
    %34 = vector.load %arg4[%c0_30, %c0_31] : memref<48x1xf32, #tpu.memory_space<vmem>>, vector<48x1xf32>
    %35 = vector.broadcast %34 : vector<48x1xf32> to vector<48x16xf32>
    %36 = arith.addf %33, %35 : vector<48x16xf32>
    %37 = vector.extract_strided_slice %36 {offsets = [0, 0], sizes = [8, 16], strides = [1, 1]} : vector<48x16xf32> to vector<8x16xf32>
    %38 = vector.extract_strided_slice %36 {offsets = [24, 0], sizes = [8, 16], strides = [1, 1]} : vector<48x16xf32> to vector<8x16xf32>
    %c0_32 = arith.constant 0 : index
    %c0_33 = arith.constant 0 : index
    %39 = vector.load %arg5[%c0_32, %c0_33] : memref<16x256xf32, #tpu.memory_space<vmem>>, vector<16x256xf32>
    %cst_34 = arith.constant dense<0.000000e+00> : vector<8x256xf32>
    %40 = tpu.matmul %37, %39, %cst_34 {dimension_numbers = #tpu.dot_dimension_numbers<[1], [0], [0], [1], [0, 0, 1, 1], [], []>} : vector<8x16xf32>, vector<16x256xf32>, vector<8x256xf32> -> vector<8x256xf32>
    %c0_35 = arith.constant 0 : index
    %c0_36 = arith.constant 0 : index
    %41 = vector.load %arg6[%c0_35, %c0_36] : memref<16x256xf32, #tpu.memory_space<vmem>>, vector<16x256xf32>
    %cst_37 = arith.constant dense<0.000000e+00> : vector<8x256xf32>
    %42 = tpu.matmul %38, %41, %cst_37 {dimension_numbers = #tpu.dot_dimension_numbers<[1], [0], [0], [1], [0, 0, 1, 1], [], []>} : vector<8x16xf32>, vector<16x256xf32>, vector<8x256xf32> -> vector<8x256xf32>
    %43 = arith.subf %40, %42 : vector<8x256xf32>
    %44 = math.tanh %43 : vector<8x256xf32>
    %c0_38 = arith.constant 0 : index
    %c0_39 = arith.constant 0 : index
    %45 = vector.load %arg7[%c0_38, %c0_39] : memref<48x8xf32, #tpu.memory_space<vmem>>, vector<16x8xf32>
    %cst_40 = arith.constant dense<0.000000e+00> : vector<16x256xf32>
    %46 = tpu.matmul %45, %44, %cst_40 {dimension_numbers = #tpu.dot_dimension_numbers<[1], [0], [0], [1], [0, 0, 1, 1], [], []>} : vector<16x8xf32>, vector<8x256xf32>, vector<16x256xf32> -> vector<16x256xf32>
    %c0_41 = arith.constant 0 : index
    %c0_42 = arith.constant 0 : index
    %47 = vector.load %arg8[%c0_41, %c0_42] : memref<48x1xf32, #tpu.memory_space<vmem>>, vector<16x1xf32>
    %48 = vector.broadcast %47 : vector<16x1xf32> to vector<16x256xf32>
    %49 = arith.addf %46, %48 : vector<16x256xf32>
    %c0_43 = arith.constant 0 : index
    %c0_44 = arith.constant 0 : index
    %c0_45 = arith.constant 0 : index
    %50 = vector.load %arg14[%c0_43, %c0_44, %c0_45] : memref<1x48x256xf32, #tpu.memory_space<vmem>>, vector<1x16x256xf32>
    %51 = vector.shape_cast %50 : vector<1x16x256xf32> to vector<16x256xf32>
    %52 = vector.shape_cast %49 : vector<16x256xf32> to vector<1x16x256xf32>
    tpu.vector_store %arg14[%c0_43, %c0_44, %c0_45], %52 {strides = array<i32>} : memref<1x48x256xf32, #tpu.memory_space<vmem>>, vector<1x16x256xf32>,
    %53 = vector.extract_strided_slice %36 {offsets = [8, 0], sizes = [8, 16], strides = [1, 1]} : vector<48x16xf32> to vector<8x16xf32>
    %54 = vector.extract_strided_slice %36 {offsets = [32, 0], sizes = [8, 16], strides = [1, 1]} : vector<48x16xf32> to vector<8x16xf32>
    %c0_46 = arith.constant 0 : index
    %c0_47 = arith.constant 0 : index
    %55 = vector.load %arg5[%c0_46, %c0_47] : memref<16x256xf32, #tpu.memory_space<vmem>>, vector<16x256xf32>
    %cst_48 = arith.constant dense<0.000000e+00> : vector<8x256xf32>
    %56 = tpu.matmul %53, %55, %cst_48 {dimension_numbers = #tpu.dot_dimension_numbers<[1], [0], [0], [1], [0, 0, 1, 1], [], []>} : vector<8x16xf32>, vector<16x256xf32>, vector<8x256xf32> -> vector<8x256xf32>
    %c0_49 = arith.constant 0 : index
    %c0_50 = arith.constant 0 : index
    %57 = vector.load %arg6[%c0_49, %c0_50] : memref<16x256xf32, #tpu.memory_space<vmem>>, vector<16x256xf32>
    %cst_51 = arith.constant dense<0.000000e+00> : vector<8x256xf32>
    %58 = tpu.matmul %54, %57, %cst_51 {dimension_numbers = #tpu.dot_dimension_numbers<[1], [0], [0], [1], [0, 0, 1, 1], [], []>} : vector<8x16xf32>, vector<16x256xf32>, vector<8x256xf32> -> vector<8x256xf32>
    %59 = arith.subf %56, %58 : vector<8x256xf32>
    %60 = math.tanh %59 : vector<8x256xf32>
    %c16 = arith.constant 16 : index
    %c0_52 = arith.constant 0 : index
    %61 = vector.load %arg7[%c16, %c0_52] : memref<48x8xf32, #tpu.memory_space<vmem>>, vector<16x8xf32>
    %cst_53 = arith.constant dense<0.000000e+00> : vector<16x256xf32>
    %62 = tpu.matmul %61, %60, %cst_53 {dimension_numbers = #tpu.dot_dimension_numbers<[1], [0], [0], [1], [0, 0, 1, 1], [], []>} : vector<16x8xf32>, vector<8x256xf32>, vector<16x256xf32> -> vector<16x256xf32>
    %c16_54 = arith.constant 16 : index
    %c0_55 = arith.constant 0 : index
    %63 = vector.load %arg8[%c16_54, %c0_55] : memref<48x1xf32, #tpu.memory_space<vmem>>, vector<16x1xf32>
    %64 = vector.broadcast %63 : vector<16x1xf32> to vector<16x256xf32>
    %65 = arith.addf %62, %64 : vector<16x256xf32>
    %c0_56 = arith.constant 0 : index
    %c16_57 = arith.constant 16 : index
    %c0_58 = arith.constant 0 : index
    %66 = vector.load %arg14[%c0_56, %c16_57, %c0_58] : memref<1x48x256xf32, #tpu.memory_space<vmem>>, vector<1x16x256xf32>
    %67 = vector.shape_cast %66 : vector<1x16x256xf32> to vector<16x256xf32>
    %68 = vector.shape_cast %65 : vector<16x256xf32> to vector<1x16x256xf32>
    tpu.vector_store %arg14[%c0_56, %c16_57, %c0_58], %68 {strides = array<i32>} : memref<1x48x256xf32, #tpu.memory_space<vmem>>, vector<1x16x256xf32>,
    %69 = vector.extract_strided_slice %36 {offsets = [16, 0], sizes = [8, 16], strides = [1, 1]} : vector<48x16xf32> to vector<8x16xf32>
    %70 = vector.extract_strided_slice %36 {offsets = [40, 0], sizes = [8, 16], strides = [1, 1]} : vector<48x16xf32> to vector<8x16xf32>
    %c0_59 = arith.constant 0 : index
    %c0_60 = arith.constant 0 : index
    %71 = vector.load %arg5[%c0_59, %c0_60] : memref<16x256xf32, #tpu.memory_space<vmem>>, vector<16x256xf32>
    %cst_61 = arith.constant dense<0.000000e+00> : vector<8x256xf32>
    %72 = tpu.matmul %69, %71, %cst_61 {dimension_numbers = #tpu.dot_dimension_numbers<[1], [0], [0], [1], [0, 0, 1, 1], [], []>} : vector<8x16xf32>, vector<16x256xf32>, vector<8x256xf32> -> vector<8x256xf32>
    %c0_62 = arith.constant 0 : index
    %c0_63 = arith.constant 0 : index
    %73 = vector.load %arg6[%c0_62, %c0_63] : memref<16x256xf32, #tpu.memory_space<vmem>>, vector<16x256xf32>
    %cst_64 = arith.constant dense<0.000000e+00> : vector<8x256xf32>
    %74 = tpu.matmul %70, %73, %cst_64 {dimension_numbers = #tpu.dot_dimension_numbers<[1], [0], [0], [1], [0, 0, 1, 1], [], []>} : vector<8x16xf32>, vector<16x256xf32>, vector<8x256xf32> -> vector<8x256xf32>
    %75 = arith.subf %72, %74 : vector<8x256xf32>
    %76 = math.tanh %75 : vector<8x256xf32>
    %c32 = arith.constant 32 : index
    %c0_65 = arith.constant 0 : index
    %77 = vector.load %arg7[%c32, %c0_65] : memref<48x8xf32, #tpu.memory_space<vmem>>, vector<16x8xf32>
    %cst_66 = arith.constant dense<0.000000e+00> : vector<16x256xf32>
    %78 = tpu.matmul %77, %76, %cst_66 {dimension_numbers = #tpu.dot_dimension_numbers<[1], [0], [0], [1], [0, 0, 1, 1], [], []>} : vector<16x8xf32>, vector<8x256xf32>, vector<16x256xf32> -> vector<16x256xf32>
    %c32_67 = arith.constant 32 : index
    %c0_68 = arith.constant 0 : index
    %79 = vector.load %arg8[%c32_67, %c0_68] : memref<48x1xf32, #tpu.memory_space<vmem>>, vector<16x1xf32>
    %80 = vector.broadcast %79 : vector<16x1xf32> to vector<16x256xf32>
    %81 = arith.addf %78, %80 : vector<16x256xf32>
    %c0_69 = arith.constant 0 : index
    %c32_70 = arith.constant 32 : index
    %c0_71 = arith.constant 0 : index
    %82 = vector.load %arg14[%c0_69, %c32_70, %c0_71] : memref<1x48x256xf32, #tpu.memory_space<vmem>>, vector<1x16x256xf32>
    %83 = vector.shape_cast %82 : vector<1x16x256xf32> to vector<16x256xf32>
    %84 = vector.shape_cast %81 : vector<16x256xf32> to vector<1x16x256xf32>
    tpu.vector_store %arg14[%c0_69, %c32_70, %c0_71], %84 {strides = array<i32>} : memref<1x48x256xf32, #tpu.memory_space<vmem>>, vector<1x16x256xf32>,
    return
  }
  func.func @transform_0(%arg0: i32) -> (i32, i32, i32) {
    %c0_i32 = arith.constant 0 : i32
    %c0_i32_0 = arith.constant 0 : i32
    %c0_i32_1 = arith.constant 0 : i32
    return %arg0, %c0_i32, %c0_i32_0 : i32, i32, i32
  }
  func.func @transform_1(%arg0: i32) -> (i32, i32) {
    %c0_i32 = arith.constant 0 : i32
    %c0_i32_0 = arith.constant 0 : i32
    %c0_i32_1 = arith.constant 0 : i32
    return %c0_i32, %c0_i32_0 : i32, i32
  }
  func.func @transform_2(%arg0: i32) -> (i32, i32) {
    %c0_i32 = arith.constant 0 : i32
    %c0_i32_0 = arith.constant 0 : i32
    %c0_i32_1 = arith.constant 0 : i32
    return %c0_i32, %c0_i32_0 : i32, i32
  }
  func.func @transform_3(%arg0: i32) -> (i32, i32) {
    %c0_i32 = arith.constant 0 : i32
    %c0_i32_0 = arith.constant 0 : i32
    %c0_i32_1 = arith.constant 0 : i32
    return %c0_i32, %c0_i32_0 : i32, i32
  }
  func.func @transform_4(%arg0: i32) -> (i32, i32) {
    %c0_i32 = arith.constant 0 : i32
    %c0_i32_0 = arith.constant 0 : i32
    %c0_i32_1 = arith.constant 0 : i32
    return %c0_i32, %c0_i32_0 : i32, i32
  }
  func.func @transform_5(%arg0: i32) -> (i32, i32) {
    %c0_i32 = arith.constant 0 : i32
    %c0_i32_0 = arith.constant 0 : i32
    %c0_i32_1 = arith.constant 0 : i32
    return %c0_i32, %c0_i32_0 : i32, i32
  }
  func.func @transform_6(%arg0: i32) -> (i32, i32) {
    %c0_i32 = arith.constant 0 : i32
    %c0_i32_0 = arith.constant 0 : i32
    %c0_i32_1 = arith.constant 0 : i32
    return %c0_i32, %c0_i32_0 : i32, i32
  }
  func.func @transform_7(%arg0: i32) -> (i32, i32) {
    %c0_i32 = arith.constant 0 : i32
    %c0_i32_0 = arith.constant 0 : i32
    %c0_i32_1 = arith.constant 0 : i32
    return %c0_i32, %c0_i32_0 : i32, i32
  }
  func.func @transform_8(%arg0: i32) -> (i32, i32) {
    %c0_i32 = arith.constant 0 : i32
    %c0_i32_0 = arith.constant 0 : i32
    %c0_i32_1 = arith.constant 0 : i32
    return %c0_i32, %c0_i32_0 : i32, i32
  }
  func.func @transform_9(%arg0: i32) -> (i32, i32) {
    %c0_i32 = arith.constant 0 : i32
    %c0_i32_0 = arith.constant 0 : i32
    %c0_i32_1 = arith.constant 0 : i32
    return %c0_i32, %c0_i32_0 : i32, i32
  }
  func.func @transform_10(%arg0: i32) -> (i32, i32, i32) {
    %c0_i32 = arith.constant 0 : i32
    %c0_i32_0 = arith.constant 0 : i32
    %c0_i32_1 = arith.constant 0 : i32
    %c0_i32_2 = arith.constant 0 : i32
    return %c0_i32, %c0_i32_0, %c0_i32_1 : i32, i32, i32
  }
  func.func @transform_11(%arg0: i32) -> (i32, i32) {
    %c0_i32 = arith.constant 0 : i32
    %c0_i32_0 = arith.constant 0 : i32
    %c0_i32_1 = arith.constant 0 : i32
    return %c0_i32, %c0_i32_0 : i32, i32
  }
  func.func @transform_12(%arg0: i32) -> (i32, i32, i32) {
    %c0_i32 = arith.constant 0 : i32
    %c0_i32_0 = arith.constant 0 : i32
    %c0_i32_1 = arith.constant 0 : i32
    return %arg0, %c0_i32, %c0_i32_0 : i32, i32, i32
  }
  func.func @transform_13(%arg0: i32) -> (i32, i32, i32) {
    %c0_i32 = arith.constant 0 : i32
    %c0_i32_0 = arith.constant 0 : i32
    %c0_i32_1 = arith.constant 0 : i32
    return %arg0, %c0_i32, %c0_i32_0 : i32, i32, i32
  }
  func.func @transform_14(%arg0: i32) -> (i32, i32, i32) {
    %c0_i32 = arith.constant 0 : i32
    %c0_i32_0 = arith.constant 0 : i32
    %c0_i32_1 = arith.constant 0 : i32
    return %arg0, %c0_i32, %c0_i32_0 : i32, i32, i32
  }
}

module attributes {stable_mosaic.version = 11 : i64} {
  func.func @_gcn_agg_kernel(%arg0: i32, %arg1: memref<1x48x8x16xf32, #tpu.memory_space<vmem>>, %arg2: memref<1x48x16x16xf32, #tpu.memory_space<vmem>>, %arg3: memref<1x16x8x16xf32, #tpu.memory_space<vmem>>, %arg4: memref<1x16x8x16xf32, #tpu.memory_space<vmem>>, %arg5: memref<1x16x8x16xf32, #tpu.memory_space<vmem>>) attributes {dimension_semantics = [#tpu.dimension_semantics<parallel>], iteration_bounds = array<i64: 2>, scalar_prefetch = 0 : i64, scratch_operands = 0 : i64, tpu.core_type = #tpu.core_type<tc>, window_params = [{transform_indices = @transform_0, window_bounds = array<i64: 1, 48, 8, 16>}, {transform_indices = @transform_1, window_bounds = array<i64: 1, 48, 16, 16>}, {transform_indices = @transform_2, window_bounds = array<i64: 1, 16, 8, 16>}, {transform_indices = @transform_3, window_bounds = array<i64: 1, 16, 8, 16>}, {transform_indices = @transform_4, window_bounds = array<i64: 1, 16, 8, 16>}]} {
    %c0 = arith.constant 0 : index
    %c0_0 = arith.constant 0 : index
    %c0_1 = arith.constant 0 : index
    %c0_2 = arith.constant 0 : index
    %0 = vector.load %arg1[%c0, %c0_0, %c0_1, %c0_2] : memref<1x48x8x16xf32, #tpu.memory_space<vmem>>, vector<1x48x8x16xf32>
    %1 = vector.shape_cast %0 : vector<1x48x8x16xf32> to vector<48x8x16xf32>
    %c0_3 = arith.constant 0 : index
    %c0_4 = arith.constant 0 : index
    %c0_5 = arith.constant 0 : index
    %c0_6 = arith.constant 0 : index
    %2 = vector.load %arg2[%c0_3, %c0_4, %c0_5, %c0_6] : memref<1x48x16x16xf32, #tpu.memory_space<vmem>>, vector<1x48x16x16xf32>
    %3 = vector.shape_cast %2 : vector<1x48x16x16xf32> to vector<48x16x16xf32>
    "tpu.trace_start"() <{level = 10 : i32, message = "ctv,cuv->ctu"}> : () -> ()
    %cst = arith.constant dense<0.000000e+00> : vector<48x8x16xf32>
    %4 = tpu.matmul %1, %3, %cst {dimension_numbers = #tpu.dot_dimension_numbers<[2], [2], [1], [1], [0, 0, 0, 1, 1, 1], [0], [0]>} : vector<48x8x16xf32>, vector<48x16x16xf32>, vector<48x8x16xf32> -> vector<48x8x16xf32>
    "tpu.trace_stop"() : () -> ()
    %5 = vector.extract_strided_slice %4 {offsets = [0, 0, 0], sizes = [16, 8, 16], strides = [1, 1, 1]} : vector<48x8x16xf32> to vector<16x8x16xf32>
    %6 = vector.extract_strided_slice %4 {offsets = [16, 0, 0], sizes = [16, 8, 16], strides = [1, 1, 1]} : vector<48x8x16xf32> to vector<16x8x16xf32>
    %7 = arith.addf %5, %6 : vector<16x8x16xf32>
    %8 = vector.extract_strided_slice %4 {offsets = [32, 0, 0], sizes = [16, 8, 16], strides = [1, 1, 1]} : vector<48x8x16xf32> to vector<16x8x16xf32>
    %9 = arith.addf %7, %8 : vector<16x8x16xf32>
    %c0_7 = arith.constant 0 : index
    %c0_8 = arith.constant 0 : index
    %c0_9 = arith.constant 0 : index
    %c0_10 = arith.constant 0 : index
    %10 = vector.load %arg3[%c0_7, %c0_8, %c0_9, %c0_10] : memref<1x16x8x16xf32, #tpu.memory_space<vmem>>, vector<1x16x8x16xf32>
    %11 = vector.shape_cast %10 : vector<1x16x8x16xf32> to vector<16x8x16xf32>
    %12 = arith.addf %11, %9 : vector<16x8x16xf32>
    %c0_11 = arith.constant 0 : index
    %c0_12 = arith.constant 0 : index
    %c0_13 = arith.constant 0 : index
    %c0_14 = arith.constant 0 : index
    %13 = vector.load %arg4[%c0_11, %c0_12, %c0_13, %c0_14] : memref<1x16x8x16xf32, #tpu.memory_space<vmem>>, vector<1x16x8x16xf32>
    %14 = vector.shape_cast %13 : vector<1x16x8x16xf32> to vector<16x8x16xf32>
    %15 = arith.addf %12, %14 : vector<16x8x16xf32>
    %cst_15 = arith.constant 0.000000e+00 : f32
    %16 = vector.broadcast %cst_15 : f32 to vector<16x8x16xf32>
    %17 = arith.maximumf %15, %16 : vector<16x8x16xf32>
    %c0_16 = arith.constant 0 : index
    %c0_17 = arith.constant 0 : index
    %c0_18 = arith.constant 0 : index
    %c0_19 = arith.constant 0 : index
    %18 = vector.load %arg5[%c0_16, %c0_17, %c0_18, %c0_19] : memref<1x16x8x16xf32, #tpu.memory_space<vmem>>, vector<1x16x8x16xf32>
    %19 = vector.shape_cast %18 : vector<1x16x8x16xf32> to vector<16x8x16xf32>
    %20 = vector.shape_cast %17 : vector<16x8x16xf32> to vector<1x16x8x16xf32>
    tpu.vector_store %arg5[%c0_16, %c0_17, %c0_18, %c0_19], %20 {strides = array<i32>} : memref<1x16x8x16xf32, #tpu.memory_space<vmem>>, vector<1x16x8x16xf32>,
    return
  }
  func.func @transform_0(%arg0: i32) -> (i32, i32, i32, i32) {
    %c0_i32 = arith.constant 0 : i32
    %c0_i32_0 = arith.constant 0 : i32
    %c0_i32_1 = arith.constant 0 : i32
    %c0_i32_2 = arith.constant 0 : i32
    return %arg0, %c0_i32, %c0_i32_0, %c0_i32_1 : i32, i32, i32, i32
  }
  func.func @transform_1(%arg0: i32) -> (i32, i32, i32, i32) {
    %c0_i32 = arith.constant 0 : i32
    %c0_i32_0 = arith.constant 0 : i32
    %c0_i32_1 = arith.constant 0 : i32
    %c0_i32_2 = arith.constant 0 : i32
    return %arg0, %c0_i32, %c0_i32_0, %c0_i32_1 : i32, i32, i32, i32
  }
  func.func @transform_2(%arg0: i32) -> (i32, i32, i32, i32) {
    %c0_i32 = arith.constant 0 : i32
    %c0_i32_0 = arith.constant 0 : i32
    %c0_i32_1 = arith.constant 0 : i32
    %c0_i32_2 = arith.constant 0 : i32
    return %arg0, %c0_i32, %c0_i32_0, %c0_i32_1 : i32, i32, i32, i32
  }
  func.func @transform_3(%arg0: i32) -> (i32, i32, i32, i32) {
    %c0_i32 = arith.constant 0 : i32
    %c0_i32_0 = arith.constant 0 : i32
    %c0_i32_1 = arith.constant 0 : i32
    %c0_i32_2 = arith.constant 0 : i32
    return %arg0, %c0_i32, %c0_i32_0, %c0_i32_1 : i32, i32, i32, i32
  }
  func.func @transform_4(%arg0: i32) -> (i32, i32, i32, i32) {
    %c0_i32 = arith.constant 0 : i32
    %c0_i32_0 = arith.constant 0 : i32
    %c0_i32_1 = arith.constant 0 : i32
    %c0_i32_2 = arith.constant 0 : i32
    return %arg0, %c0_i32, %c0_i32_0, %c0_i32_1 : i32, i32, i32, i32
  }
}

module attributes {stable_mosaic.version = 11 : i64} {
  func.func @_mstcn_kernel(%arg0: i32, %arg1: memref<1x16x128xf32, #tpu.memory_space<vmem>>, %arg2: memref<1x16x128xf32, #tpu.memory_space<vmem>>, %arg3: memref<16x16xf32, #tpu.memory_space<vmem>>, %arg4: memref<16x1xf32, #tpu.memory_space<vmem>>, %arg5: memref<2x5x4x4xf32, #tpu.memory_space<vmem>>, %arg6: memref<16x1xf32, #tpu.memory_space<vmem>>, %arg7: memref<16x1xf32, #tpu.memory_space<vmem>>, %arg8: memref<1x16x128xf32, #tpu.memory_space<vmem>>) attributes {dimension_semantics = [#tpu.dimension_semantics<parallel>], iteration_bounds = array<i64: 2>, scalar_prefetch = 0 : i64, scratch_operands = 0 : i64, tpu.core_type = #tpu.core_type<tc>, window_params = [{transform_indices = @transform_0, window_bounds = array<i64: 1, 16, 128>}, {transform_indices = @transform_1, window_bounds = array<i64: 1, 16, 128>}, {pipeline_mode = #tpu.pipeline_mode<synchronous>, transform_indices = @transform_2, window_bounds = array<i64: 16, 16>}, {pipeline_mode = #tpu.pipeline_mode<synchronous>, transform_indices = @transform_3, window_bounds = array<i64: 16, 1>}, {pipeline_mode = #tpu.pipeline_mode<synchronous>, transform_indices = @transform_4, window_bounds = array<i64: 2, 5, 4, 4>}, {pipeline_mode = #tpu.pipeline_mode<synchronous>, transform_indices = @transform_5, window_bounds = array<i64: 16, 1>}, {pipeline_mode = #tpu.pipeline_mode<synchronous>, transform_indices = @transform_6, window_bounds = array<i64: 16, 1>}, {transform_indices = @transform_7, window_bounds = array<i64: 1, 16, 128>}]} {
    %c0 = arith.constant 0 : index
    %c0_0 = arith.constant 0 : index
    %c0_1 = arith.constant 0 : index
    %0 = vector.load %arg1[%c0, %c0_0, %c0_1] : memref<1x16x128xf32, #tpu.memory_space<vmem>>, vector<1x16x128xf32>
    %1 = vector.shape_cast %0 : vector<1x16x128xf32> to vector<16x128xf32>
    %c0_2 = arith.constant 0 : index
    %c0_3 = arith.constant 0 : index
    %2 = vector.load %arg3[%c0_2, %c0_3] : memref<16x16xf32, #tpu.memory_space<vmem>>, vector<16x16xf32>
    %cst = arith.constant dense<0.000000e+00> : vector<16x128xf32>
    %3 = tpu.matmul %2, %1, %cst {dimension_numbers = #tpu.dot_dimension_numbers<[1], [0], [0], [1], [0, 0, 1, 1], [], []>} : vector<16x16xf32>, vector<16x128xf32>, vector<16x128xf32> -> vector<16x128xf32>
    %c0_4 = arith.constant 0 : index
    %c0_5 = arith.constant 0 : index
    %4 = vector.load %arg4[%c0_4, %c0_5] : memref<16x1xf32, #tpu.memory_space<vmem>>, vector<16x1xf32>
    %5 = vector.broadcast %4 : vector<16x1xf32> to vector<16x128xf32>
    %6 = arith.addf %3, %5 : vector<16x128xf32>
    %cst_6 = arith.constant 0.000000e+00 : f32
    %7 = vector.broadcast %cst_6 : f32 to vector<16x128xf32>
    %8 = arith.maximumf %6, %7 : vector<16x128xf32>
    %9 = vector.extract_strided_slice %8 {offsets = [0, 0], sizes = [4, 128], strides = [1, 1]} : vector<16x128xf32> to vector<4x128xf32>
    %cst_7 = arith.constant 0.000000e+00 : f32
    %10 = vector.broadcast %cst_7 : f32 to vector<4x128xf32>
    %cst_8 = arith.constant 0.000000e+00 : f32
    %11 = vector.broadcast %cst_8 : f32 to vector<4x32xf32>
    %12 = vector.extract_strided_slice %9 {offsets = [0, 0], sizes = [4, 96], strides = [1, 1]} : vector<4x128xf32> to vector<4x96xf32>
    %13 = tpu.concatenate %11, %12 in 1 : vector<4x32xf32>, vector<4x96xf32> -> vector<4x128xf32>
    %c0_9 = arith.constant 0 : index
    %c0_10 = arith.constant 0 : index
    %c0_11 = arith.constant 0 : index
    %c0_12 = arith.constant 0 : index
    %14 = vector.load %arg5[%c0_9, %c0_10, %c0_11, %c0_12] : memref<2x5x4x4xf32, #tpu.memory_space<vmem>>, vector<1x1x4x4xf32>
    %15 = vector.shape_cast %14 : vector<1x1x4x4xf32> to vector<4x4xf32>
    %cst_13 = arith.constant dense<0.000000e+00> : vector<4x128xf32>
    %16 = tpu.matmul %15, %13, %cst_13 {dimension_numbers = #tpu.dot_dimension_numbers<[1], [0], [0], [1], [0, 0, 1, 1], [], []>} : vector<4x4xf32>, vector<4x128xf32>, vector<4x128xf32> -> vector<4x128xf32>
    %17 = arith.addf %10, %16 : vector<4x128xf32>
    %cst_14 = arith.constant 0.000000e+00 : f32
    %18 = vector.broadcast %cst_14 : f32 to vector<4x16xf32>
    %19 = vector.extract_strided_slice %9 {offsets = [0, 0], sizes = [4, 112], strides = [1, 1]} : vector<4x128xf32> to vector<4x112xf32>
    %20 = tpu.concatenate %18, %19 in 1 : vector<4x16xf32>, vector<4x112xf32> -> vector<4x128xf32>
    %c0_15 = arith.constant 0 : index
    %c1 = arith.constant 1 : index
    %c0_16 = arith.constant 0 : index
    %c0_17 = arith.constant 0 : index
    %21 = vector.load %arg5[%c0_15, %c1, %c0_16, %c0_17] : memref<2x5x4x4xf32, #tpu.memory_space<vmem>>, vector<1x1x4x4xf32>
    %22 = vector.shape_cast %21 : vector<1x1x4x4xf32> to vector<4x4xf32>
    %cst_18 = arith.constant dense<0.000000e+00> : vector<4x128xf32>
    %23 = tpu.matmul %22, %20, %cst_18 {dimension_numbers = #tpu.dot_dimension_numbers<[1], [0], [0], [1], [0, 0, 1, 1], [], []>} : vector<4x4xf32>, vector<4x128xf32>, vector<4x128xf32> -> vector<4x128xf32>
    %24 = arith.addf %17, %23 : vector<4x128xf32>
    %c0_19 = arith.constant 0 : index
    %c2 = arith.constant 2 : index
    %c0_20 = arith.constant 0 : index
    %c0_21 = arith.constant 0 : index
    %25 = vector.load %arg5[%c0_19, %c2, %c0_20, %c0_21] : memref<2x5x4x4xf32, #tpu.memory_space<vmem>>, vector<1x1x4x4xf32>
    %26 = vector.shape_cast %25 : vector<1x1x4x4xf32> to vector<4x4xf32>
    %cst_22 = arith.constant dense<0.000000e+00> : vector<4x128xf32>
    %27 = tpu.matmul %26, %9, %cst_22 {dimension_numbers = #tpu.dot_dimension_numbers<[1], [0], [0], [1], [0, 0, 1, 1], [], []>} : vector<4x4xf32>, vector<4x128xf32>, vector<4x128xf32> -> vector<4x128xf32>
    %28 = arith.addf %24, %27 : vector<4x128xf32>
    %29 = vector.extract_strided_slice %9 {offsets = [0, 16], sizes = [4, 112], strides = [1, 1]} : vector<4x128xf32> to vector<4x112xf32>
    %cst_23 = arith.constant 0.000000e+00 : f32
    %30 = vector.broadcast %cst_23 : f32 to vector<4x16xf32>
    %31 = tpu.concatenate %29, %30 in 1 : vector<4x112xf32>, vector<4x16xf32> -> vector<4x128xf32>
    %c0_24 = arith.constant 0 : index
    %c3 = arith.constant 3 : index
    %c0_25 = arith.constant 0 : index
    %c0_26 = arith.constant 0 : index
    %32 = vector.load %arg5[%c0_24, %c3, %c0_25, %c0_26] : memref<2x5x4x4xf32, #tpu.memory_space<vmem>>, vector<1x1x4x4xf32>
    %33 = vector.shape_cast %32 : vector<1x1x4x4xf32> to vector<4x4xf32>
    %cst_27 = arith.constant dense<0.000000e+00> : vector<4x128xf32>
    %34 = tpu.matmul %33, %31, %cst_27 {dimension_numbers = #tpu.dot_dimension_numbers<[1], [0], [0], [1], [0, 0, 1, 1], [], []>} : vector<4x4xf32>, vector<4x128xf32>, vector<4x128xf32> -> vector<4x128xf32>
    %35 = arith.addf %28, %34 : vector<4x128xf32>
    %36 = vector.extract_strided_slice %9 {offsets = [0, 32], sizes = [4, 96], strides = [1, 1]} : vector<4x128xf32> to vector<4x96xf32>
    %cst_28 = arith.constant 0.000000e+00 : f32
    %37 = vector.broadcast %cst_28 : f32 to vector<4x32xf32>
    %38 = tpu.concatenate %36, %37 in 1 : vector<4x96xf32>, vector<4x32xf32> -> vector<4x128xf32>
    %c0_29 = arith.constant 0 : index
    %c4 = arith.constant 4 : index
    %c0_30 = arith.constant 0 : index
    %c0_31 = arith.constant 0 : index
    %39 = vector.load %arg5[%c0_29, %c4, %c0_30, %c0_31] : memref<2x5x4x4xf32, #tpu.memory_space<vmem>>, vector<1x1x4x4xf32>
    %40 = vector.shape_cast %39 : vector<1x1x4x4xf32> to vector<4x4xf32>
    %cst_32 = arith.constant dense<0.000000e+00> : vector<4x128xf32>
    %41 = tpu.matmul %40, %38, %cst_32 {dimension_numbers = #tpu.dot_dimension_numbers<[1], [0], [0], [1], [0, 0, 1, 1], [], []>} : vector<4x4xf32>, vector<4x128xf32>, vector<4x128xf32> -> vector<4x128xf32>
    %42 = arith.addf %35, %41 : vector<4x128xf32>
    %43 = vector.extract_strided_slice %8 {offsets = [4, 0], sizes = [4, 128], strides = [1, 1]} : vector<16x128xf32> to vector<4x128xf32>
    %cst_33 = arith.constant 0.000000e+00 : f32
    %44 = vector.broadcast %cst_33 : f32 to vector<4x128xf32>
    %cst_34 = arith.constant 0.000000e+00 : f32
    %45 = vector.broadcast %cst_34 : f32 to vector<4x64xf32>
    %46 = vector.extract_strided_slice %43 {offsets = [0, 0], sizes = [4, 64], strides = [1, 1]} : vector<4x128xf32> to vector<4x64xf32>
    %47 = tpu.concatenate %45, %46 in 1 : vector<4x64xf32>, vector<4x64xf32> -> vector<4x128xf32>
    %c1_35 = arith.constant 1 : index
    %c0_36 = arith.constant 0 : index
    %c0_37 = arith.constant 0 : index
    %c0_38 = arith.constant 0 : index
    %48 = vector.load %arg5[%c1_35, %c0_36, %c0_37, %c0_38] : memref<2x5x4x4xf32, #tpu.memory_space<vmem>>, vector<1x1x4x4xf32>
    %49 = vector.shape_cast %48 : vector<1x1x4x4xf32> to vector<4x4xf32>
    %cst_39 = arith.constant dense<0.000000e+00> : vector<4x128xf32>
    %50 = tpu.matmul %49, %47, %cst_39 {dimension_numbers = #tpu.dot_dimension_numbers<[1], [0], [0], [1], [0, 0, 1, 1], [], []>} : vector<4x4xf32>, vector<4x128xf32>, vector<4x128xf32> -> vector<4x128xf32>
    %51 = arith.addf %44, %50 : vector<4x128xf32>
    %cst_40 = arith.constant 0.000000e+00 : f32
    %52 = vector.broadcast %cst_40 : f32 to vector<4x32xf32>
    %53 = vector.extract_strided_slice %43 {offsets = [0, 0], sizes = [4, 96], strides = [1, 1]} : vector<4x128xf32> to vector<4x96xf32>
    %54 = tpu.concatenate %52, %53 in 1 : vector<4x32xf32>, vector<4x96xf32> -> vector<4x128xf32>
    %c1_41 = arith.constant 1 : index
    %c1_42 = arith.constant 1 : index
    %c0_43 = arith.constant 0 : index
    %c0_44 = arith.constant 0 : index
    %55 = vector.load %arg5[%c1_41, %c1_42, %c0_43, %c0_44] : memref<2x5x4x4xf32, #tpu.memory_space<vmem>>, vector<1x1x4x4xf32>
    %56 = vector.shape_cast %55 : vector<1x1x4x4xf32> to vector<4x4xf32>
    %cst_45 = arith.constant dense<0.000000e+00> : vector<4x128xf32>
    %57 = tpu.matmul %56, %54, %cst_45 {dimension_numbers = #tpu.dot_dimension_numbers<[1], [0], [0], [1], [0, 0, 1, 1], [], []>} : vector<4x4xf32>, vector<4x128xf32>, vector<4x128xf32> -> vector<4x128xf32>
    %58 = arith.addf %51, %57 : vector<4x128xf32>
    %c1_46 = arith.constant 1 : index
    %c2_47 = arith.constant 2 : index
    %c0_48 = arith.constant 0 : index
    %c0_49 = arith.constant 0 : index
    %59 = vector.load %arg5[%c1_46, %c2_47, %c0_48, %c0_49] : memref<2x5x4x4xf32, #tpu.memory_space<vmem>>, vector<1x1x4x4xf32>
    %60 = vector.shape_cast %59 : vector<1x1x4x4xf32> to vector<4x4xf32>
    %cst_50 = arith.constant dense<0.000000e+00> : vector<4x128xf32>
    %61 = tpu.matmul %60, %43, %cst_50 {dimension_numbers = #tpu.dot_dimension_numbers<[1], [0], [0], [1], [0, 0, 1, 1], [], []>} : vector<4x4xf32>, vector<4x128xf32>, vector<4x128xf32> -> vector<4x128xf32>
    %62 = arith.addf %58, %61 : vector<4x128xf32>
    %63 = vector.extract_strided_slice %43 {offsets = [0, 32], sizes = [4, 96], strides = [1, 1]} : vector<4x128xf32> to vector<4x96xf32>
    %cst_51 = arith.constant 0.000000e+00 : f32
    %64 = vector.broadcast %cst_51 : f32 to vector<4x32xf32>
    %65 = tpu.concatenate %63, %64 in 1 : vector<4x96xf32>, vector<4x32xf32> -> vector<4x128xf32>
    %c1_52 = arith.constant 1 : index
    %c3_53 = arith.constant 3 : index
    %c0_54 = arith.constant 0 : index
    %c0_55 = arith.constant 0 : index
    %66 = vector.load %arg5[%c1_52, %c3_53, %c0_54, %c0_55] : memref<2x5x4x4xf32, #tpu.memory_space<vmem>>, vector<1x1x4x4xf32>
    %67 = vector.shape_cast %66 : vector<1x1x4x4xf32> to vector<4x4xf32>
    %cst_56 = arith.constant dense<0.000000e+00> : vector<4x128xf32>
    %68 = tpu.matmul %67, %65, %cst_56 {dimension_numbers = #tpu.dot_dimension_numbers<[1], [0], [0], [1], [0, 0, 1, 1], [], []>} : vector<4x4xf32>, vector<4x128xf32>, vector<4x128xf32> -> vector<4x128xf32>
    %69 = arith.addf %62, %68 : vector<4x128xf32>
    %70 = vector.extract_strided_slice %43 {offsets = [0, 64], sizes = [4, 64], strides = [1, 1]} : vector<4x128xf32> to vector<4x64xf32>
    %cst_57 = arith.constant 0.000000e+00 : f32
    %71 = vector.broadcast %cst_57 : f32 to vector<4x64xf32>
    %72 = tpu.concatenate %70, %71 in 1 : vector<4x64xf32>, vector<4x64xf32> -> vector<4x128xf32>
    %c1_58 = arith.constant 1 : index
    %c4_59 = arith.constant 4 : index
    %c0_60 = arith.constant 0 : index
    %c0_61 = arith.constant 0 : index
    %73 = vector.load %arg5[%c1_58, %c4_59, %c0_60, %c0_61] : memref<2x5x4x4xf32, #tpu.memory_space<vmem>>, vector<1x1x4x4xf32>
    %74 = vector.shape_cast %73 : vector<1x1x4x4xf32> to vector<4x4xf32>
    %cst_62 = arith.constant dense<0.000000e+00> : vector<4x128xf32>
    %75 = tpu.matmul %74, %72, %cst_62 {dimension_numbers = #tpu.dot_dimension_numbers<[1], [0], [0], [1], [0, 0, 1, 1], [], []>} : vector<4x4xf32>, vector<4x128xf32>, vector<4x128xf32> -> vector<4x128xf32>
    %76 = arith.addf %69, %75 : vector<4x128xf32>
    %77 = vector.extract_strided_slice %8 {offsets = [8, 0], sizes = [4, 128], strides = [1, 1]} : vector<16x128xf32> to vector<4x128xf32>
    %cst_63 = arith.constant 0xFF800000 : f32
    %78 = vector.broadcast %cst_63 : f32 to vector<4x16xf32>
    %79 = vector.extract_strided_slice %77 {offsets = [0, 0], sizes = [4, 112], strides = [1, 1]} : vector<4x128xf32> to vector<4x112xf32>
    %80 = tpu.concatenate %78, %79 in 1 : vector<4x16xf32>, vector<4x112xf32> -> vector<4x128xf32>
    %81 = arith.maximumf %80, %77 : vector<4x128xf32>
    %82 = vector.extract_strided_slice %77 {offsets = [0, 16], sizes = [4, 112], strides = [1, 1]} : vector<4x128xf32> to vector<4x112xf32>
    %cst_64 = arith.constant 0xFF800000 : f32
    %83 = vector.broadcast %cst_64 : f32 to vector<4x16xf32>
    %84 = tpu.concatenate %82, %83 in 1 : vector<4x112xf32>, vector<4x16xf32> -> vector<4x128xf32>
    %85 = arith.maximumf %81, %84 : vector<4x128xf32>
    %86 = vector.extract_strided_slice %6 {offsets = [12, 0], sizes = [4, 128], strides = [1, 1]} : vector<16x128xf32> to vector<4x128xf32>
    %87 = tpu.concatenate %42, %76, %85, %86 in 0 : vector<4x128xf32>, vector<4x128xf32>, vector<4x128xf32>, vector<4x128xf32> -> vector<16x128xf32>
    %c0_65 = arith.constant 0 : index
    %c0_66 = arith.constant 0 : index
    %88 = vector.load %arg6[%c0_65, %c0_66] : memref<16x1xf32, #tpu.memory_space<vmem>>, vector<16x1xf32>
    %89 = vector.broadcast %88 : vector<16x1xf32> to vector<16x128xf32>
    %90 = arith.mulf %87, %89 : vector<16x128xf32>
    %c0_67 = arith.constant 0 : index
    %c0_68 = arith.constant 0 : index
    %91 = vector.load %arg7[%c0_67, %c0_68] : memref<16x1xf32, #tpu.memory_space<vmem>>, vector<16x1xf32>
    %92 = vector.broadcast %91 : vector<16x1xf32> to vector<16x128xf32>
    %93 = arith.addf %90, %92 : vector<16x128xf32>
    %c0_69 = arith.constant 0 : index
    %c0_70 = arith.constant 0 : index
    %c0_71 = arith.constant 0 : index
    %94 = vector.load %arg2[%c0_69, %c0_70, %c0_71] : memref<1x16x128xf32, #tpu.memory_space<vmem>>, vector<1x16x128xf32>
    %95 = vector.shape_cast %94 : vector<1x16x128xf32> to vector<16x128xf32>
    %96 = arith.addf %93, %95 : vector<16x128xf32>
    %cst_72 = arith.constant 0.000000e+00 : f32
    %97 = vector.broadcast %cst_72 : f32 to vector<16x128xf32>
    %98 = arith.maximumf %96, %97 : vector<16x128xf32>
    %c0_73 = arith.constant 0 : index
    %c0_74 = arith.constant 0 : index
    %c0_75 = arith.constant 0 : index
    %99 = vector.load %arg8[%c0_73, %c0_74, %c0_75] : memref<1x16x128xf32, #tpu.memory_space<vmem>>, vector<1x16x128xf32>
    %100 = vector.shape_cast %99 : vector<1x16x128xf32> to vector<16x128xf32>
    %101 = vector.shape_cast %98 : vector<16x128xf32> to vector<1x16x128xf32>
    tpu.vector_store %arg8[%c0_73, %c0_74, %c0_75], %101 {strides = array<i32>} : memref<1x16x128xf32, #tpu.memory_space<vmem>>, vector<1x16x128xf32>,
    return
  }
  func.func @transform_0(%arg0: i32) -> (i32, i32, i32) {
    %c0_i32 = arith.constant 0 : i32
    %c0_i32_0 = arith.constant 0 : i32
    %c0_i32_1 = arith.constant 0 : i32
    return %arg0, %c0_i32, %c0_i32_0 : i32, i32, i32
  }
  func.func @transform_1(%arg0: i32) -> (i32, i32, i32) {
    %c0_i32 = arith.constant 0 : i32
    %c0_i32_0 = arith.constant 0 : i32
    %c0_i32_1 = arith.constant 0 : i32
    return %arg0, %c0_i32, %c0_i32_0 : i32, i32, i32
  }
  func.func @transform_2(%arg0: i32) -> (i32, i32) {
    %c0_i32 = arith.constant 0 : i32
    %c0_i32_0 = arith.constant 0 : i32
    %c0_i32_1 = arith.constant 0 : i32
    return %c0_i32, %c0_i32_0 : i32, i32
  }
  func.func @transform_3(%arg0: i32) -> (i32, i32) {
    %c0_i32 = arith.constant 0 : i32
    %c0_i32_0 = arith.constant 0 : i32
    %c0_i32_1 = arith.constant 0 : i32
    return %c0_i32, %c0_i32_0 : i32, i32
  }
  func.func @transform_4(%arg0: i32) -> (i32, i32, i32, i32) {
    %c0_i32 = arith.constant 0 : i32
    %c0_i32_0 = arith.constant 0 : i32
    %c0_i32_1 = arith.constant 0 : i32
    %c0_i32_2 = arith.constant 0 : i32
    %c0_i32_3 = arith.constant 0 : i32
    return %c0_i32, %c0_i32_0, %c0_i32_1, %c0_i32_2 : i32, i32, i32, i32
  }
  func.func @transform_5(%arg0: i32) -> (i32, i32) {
    %c0_i32 = arith.constant 0 : i32
    %c0_i32_0 = arith.constant 0 : i32
    %c0_i32_1 = arith.constant 0 : i32
    return %c0_i32, %c0_i32_0 : i32, i32
  }
  func.func @transform_6(%arg0: i32) -> (i32, i32) {
    %c0_i32 = arith.constant 0 : i32
    %c0_i32_0 = arith.constant 0 : i32
    %c0_i32_1 = arith.constant 0 : i32
    return %c0_i32, %c0_i32_0 : i32, i32
  }
  func.func @transform_7(%arg0: i32) -> (i32, i32, i32) {
    %c0_i32 = arith.constant 0 : i32
    %c0_i32_0 = arith.constant 0 : i32
    %c0_i32_1 = arith.constant 0 : i32
    return %arg0, %c0_i32, %c0_i32_0 : i32, i32, i32
  }
}

</mosaic_0001>

<bundles_post_ra>
// kernel: ctrgcn_block_pallas.5
= control target key start
LH: loop header
LB: loop body
LE: loop exit
PB: predicated region body
PF: predicated region fallthrough
CT: control target
= control target key end

     0   :  { %s1559_s24 = smov 0   ;;  %s1707_s0 = inlined_call_operand.vmem [shape: f32[2,16,128], index: 0, kind: input, shape index: {}]   ;;  %s1708_s1 = inlined_call_operand.vmem [shape: f32[2,16,128], index: 1, kind: input, shape index: {}]   ;;  %s1709_s2 = inlined_call_operand.vmem [shape: f32[16,16], index: 2, kind: input, shape index: {}]   ;;  %s1710_s3 = inlined_call_operand.vmem [shape: f32[16,1], index: 3, kind: input, shape index: {}]   ;;  %s1711_s4 = inlined_call_operand.vmem [shape: f32[2,5,4,4], index: 4, kind: input, shape index: {}]   ;;  %s1712_s5 = inlined_call_operand.vmem [shape: f32[16,1], index: 5, kind: input, shape index: {}]   ;;  %s1713_s6 = inlined_call_operand.vmem [shape: f32[16,1], index: 6, kind: input, shape index: {}]   ;;  %s1714_s7 = inlined_call_operand.vmem [shape: f32[2,16,128], index: 7, kind: output, shape index: {}]  }
   0x1 LB: > { %s1338_s25 = sadd.s32 4294967295, %s1509_s24   ;;  %p1342_p0 = scmp.ge.s32.totalorder %s1509_s24, 1  ;;  %s1509_s24 = sphi %s1559_s24, %s17_s24  }
   0x2   : > { %p247_p1 = scmp.lt.s32.totalorder %s1509_s24, 3 }
   0x4   : > { %p248_p2 = pnand %p1342_p0, %p247_p1 }
   0x5   : > { %p284_p3 = scmp.lt.s32.totalorder (!%p248_p2), %s1338_s25, 1  ;;  %v301_v0 = vld [vmem:[%s1709_s2] sm:$0xff] (!%p248_p2)  ;;  %vm315_vm0 = vcmask (!%p248_p2), 130048   ;;  %v1511_v2 = vmov (!%p248_p2), 0   ;;  %v302_v6 = vld [vmem:[%s1709_s2 + $0x8] sm:$0xff] (!%p248_p2)  ;;  %v1512_v7 = vmov (!%p248_p2), 0.0  }
   0x6   : > { %251 = sbr.rel (%p248_p2) target bundleno = 619 (0x26b), region = 48  ;;  %v303_v1 = vld [vmem:[%s1710_s3] sm:$0xff] (!%p248_p2)  ;;  %1413 = vmatprep.mubr.msk.f32.mxu0 (!%p248_p2), %vm315_vm0, %v301_v0  ;;  %1501 = vset.pattern.permute.xlu0 (!%p248_p2), %v1511_v2  ;;  %vm1513_vm1 = vmmov (!%p248_p2), 0   ;;  %s1514_s13 = smov (!%p248_p2), 32   ;;  %v304_v14 = vld [vmem:[%s1710_s3 + $0x8] sm:$0xff] (!%p248_p2)  ;;  %vm416_vm2 = vcmask (!%p248_p2), 1043456  }
   0x7   : > { %307 = vperm.xlu0 (!%p248_p2), %1501, %v303_v1   ;;  %1502 = vset.pattern.permute.xlu1 (!%p248_p2), %v1511_v2  ;;  %s1515_s14 = smov (!%p248_p2), 16   ;;  %s1516_s15 = smov (!%p248_p2), 112   ;;  %v1236_v15 = vld [vmem:[%s1712_s5 + $0x8] sm:$0xff] (!%p248_p2)  ;;  %v1235_v16 = vld [vmem:[%s1712_s5] sm:$0xff] (!%p248_p2)  ;;  %vm403_vm3 = vcmask (!%p248_p2), 261120   ;;  %vm412_vm4 = vcmask (!%p248_p2), 31744  }
   0x8   : > { %1416 = vmatprep.subr.mxu1 (!%p248_p2), %v1512_v7  ;;  %1418 = vmatprep.mubr.msk.f32.mxu1 (!%p248_p2), %vm1513_vm1, %v1512_v7  ;;  %s1517_s16 = smov (!%p248_p2), 64   ;;  %s1518_s17 = smov (!%p248_p2), 96   ;;  %v1249_v17 = vld [vmem:[%s1713_s6] sm:$0xff] (!%p248_p2)  ;;  %vm816_vm5 = vcmask (!%p248_p2), 523264   ;;  %v1365_v24 = vld [vmem:[%s1711_s4 + $0x14] sm:$0xf] (!%p248_p2) }
   0x9   : > { %v1351_v20 = vld [vmem:[%s1711_s4 + $0x4] sm:$0xf] (!%p248_p2)  ;;  %vm731_vm6 = vcmask (!%p248_p2), 785408   ;;  %v405_v27 = vld [vmem:[%s1711_s4] sm:$0xf] (!%p248_p2)  ;;  %vm647_vm7 = vcmask (!%p248_p2), 916480  }
   0xa   : > { %v1371_v30 = vld [vmem:[%s1711_s4 + $0x1c] sm:$0xf] (!%p248_p2)  ;;  %v1356_v33 = vld [vmem:[%s1711_s4 + $0x8] sm:$0xf] (!%p248_p2)  ;;  %v1374_v36 = vld [vmem:[%s1711_s4 + $0x20] sm:$0xf] (!%p248_p2) }
   0xb   : > { %v1359_v38 = vld [vmem:[%s1711_s4 + $0xc] sm:$0xf] (!%p248_p2)  ;;  %v1377_v42 = vld [vmem:[%s1711_s4 + $0x24] sm:$0xf] (!%p248_p2)  ;;  %v1362_v45 = vld [vmem:[%s1711_s4 + $0x10] sm:$0xf] (!%p248_p2) }
   0xc   : > { %v1250_v43 = vld [vmem:[%s1713_s6 + $0x8] sm:$0xff] (!%p248_p2)  ;;  %v1366_v47 = vld [vmem:[%s1711_s4 + $0x18] sm:$0xf] (!%p248_p2) }
   0xd   : > { %s1716_s25 = smov (!%p284_p3, %s1338_s25), 1 }
   0xe   : > { %s1574_s30 = sshll.u32 %s1716_s25, 4 }
   0xf   : > { %s288_s10 = scalar_lea.vmem %s1707_s0, %s1574_s30  ;;  %s293_s8 = scalar_lea.vmem %s1708_s1, %s1574_s30 }
  0x10   : > { %v299_v3 = vld [vmem:[%s288_s10] sm:$0xff]  ;;  %v300_v4 = vld [vmem:[%s288_s10 + $0x8] sm:$0xff]  ;;  %s298_s11 = scalar_lea.vmem %s1714_s7, %s1574_s30 }
  0x11   : > { %v1466_v5 = vpack.c.bf16 %v300_v4, %v299_v3  ;;  %v1264_v59 = vld [vmem:[%s293_s8 + $0x8] sm:$0xff] }
  0x13   : > { %1467 = vmatprep.subr.bf16.mxu0 %v1466_v5 }
  0x14   : > { %1469 = vmatpush3.bf16.msra.mxu0 %v1466_v5 }
  0x15   : > { %1446 = vmatprep.subr.mxu0 %v1512_v7 }
  0x17   : > { %1414 = vmatmul.mubr.msk.f32.vlgmr.msra.gmra.mrb[0].mxu0 %vm315_vm0, %v302_v6 }
  0x18   : > { %1448 = vmatprep.mubr.msk.f32.mxu0 %vm1513_vm1, %v1512_v7 }
  0x86   : > { %v308_v8 = vpop.permute.xlu0 %307 }
  0xea   : > { %v1590_v9 = vpop.f32.mrb[0].mxu0 }
  0xeb   : > { %v388_v10 = vpop.f32.mrb[1].mxu0 }
  0xec   : > { %v389_v11 = vadd.f32 %v388_v10, %v308_v8  ;;  %v1263_v10 = vld [vmem:[%s293_s8] sm:$0xff] }
  0xee   : > { %v397_v12 = vmax.f32 %v389_v11, 0.0 }
  0xf0   : > { %400 = vrot.lane.b32.xlu1 %v397_v12, %s1514_s13  ;;  %406 = vrot.lane.b32.xlu0 %v397_v12, %s1515_s14  ;;  %v812_v13 = vrot.slane %v397_v12, 4 }
  0xf4   : > { %644 = vrot.lane.b32.xlu0 %v397_v12, %s1516_s15  ;;  %813 = vrot.lane.b32.xlu1 %v812_v13, %s1517_s16 }
  0xf8   : > { %1135 = vrot.lane.b32.xlu0 %v397_v12, %s1517_s16  ;;  %728 = vrot.lane.b32.xlu1 %v397_v12, %s1518_s17 }
  0xfc   : > { %312 = vperm.xlu0 %1501, %v304_v14   ;;  %820 = vrot.lane.b32.xlu1 %v812_v13, %s1514_s13 }
 0x100   : > { %1244 = vperm.xlu0 %1501, %v1236_v15   ;;  %1239 = vperm.xlu1 %1502, %v1235_v16  }
 0x104   : > { %1253 = vperm.xlu0 %1501, %v1249_v17  }
 0x162   : > { %v401_v18 = vpop.permute.xlu1 %400  ;;  %v407_v19 = vpop.permute.xlu0 %406 }
 0x163   : > { %v409_v21 = vsel %vm315_vm0, 0.0, %v407_v19  ;;  %v404_v22 = vsel %vm403_vm3, 0.0, %v401_v18 }
 0x164   : > { %1417 = vmatpush3.msk.msra.mxu1 %vm416_vm2, %v409_v21 }
 0x165   : > { %1419 = vmatmul.mubr.msk.f32.vlgmr.msra.gmra.mrb[0].mxu1 %vm412_vm4, %v1351_v20  ;;  %1421 = vmatprep.subr.mxu1 %v1512_v7 }
 0x166   : > { %1422 = vmatpush3.msk.msra.mxu1 %vm416_vm2, %v404_v22  ;;  %v814_v23 = vpop.permute.xlu1 %813  ;;  %1423 = vmatprep.mubr.msk.f32.mxu1 %vm1513_vm1, %v1512_v7  ;;  %v645_v28 = vpop.permute.xlu0 %644 }
 0x167   : > { %v817_v25 = vsel %vm816_vm5, 0.0, %v814_v23  ;;  %1426 = vmatprep.subr.mxu1 %v1512_v7  ;;  %v648_v34 = vsel %vm647_vm7, %v645_v28, 0.0 }
 0x168   : > { %1447 = vmatpush3.msk.msra.mxu0 %vm416_vm2, %v817_v25 }
 0x169   : > { %1449 = vmatmul.mubr.msk.f32.vlgmr.msra.gmra.mrb[2].mxu0 %vm412_vm4, %v1365_v24  ;;  %1451 = vmatprep.subr.mxu0 %v1512_v7 }
 0x16a   : > { %1452 = vmatpush3.msk.msra.mxu0 %vm416_vm2, %v812_v13  ;;  %v729_v26 = vpop.permute.xlu1 %728  ;;  %1453 = vmatprep.mubr.msk.f32.mxu0 %vm1513_vm1, %v1512_v7  ;;  %v1136_v32 = vpop.permute.xlu0 %1135 }
 0x16b   : > { %1456 = vmatprep.subr.mxu0 %v1512_v7  ;;  %v732_v29 = vsel %vm731_vm6, %v729_v26, 0.0  ;;  %v1138_v35 = vsel %vm816_vm5, %v1136_v32, 0.0 }
 0x16c   : > { %v1058_v31 = vrot.slane %v732_v29, 4  ;;  %v1142_v37 = vrot.slane %v1138_v35, 4 }
 0x16d   : > { %1424 = vmatmul.mubr.msk.f32.vlgmr.msra.gmra.mrb[0].mxu1 %vm412_vm4, %v405_v27 }
 0x16e   : > { %1427 = vmatpush3.msk.msra.mxu1 %vm416_vm2, %v397_v12  ;;  %1428 = vmatprep.mubr.msk.f32.mxu1 %vm1513_vm1, %v1512_v7  ;;  %v821_v44 = vpop.permute.xlu1 %820 }
 0x16f   : > { %1431 = vmatprep.subr.mxu1 %v1512_v7  ;;  %v823_v46 = vsel %vm403_vm3, 0.0, %v821_v44 }
 0x171   : > { %1454 = vmatmul.mubr.msk.f32.vlgmr.msra.gmra.mrb[2].mxu0 %vm412_vm4, %v1371_v30 }
 0x172   : > { %1457 = vmatpush3.msk.msra.mxu0 %vm416_vm2, %v1058_v31  ;;  %1458 = vmatprep.mubr.msk.f32.mxu0 %vm1513_vm1, %v1512_v7 }
 0x173   : > { %1461 = vmatprep.subr.mxu0 %v1512_v7 }
 0x175   : > { %1429 = vmatmul.mubr.msk.f32.vlgmr.msra.gmra.mrb[0].mxu1 %vm412_vm4, %v1356_v33 }
 0x176   : > { %1432 = vmatpush3.msk.msra.mxu1 %vm416_vm2, %v648_v34  ;;  %1433 = vmatprep.mubr.msk.f32.mxu1 %vm1513_vm1, %v1512_v7 }
 0x177   : > { %1436 = vmatprep.subr.mxu1 %v1512_v7 }
 0x179   : > { %1459 = vmatmul.mubr.msk.f32.vlgmr.msra.gmra.mrb[2].mxu0 %vm412_vm4, %v1374_v36 }
 0x17a   : > { %1462 = vmatpush3.msk.msra.mxu0 %vm416_vm2, %v1142_v37  ;;  %1463 = vmatprep.mubr.msk.f32.mxu0 %vm1513_vm1, %v1512_v7 }
 0x17b   : > { %v313_v39 = vpop.permute.xlu0 %312 }
 0x17c   : > { %v394_v40 = vadd.f32 %v1590_v9, %v313_v39 }
 0x17d   : > { %1434 = vmatmul.mubr.msk.f32.vlgmr.msra.gmra.mrb[0].mxu1 %vm412_vm4, %v1359_v38 }
 0x17e   : > { %v398_v41 = vmax.f32 %v394_v40, 0.0  ;;  %1437 = vmatpush3.msk.msra.mxu1 %vm416_vm2, %v732_v29  ;;  %1438 = vmatprep.mubr.msk.f32.mxu1 %vm1513_vm1, %v1512_v7 }
 0x17f   : > { %1441 = vmatprep.subr.mxu1 %v1512_v7  ;;  %v1240_v48 = vpop.permute.xlu1 %1239  ;;  %v1245_v49 = vpop.permute.xlu0 %1244 }
 0x180   : > { %1225 = vrot.lane.b32.xlu0 %v398_v41, %s1516_s15  ;;  %1220 = vrot.lane.b32.xlu1 %v398_v41, %s1515_s14 }
 0x181   : > { %1464 = vmatmul.mubr.msk.f32.vlgmr.msra.gmra.mrb[2].mxu0 %vm412_vm4, %v1377_v42 }
 0x183   : > { %v1254_v51 = vpop.permute.xlu0 %1253 }
 0x184   : > { %1258 = vperm.xlu1 %1502, %v1250_v43  }
 0x185   : > { %1439 = vmatmul.mubr.msk.f32.vlgmr.msra.gmra.mrb[0].mxu1 %vm412_vm4, %v1362_v45 }
 0x186   : > { %1442 = vmatpush3.msk.msra.mxu1 %vm416_vm2, %v823_v46  ;;  %1443 = vmatprep.mubr.msk.f32.mxu1 %vm1513_vm1, %v1512_v7 }
 0x189   : > { %1444 = vmatmul.mubr.msk.f32.vlgmr.msra.gmra.mrb[2].mxu1 %vm412_vm4, %v1366_v47 }
 0x1f2   : > { %v1221_v50 = vpop.permute.xlu1 %1220  ;;  %v1226_v53 = vpop.permute.xlu0 %1225 }
 0x1f3   : > { %v1223_v52 = vsel %vm315_vm0, -inf, %v1221_v50  ;;  %v1228_v55 = vsel %vm647_vm7, %v1226_v53, -inf }
 0x1f4   : > { %v1224_v54 = vmax.f32 %v1223_v52, %v398_v41 }
 0x1f6   : > { %v1229_v56 = vmax.f32 %v1224_v54, %v1228_v55 }
 0x1f8   : > { %v1234_v57 = vsel %vm416_vm2, %v1229_v56, %v394_v40 }
 0x1f9   : > { %v1248_v58 = vmul.f32 %v1245_v49, %v1234_v57 }
 0x203   : > { %v1259_v60 = vpop.permute.xlu1 %1258 }
 0x204   : > { %v1262_v61 = vadd.f32 %v1259_v60, %v1248_v58 }
 0x206   : > { %v1266_v62 = vadd.f32 %v1264_v59, %v1262_v61 }
 0x208   : > { %v1268_v63 = vmax.f32 %v1266_v62, 0.0 }
 0x20a   : > { %1270 = vst [vmem:[%s298_s11 + $0x8] sm:$0xff] %v1268_v63 }
 0x254   : > { %v1214_v0 = vpop.f32.mrb[2].mxu0 }
 0x255   : > { %v1465_v1 = vpop.f32.mrb[3].mxu0 }
 0x258   : > { %v807_v2 = vpop.f32.mrb[0].mxu1 }
 0x259   : > { %v1440_v3 = vpop.f32.mrb[1].mxu1 }
 0x25c   : > { %v898_v4 = vpop.f32.mrb[2].mxu1 }
 0x25d   : > { %v1470_v5 = vadd.f32 %v1214_v0, %v898_v4  ;;  %v1445_v6 = vpop.f32.mrb[3].mxu1 }
 0x25f   : > { %v1231_v7 = vrot.slane %v1470_v5, 4 }
 0x261   : > { %v1233_v8 = vsel %vm416_vm2, %v807_v2, %v1231_v7 }
 0x262   : > { %v1247_v9 = vmul.f32 %v1240_v48, %v1233_v8 }
 0x264   : > { %v1261_v11 = vadd.f32 %v1254_v51, %v1247_v9 }
 0x266   : > { %v1265_v12 = vadd.f32 %v1263_v10, %v1261_v11 }
 0x268   : > { %v1267_v13 = vmax.f32 %v1265_v12, 0.0 }
 0x26a   : > { %1269 = vst [vmem:[%s298_s11] sm:$0xff] %v1267_v13 }
 0x26b PF: > { %s17_s24 = sadd.s32 1, %s1509_s24  }
 0x26c   : > { %p14_p4 = scmp.ge.s32.totalorder %s17_s24, 4  }
 0x26e   :  { %16 = sbr.rel (!%p14_p4) target bundleno = 1 (0x1), region = 90 }

// kernel: ctrgcn_block_pallas.3
= control target key start
LH: loop header
LB: loop body
LE: loop exit
PB: predicated region body
PF: predicated region fallthrough
CT: control target
= control target key end

     0   :  { %s2701_s29 = smov 0   ;;  %s3177_s0 = inlined_call_operand.vmem [shape: f32[2,16,128], index: 0, kind: input, shape index: {}]   ;;  %s3178_s1 = inlined_call_operand.vmem [shape: f32[128,16], index: 1, kind: input, shape index: {}]   ;;  %s3179_s2 = inlined_call_operand.vmem [shape: f32[48,16], index: 2, kind: input, shape index: {}]   ;;  %s3180_s3 = inlined_call_operand.vmem [shape: f32[48,1], index: 3, kind: input, shape index: {}]   ;;  %s3181_s4 = inlined_call_operand.vmem [shape: f32[16,256], index: 4, kind: input, shape index: {}]   ;;  %s3182_s5 = inlined_call_operand.vmem [shape: f32[16,256], index: 5, kind: input, shape index: {}]   ;;  %s3183_s6 = inlined_call_operand.vmem [shape: f32[48,8], index: 6, kind: input, shape index: {}]   ;;  %s3184_s7 = inlined_call_operand.vmem [shape: f32[48,1], index: 7, kind: input, shape index: {}]   ;;  %s3185_s8 = inlined_call_operand.vmem [shape: f32[48,16], index: 8, kind: input, shape index: {}]   ;;  %s3186_s9 = inlined_call_operand.vmem [shape: f32[48,1], index: 9, kind: input, shape index: {}]   ;;  %s3187_s10 = inlined_call_operand.vmem [shape: f32[3,128,128], index: 10, kind: input, shape index: {}]   ;;  %s3188_s11 = inlined_call_operand.vmem [shape: f32[16,1], index: 11, kind: input, shape index: {}]   ;;  %s3189_s12 = inlined_call_operand.vmem [shape: f32[2,48,128], index: 12, kind: output, shape index: {0}]   ;;  %s3190_s13 = inlined_call_operand.vmem [shape: f32[2,48,256], index: 13, kind: output, shape index: {1}]   ;;  %s3191_s14 = inlined_call_operand.vmem [shape: f32[2,16,128], index: 14, kind: output, shape index: {2}]  }
   0x1 LB: > { %s2101_s30 = sadd.s32 4294967295, %s2622_s29   ;;  %p2105_p0 = scmp.ge.s32.totalorder %s2622_s29, 1  ;;  %s2622_s29 = sphi %s2701_s29, %s25_s29  }
   0x2   : > { %p417_p1 = scmp.lt.s32.totalorder %s2622_s29, 3 }
   0x4   : > { %p418_p2 = pnand %p2105_p0, %p417_p1 }
   0x5   : > { %p473_p3 = scmp.lt.s32.totalorder (!%p418_p2), %s2101_s30, 1  ;;  %v495_v0 = vld [vmem:[%s3185_s8] sm:$0xff] (!%p418_p2)  ;;  %vm537_vm0 = vcmask (!%p418_p2), 130048   ;;  %v2624_v1 = vmov (!%p418_p2), 0   ;;  %v951_v3 = vld [vmem:[%s3178_s1 + $0x8] sm:$0xff] (!%p418_p2)  ;;  %v952_v8 = vld [vmem:[%s3178_s1 + $0x10] sm:$0xff] (!%p418_p2) }
   0x6   : > { %421 = sbr.rel (%p418_p2) target bundleno = 1421 (0x58d), region = 68  ;;  %2264 = vmatprep.mubr.msk.f32.mxu0 (!%p418_p2), %vm537_vm0, %v495_v0  ;;  %2603 = vset.pattern.permute.xlu1 (!%p418_p2), %v2624_v1  ;;  %v950_v2 = vld [vmem:[%s3178_s1] sm:$0xff] (!%p418_p2)  ;;  %v953_v9 = vld [vmem:[%s3178_s1 + $0x18] sm:$0xff] (!%p418_p2)  ;;  %v1048_v10 = vld [vmem:[%s3180_s3 + $0x8] sm:$0xff] (!%p418_p2)  ;;  %vm1370_vm1 = vcmask (!%p418_p2), 64512  }
   0x7   : > { %2602 = vset.pattern.permute.xlu0 (!%p418_p2), %v2624_v1  ;;  %v2526_v7 = vpack.c.bf16 (!%p418_p2), %v951_v3, %v950_v2  ;;  %v1047_v11 = vld [vmem:[%s3180_s3] sm:$0xff] (!%p418_p2)  ;;  %1060 = vperm.xlu1 (!%p418_p2), %2603, %v1048_v10   ;;  %v496_v12 = vld [vmem:[%s3185_s8 + $0x8] sm:$0xff] (!%p418_p2)  ;;  %v497_v14 = vld [vmem:[%s3185_s8 + $0x10] sm:$0xff] (!%p418_p2)  ;;  %v2530_v15 = vpack.c.bf16 (!%p418_p2), %v953_v9, %v952_v8 }
   0x8   : > { %1055 = vperm.xlu0 (!%p418_p2), %2602, %v1047_v11   ;;  %v1051_v13 = vld [vmem:[%s3180_s3 + $0x20] sm:$0xff] (!%p418_p2)  ;;  %v955_v17 = vld [vmem:[%s3178_s1 + $0x28] sm:$0xff] (!%p418_p2)  ;;  %v1050_v18 = vld [vmem:[%s3180_s3 + $0x18] sm:$0xff] (!%p418_p2) }
   0x9   : > { %v954_v16 = vld [vmem:[%s3178_s1 + $0x20] sm:$0xff] (!%p418_p2)  ;;  %v2119_v20 = vld [vmem:[%s3187_s10 + $0x88] sm:$0xff] (!%p418_p2)  ;;  %v498_v22 = vld [vmem:[%s3185_s8 + $0x18] sm:$0xff] (!%p418_p2) }
   0xa   : > { %v2118_v19 = vld [vmem:[%s3187_s10 + $0x80] sm:$0xff] (!%p418_p2)  ;;  %v1052_v23 = vld [vmem:[%s3180_s3 + $0x28] sm:$0xff] (!%p418_p2)  ;;  %v2534_v24 = vpack.c.bf16 (!%p418_p2), %v955_v17, %v954_v16  ;;  %v956_v26 = vld [vmem:[%s3178_s1 + $0x30] sm:$0xff] (!%p418_p2) }
   0xb   : > { %1075 = vperm.xlu1 (!%p418_p2), %2603, %v1051_v13   ;;  %v2430_v21 = vpack.c.bf16 (!%p418_p2), %v2119_v20, %v2118_v19  ;;  %v499_v25 = vld [vmem:[%s3185_s8 + $0x20] sm:$0xff] (!%p418_p2)  ;;  %v957_v27 = vld [vmem:[%s3178_s1 + $0x38] sm:$0xff] (!%p418_p2)  ;;  %v1049_v28 = vld [vmem:[%s3180_s3 + $0x10] sm:$0xff] (!%p418_p2) }
   0xc   : > { %1070 = vperm.xlu0 (!%p418_p2), %2602, %v1050_v18   ;;  %v2120_v29 = vld [vmem:[%s3187_s10 + $0x90] sm:$0xff] (!%p418_p2)  ;;  %v2121_v30 = vld [vmem:[%s3187_s10 + $0x98] sm:$0xff] (!%p418_p2)  ;;  %v500_v31 = vld [vmem:[%s3185_s8 + $0x28] sm:$0xff] (!%p418_p2)  ;;  %v2538_v33 = vpack.c.bf16 (!%p418_p2), %v957_v27, %v956_v26 }
   0xd   : > { %s3193_s30 = smov (!%p473_p3, %s2101_s30), 1  ;;  %2431 = vmatprep.subr.bf16.mxu1 %v2430_v21  ;;  %v504_v32 = vld [vmem:[%s3186_s9 + $0x18] sm:$0xff]  ;;  %v2122_v34 = vld [vmem:[%s3187_s10 + $0xa0] sm:$0xff]  ;;  %v2123_v35 = vld [vmem:[%s3187_s10 + $0xa8] sm:$0xff]  ;;  %v2434_v39 = vpack.c.bf16 %v2121_v30, %v2120_v29 }
   0xe   : > { %s2170_s17 = sshll.u32 %s3193_s30, 4  ;;  %v958_v36 = vld [vmem:[%s3178_s1 + $0x40] sm:$0xff]  ;;  %v959_v37 = vld [vmem:[%s3178_s1 + $0x48] sm:$0xff]  ;;  %v503_v38 = vld [vmem:[%s3186_s9 + $0x10] sm:$0xff]  ;;  %2433 = vmatpush3.bf16.msra.mxu1 %v2430_v21  ;;  %v2438_v41 = vpack.c.bf16 %v2123_v35, %v2122_v34  ;;  %s2590_s18 = smul.u32 48, %s3193_s30 }
   0xf   : > { %s477_s24 = scalar_lea.vmem %s3177_s0, %s2170_s17  ;;  %1080 = vperm.xlu1 %2603, %v1052_v23   ;;  %v502_v40 = vld [vmem:[%s3186_s9 + $0x8] sm:$0xff]  ;;  %v2542_v42 = vpack.c.bf16 %v959_v37, %v958_v36  ;;  %v2124_v43 = vld [vmem:[%s3187_s10 + $0xb0] sm:$0xff]  ;;  %v2125_v44 = vld [vmem:[%s3187_s10 + $0xb8] sm:$0xff]  ;;  %2435 = vmatprep.subr.bf16.mxu1 %v2434_v39  ;;  %s492_s26 = scalar_lea.vmem %s3191_s14, %s2170_s17 }
  0x10   : > { %v493_v4 = vld [vmem:[%s477_s24] sm:$0xff]  ;;  %v2727_v5 = vld [vmem:[%s477_s24 + $0x8] sm:$0xff]  ;;  %1065 = vperm.xlu0 %2602, %v1049_v28   ;;  %v960_v45 = vld [vmem:[%s3178_s1 + $0x50] sm:$0xff]  ;;  %v2442_v49 = vpack.c.bf16 %v2125_v44, %v2124_v43  ;;  %s2918_s21 = scalar_lea.vmem %s3189_s12, %s2590_s18  ;;  %s2591_s15 = smul.u32 96, %s3193_s30 }
  0x11   : > { %v2426_v6 = vpack.c.bf16 %v2727_v5, %v493_v4  ;;  %v961_v46 = vld [vmem:[%s3178_s1 + $0x58] sm:$0xff]  ;;  %v501_v47 = vld [vmem:[%s3186_s9] sm:$0xff]  ;;  %v506_v48 = vld [vmem:[%s3186_s9 + $0x28] sm:$0xff] }
  0x12   : > { %2437 = vmatpush3.bf16.msra.mxu1 %v2434_v39  ;;  %v2546_v50 = vpack.c.bf16 %v961_v46, %v960_v45  ;;  %v2126_v51 = vld [vmem:[%s3187_s10 + $0xc0] sm:$0xff]  ;;  %v2127_v52 = vld [vmem:[%s3187_s10 + $0xc8] sm:$0xff]  ;;  %v2128_v58 = vld [vmem:[%s3187_s10 + $0xd0] sm:$0xff]  ;;  %s3129_s19 = scalar_lea.vmem %s3190_s13, %s2591_s15 }
  0x13   : > { %2427 = vmatprep.subr.bf16.mxu0 %v2426_v6  ;;  %524 = vperm.xlu1 %2603, %v504_v32   ;;  %v962_v53 = vld [vmem:[%s3178_s1 + $0x60] sm:$0xff]  ;;  %v963_v54 = vld [vmem:[%s3178_s1 + $0x68] sm:$0xff]  ;;  %v2446_v56 = vpack.c.bf16 %v2127_v52, %v2126_v51  ;;  %v2129_v59 = vld [vmem:[%s3187_s10 + $0xd8] sm:$0xff] }
  0x14   : > { %2429 = vmatpush3.bf16.msra.mxu0 %v2426_v6  ;;  %519 = vperm.xlu0 %2602, %v503_v38   ;;  %v505_v55 = vld [vmem:[%s3186_s9 + $0x20] sm:$0xff]  ;;  %v2550_v57 = vpack.c.bf16 %v963_v54, %v962_v53  ;;  %v964_v60 = vld [vmem:[%s3178_s1 + $0x70] sm:$0xff]  ;;  %v965_v61 = vld [vmem:[%s3178_s1 + $0x78] sm:$0xff]  ;;  %v2450_v62 = vpack.c.bf16 %v2129_v59, %v2128_v58 }
  0x15   : > { %2527 = vmatprep.subr.bf16.mxu0 %v2526_v7  ;;  %2439 = vmatprep.subr.bf16.mxu1 %v2438_v41  ;;  %v2554_v63 = vpack.c.bf16 %v965_v61, %v964_v60  ;;  %v2130_v0 = vld [vmem:[%s3187_s10 + $0xe0] sm:$0xff]  ;;  %v2131_v1 = vld [vmem:[%s3187_s10 + $0xe8] sm:$0xff]  ;;  %v2132_v3 = vld [vmem:[%s3187_s10 + $0xf0] sm:$0xff] }
  0x16   : > { %2441 = vmatpush3.bf16.msra.mxu1 %v2438_v41  ;;  %v2454_v2 = vpack.c.bf16 %v2131_v1, %v2130_v0  ;;  %v657_v6 = vld [vmem:[%s3187_s10] sm:$0xff]  ;;  %v935_v11 = vld [vmem:[%s3188_s11 + $0x8] sm:$0xff]  ;;  %v1620_v13 = vld [vmem:[%s3184_s7 + $0x10] sm:$0xff] }
  0x17   : > { %2265 = vmatmul.mubr.msk.f32.vlgmr.msra.gmra.mrb[0].mxu0 %vm537_vm0, %v496_v12  ;;  %514 = vperm.xlu1 %2603, %v502_v40   ;;  %v1041_v9 = vld [vmem:[%s3179_s2] sm:$0xff]  ;;  %v659_v30 = vld [vmem:[%s3187_s10 + $0x10] sm:$0xff]  ;;  %v662_v39 = vld [vmem:[%s3187_s10 + $0x28] sm:$0xff] }
  0x18   : > { %2529 = vmatpush3.bf16.msra.mxu0 %v2526_v7  ;;  %2267 = vmatprep.mubr.msk.f32.mxu0 %vm537_vm0, %v497_v14  ;;  %v658_v7 = vld [vmem:[%s3187_s10 + $0x8] sm:$0xff]  ;;  %v934_v10 = vld [vmem:[%s3188_s11] sm:$0xff]  ;;  %v663_v45 = vld [vmem:[%s3187_s10 + $0x30] sm:$0xff] }
  0x19   : > { %2531 = vmatprep.subr.bf16.mxu0 %v2530_v15  ;;  %509 = vperm.xlu0 %2602, %v501_v47   ;;  %v2462_v8 = vpack.c.bf16 %v658_v7, %v657_v6  ;;  %v1358_v12 = vld [vmem:[%s3184_s7] sm:$0xff]  ;;  %v664_v46 = vld [vmem:[%s3187_s10 + $0x38] sm:$0xff]  ;;  %v667_v51 = vld [vmem:[%s3187_s10 + $0x50] sm:$0xff] }
  0x1a   : > { %2443 = vmatprep.subr.bf16.mxu1 %v2442_v49  ;;  %v1881_v14 = vld [vmem:[%s3184_s7 + $0x20] sm:$0xff]  ;;  %v2474_v47 = vpack.c.bf16 %v664_v46, %v663_v45  ;;  %v668_v52 = vld [vmem:[%s3187_s10 + $0x58] sm:$0xff]  ;;  %v1197_v60 = vld [vmem:[%s3181_s4 + $0x8] sm:$0xff] }
  0x1b   : > { %2268 = vmatmul.mubr.msk.f32.gmra.mrb[2].mxu0 %vm537_vm0, %v498_v22  ;;  %534 = vperm.xlu1 %2603, %v506_v48   ;;  %v661_v38 = vld [vmem:[%s3187_s10 + $0x20] sm:$0xff]  ;;  %v2482_v53 = vpack.c.bf16 %v668_v52, %v667_v51  ;;  %v672_v58 = vld [vmem:[%s3187_s10 + $0x78] sm:$0xff]  ;;  %v2135_v0 = vld [vmem:[%s3187_s10 + $0x108] sm:$0xff] }
  0x1c   : > { %2533 = vmatpush3.bf16.msra.mxu0 %v2530_v15  ;;  %2270 = vmatprep.mubr.msk.f32.mxu0 %vm537_vm0, %v499_v25  ;;  %v2470_v44 = vpack.c.bf16 %v662_v39, %v661_v38  ;;  %v665_v48 = vld [vmem:[%s3187_s10 + $0x40] sm:$0xff]  ;;  %v1199_v61 = vld [vmem:[%s3181_s4 + $0x18] sm:$0xff]  ;;  %v1359_v45 = vld [vmem:[%s3184_s7 + $0x8] sm:$0xff] }
  0x1d   : > { %2535 = vmatprep.subr.bf16.mxu0 %v2534_v24  ;;  %529 = vperm.xlu0 %2602, %v505_v55   ;;  %v669_v54 = vld [vmem:[%s3187_s10 + $0x60] sm:$0xff]  ;;  %v670_v55 = vld [vmem:[%s3187_s10 + $0x68] sm:$0xff]  ;;  %v2137_v6 = vld [vmem:[%s3187_s10 + $0x118] sm:$0xff] }
  0x1e   : > { %2445 = vmatpush3.bf16.msra.mxu1 %v2442_v49  ;;  %v666_v49 = vld [vmem:[%s3187_s10 + $0x48] sm:$0xff]  ;;  %v1196_v7 = vld [vmem:[%s3181_s4] sm:$0xff]  ;;  %v2149_v38 = vld [vmem:[%s3187_s10 + $0x178] sm:$0xff] }
  0x1f   : > { %2271 = vmatmul.mubr.msk.f32.gmra.mrb[4].mxu0 %vm537_vm0, %v500_v31  ;;  %2447 = vmatprep.subr.bf16.mxu1 %v2446_v56  ;;  %v660_v31 = vld [vmem:[%s3187_s10 + $0x18] sm:$0xff]  ;;  %v1882_v46 = vld [vmem:[%s3184_s7 + $0x28] sm:$0xff] }
  0x20   : > { %2537 = vmatpush3.bf16.msra.mxu0 %v2534_v24  ;;  %2410 = vmatprep.mubr.f32.mxu0 %v493_v4  ;;  %v2133_v4 = vld [vmem:[%s3187_s10 + $0xf8] sm:$0xff]  ;;  %v2466_v36 = vpack.c.bf16 %v660_v31, %v659_v30  ;;  %v2144_v31 = vld [vmem:[%s3187_s10 + $0x150] sm:$0xff] }
  0x21   : > { %2539 = vmatprep.subr.bf16.mxu0 %v2538_v33  ;;  %938 = vperm.xlu0 %2602, %v934_v10   ;;  %v1043_v10 = vld [vmem:[%s3179_s2 + $0x10] sm:$0xff] }
  0x22   : > { %2449 = vmatpush3.bf16.msra.mxu1 %v2446_v56  ;;  %943 = vperm.xlu1 %2603, %v935_v11   ;;  %v2486_v56 = vpack.c.bf16 %v670_v55, %v669_v54 }
  0x23   : > { %2451 = vmatprep.subr.bf16.mxu1 %v2450_v62 }
  0x24   : > { %2541 = vmatpush3.bf16.msra.mxu0 %v2538_v33 }
  0x25   : > { %2543 = vmatprep.subr.bf16.mxu0 %v2542_v42  ;;  %1362 = vperm.xlu0 %2602, %v1358_v12  }
  0x26   : > { %2453 = vmatpush3.bf16.msra.mxu1 %v2450_v62  ;;  %1367 = vperm.xlu1 %2603, %v1359_v45  }
  0x27   : > { %2455 = vmatprep.subr.bf16.mxu1 %v2454_v2 }
  0x28   : > { %2545 = vmatpush3.bf16.msra.mxu0 %v2542_v42 }
  0x29   : > { %2547 = vmatprep.subr.bf16.mxu0 %v2546_v50  ;;  %1624 = vperm.xlu0 %2602, %v1620_v13   ;;  %v2138_v13 = vld [vmem:[%s3187_s10 + $0x120] sm:$0xff] }
  0x2a   : > { %2457 = vmatpush3.bf16.msra.mxu1 %v2454_v2 }
  0x2c   : > { %2549 = vmatpush3.bf16.msra.mxu0 %v2546_v50  ;;  %v2478_v50 = vpack.c.bf16 %v666_v49, %v665_v48  ;;  %v1276_v48 = vld [vmem:[%s3182_s5 + $0x10] sm:$0xff] }
  0x2d   : > { %2551 = vmatprep.subr.bf16.mxu0 %v2550_v57  ;;  %1885 = vperm.xlu0 %2602, %v1881_v14   ;;  %v2139_v14 = vld [vmem:[%s3187_s10 + $0x128] sm:$0xff] }
  0x30   : > { %2553 = vmatpush3.bf16.msra.mxu0 %v2550_v57  ;;  %v671_v57 = vld [vmem:[%s3187_s10 + $0x70] sm:$0xff] }
  0x31   : > { %2555 = vmatprep.subr.bf16.mxu0 %v2554_v63  ;;  %v2490_v59 = vpack.c.bf16 %v672_v58, %v671_v57 }
  0x34   : > { %2557 = vmatpush3.bf16.msra.mxu0 %v2554_v63  ;;  %v2134_v63 = vld [vmem:[%s3187_s10 + $0x100] sm:$0xff] }
  0x37   : > { %2411 = vmatmul.mubr.f32.vlgmr.msra.gmra.mrb[6].mxu0 %v2727_v5  ;;  %v2458_v5 = vpack.c.bf16 %v2133_v4, %v2132_v3  ;;  %v2986_v3 = vpack.c.bf16 %v1199_v61, %v1197_v60  ;;  %v2494_v4 = vpack.c.bf16 %v2135_v0, %v2134_v63 }
  0x38   : > { %2417 = vmatprep.mubr.msk.f32.mxu0 %vm537_vm0, %v1041_v9  ;;  %v1042_v9 = vld [vmem:[%s3179_s2 + $0x8] sm:$0xff] }
  0x39   : > { %2459 = vmatprep.subr.bf16.mxu1 %v2458_v5 }
  0x3a   : > { %2461 = vmatpush3.bf16.msra.mxu1 %v2458_v5  ;;  %v2136_v5 = vld [vmem:[%s3187_s10 + $0x110] sm:$0xff] }
  0x3b   : > { %2463 = vmatprep.subr.bf16.mxu1 %v2462_v8  ;;  %v2498_v11 = vpack.c.bf16 %v2137_v6, %v2136_v5  ;;  %v1356_v6 = vld [vmem:[%s3183_s6] sm:$0xff] }
  0x86   : > { %v2902_v15 = vpop.permute.xlu1 %1060 }
  0x87   : > { %v2904_v16 = vpop.permute.xlu0 %1055 }
  0x8a   : > { %v2906_v17 = vpop.permute.xlu1 %1075 }
  0x8b   : > { %v2908_v18 = vpop.permute.xlu0 %1070 }
  0x8e   : > { %v2910_v19 = vpop.permute.xlu1 %1080 }
  0x8f   : > { %v2912_v20 = vpop.permute.xlu0 %1065 }
  0x92   : > { %v525_v21 = vpop.permute.xlu1 %524 }
  0x93   : > { %v520_v22 = vpop.permute.xlu0 %519 }
  0x96   : > { %v515_v23 = vpop.permute.xlu1 %514 }
  0x98   : > { %v510_v24 = vpop.permute.xlu0 %509 }
  0x9a   : > { %v535_v35 = vpop.permute.xlu1 %534 }
  0x9c   : > { %v530_v37 = vpop.permute.xlu0 %529 }
  0xa1   : > { %v944_v58 = vpop.permute.xlu1 %943 }
  0xea   : > { %v2266_v25 = vpop.f32.mrb[0].mxu0 }
  0xeb   : > { %v2920_v26 = vadd.f32 %v2266_v25, %v515_v23  ;;  %v622_v27 = vpop.f32.mrb[1].mxu0  ;;  %v2502_v23 = vpack.c.bf16 %v2139_v14, %v2138_v13  ;;  %v2141_v25 = vld [vmem:[%s3187_s10 + $0x138] sm:$0xff] }
  0xec   : > { %v623_v28 = vadd.f32 %v622_v27, %v510_v24  ;;  %v2140_v24 = vld [vmem:[%s3187_s10 + $0x130] sm:$0xff] }
  0xed   : > { %652 = vst [vmem:[%s2918_s21 + $0x8] sm:$0xff] %v2920_v26  ;;  %v2506_v27 = vpack.c.bf16 %v2141_v25, %v2140_v24 }
  0xee   : > { %651 = vst [vmem:[%s2918_s21] sm:$0xff] %v623_v28  ;;  %v2269_v29 = vpop.f32.mrb[2].mxu0 }
  0xef   : > { %v638_v32 = vadd.f32 %v2269_v29, %v525_v21  ;;  %v632_v33 = vpop.f32.mrb[3].mxu0  ;;  %v1044_v21 = vld [vmem:[%s3179_s2 + $0x18] sm:$0xff]  ;;  %v2143_v29 = vld [vmem:[%s3187_s10 + $0x148] sm:$0xff] }
  0xf0   : > { %v633_v34 = vadd.f32 %v632_v33, %v520_v22  ;;  %v1045_v22 = vld [vmem:[%s3179_s2 + $0x20] sm:$0xff] }
  0xf1   : > { %654 = vst [vmem:[%s2918_s21 + $0x18] sm:$0xff] %v638_v32 }
  0xf2   : > { %653 = vst [vmem:[%s2918_s21 + $0x10] sm:$0xff] %v633_v34  ;;  %2305 = vmatprep.mubr.f32.mxu1 %v633_v34  ;;  %v2272_v40 = vpop.f32.mrb[4].mxu0  ;;  %v2146_v34 = vld [vmem:[%s3187_s10 + $0x160] sm:$0xff] }
  0xf3   : > { %2306 = vmatmul.mubr.f32.vlgmr.msra.gmra.mrb[0].mxu1 %v638_v32  ;;  %v2939_v41 = vadd.f32 %v2272_v40, %v535_v35  ;;  %v642_v42 = vpop.f32.mrb[5].mxu0  ;;  %v2145_v32 = vld [vmem:[%s3187_s10 + $0x158] sm:$0xff]  ;;  %v2147_v35 = vld [vmem:[%s3187_s10 + $0x168] sm:$0xff] }
  0xf4   : > { %2465 = vmatpush3.bf16.msra.mxu1 %v2462_v8  ;;  %2340 = vmatprep.mubr.f32.mxu1 %v623_v28  ;;  %v643_v43 = vadd.f32 %v642_v42, %v530_v37  ;;  %v1198_v8 = vld [vmem:[%s3181_s4 + $0x10] sm:$0xff]  ;;  %v2142_v28 = vld [vmem:[%s3187_s10 + $0x140] sm:$0xff]  ;;  %v2514_v33 = vpack.c.bf16 %v2145_v32, %v2144_v31  ;;  %v1275_v40 = vld [vmem:[%s3182_s5 + $0x8] sm:$0xff] }
  0xf5   : > { %2467 = vmatprep.subr.bf16.mxu1 %v2466_v36  ;;  %656 = vst [vmem:[%s2918_s21 + $0x28] sm:$0xff] %v2939_v41  ;;  %v3007_v12 = vpack.c.bf16 %v1198_v8, %v1196_v7  ;;  %v2510_v30 = vpack.c.bf16 %v2143_v29, %v2142_v28  ;;  %v2148_v37 = vld [vmem:[%s3187_s10 + $0x170] sm:$0xff]  ;;  %v1277_v42 = vld [vmem:[%s3182_s5 + $0x18] sm:$0xff]  ;;  %v1357_v8 = vld [vmem:[%s3183_s6 + $0x8] sm:$0xff] }
  0xf6   : > { %655 = vst [vmem:[%s2918_s21 + $0x20] sm:$0xff] %v643_v43  ;;  %v2522_v39 = vpack.c.bf16 %v2149_v38, %v2148_v37 }
  0xf8   : > { %2469 = vmatpush3.bf16.msra.mxu1 %v2466_v36  ;;  %v2518_v36 = vpack.c.bf16 %v2147_v35, %v2146_v34  ;;  %v1619_v35 = vld [vmem:[%s3183_s6 + $0x18] sm:$0xff] }
  0xf9   : > { %2471 = vmatprep.subr.bf16.mxu1 %v2470_v44 }
  0xfc   : > { %2473 = vmatpush3.bf16.msra.mxu1 %v2470_v44  ;;  %v3069_v44 = vpack.c.bf16 %v1277_v42, %v1275_v40 }
  0xfd   : > { %2475 = vmatprep.subr.bf16.mxu1 %v2474_v47 }
 0x100   : > { %2477 = vmatpush3.bf16.msra.mxu1 %v2474_v47  ;;  %v1274_v47 = vld [vmem:[%s3182_s5] sm:$0xff] }
 0x101   : > { %2479 = vmatprep.subr.bf16.mxu1 %v2478_v50  ;;  %v3087_v51 = vpack.c.bf16 %v1276_v48, %v1274_v47 }
 0x104   : > { %2481 = vmatpush3.bf16.msra.mxu1 %v2478_v50 }
 0x105   : > { %2483 = vmatprep.subr.bf16.mxu1 %v2482_v53 }
 0x108   : > { %2485 = vmatpush3.bf16.msra.mxu1 %v2482_v53 }
 0x109   : > { %2487 = vmatprep.subr.bf16.mxu1 %v2486_v56 }
 0x10a   : > { %v2412_v62 = vpop.f32.mrb[6].mxu0 }
 0x10b   : > { %v1032_v1 = vpop.f32.mrb[7].mxu0 }
 0x10c   : > { %2489 = vmatpush3.bf16.msra.mxu1 %v2486_v56  ;;  %v2558_v2 = vpack.c.bf16 %v2412_v62, %v1032_v1 }
 0x10d   : > { %2491 = vmatprep.subr.bf16.mxu1 %v2490_v59 }
 0x10e   : > { %2559 = vmatprep.subr.bf16.mxu0 %v2558_v2 }
 0x10f   : > { %2561 = vmatpush3.bf16.msra.mxu0 %v2558_v2 }
 0x110   : > { %2493 = vmatpush3.bf16.msra.mxu1 %v2490_v59  ;;  %2563 = vmatprep.subr.bf16.mxu0 %v2986_v3 }
 0x111   : > { %2495 = vmatprep.subr.bf16.mxu1 %v2494_v4 }
 0x112   : > { %2418 = vmatmul.mubr.msk.f32.vlgmr.msra.gmra.mrb[8].mxu0 %vm537_vm0, %v1042_v9 }
 0x113   : > { %2341 = vmatmul.mubr.f32.vlgmr.msra.gmra.mrb[0].mxu1 %v2920_v26  ;;  %2420 = vmatprep.mubr.msk.f32.mxu0 %vm537_vm0, %v1043_v10  ;;  %v1046_v26 = vld [vmem:[%s3179_s2 + $0x28] sm:$0xff] }
 0x114   : > { %2497 = vmatpush3.bf16.msra.mxu1 %v2494_v4  ;;  %2375 = vmatprep.mubr.f32.mxu1 %v643_v43  ;;  %v2625_v43 = vmov 0.0  }
 0x115   : > { %2499 = vmatprep.subr.bf16.mxu1 %v2498_v11  ;;  %2565 = vmatpush1.bf16.msra.mxu0 %v3007_v12 }
 0x116   : > { %2421 = vmatmul.mubr.msk.f32.gmra.mrb[10].mxu0 %vm537_vm0, %v1044_v21  ;;  %2567 = vmatprep.subr.bf16.mxu0 %v3069_v44 }
 0x117   : > { %2423 = vmatprep.mubr.msk.f32.mxu0 %vm537_vm0, %v1045_v22 }
 0x118   : > { %2501 = vmatpush3.bf16.msra.mxu1 %v2498_v11 }
 0x119   : > { %2503 = vmatprep.subr.bf16.mxu1 %v2502_v23 }
 0x11a   : > { %2424 = vmatmul.mubr.msk.f32.gmra.mrb[12].mxu0 %vm537_vm0, %v1046_v26 }
 0x11b   : > { %1267 = vmatprep.mubr.f32.mxu0 %v2625_v43 }
 0x11c   : > { %2505 = vmatpush3.bf16.msra.mxu1 %v2502_v23 }
 0x11d   : > { %2507 = vmatprep.subr.bf16.mxu1 %v2506_v27 }
 0x120   : > { %2509 = vmatpush3.bf16.msra.mxu1 %v2506_v27 }
 0x121   : > { %2511 = vmatprep.subr.bf16.mxu1 %v2510_v30 }
 0x124   : > { %2513 = vmatpush3.bf16.msra.mxu1 %v2510_v30 }
 0x125   : > { %2515 = vmatprep.subr.bf16.mxu1 %v2514_v33 }
 0x128   : > { %2517 = vmatpush3.bf16.msra.mxu1 %v2514_v33  ;;  %v1618_v33 = vld [vmem:[%s3183_s6 + $0x10] sm:$0xff] }
 0x129   : > { %2519 = vmatprep.subr.bf16.mxu1 %v2518_v36 }
 0x12c   : > { %2521 = vmatpush3.bf16.msra.mxu1 %v2518_v36 }
 0x12d   : > { %2523 = vmatprep.subr.bf16.mxu1 %v2522_v39 }
 0x130   : > { %2525 = vmatpush3.bf16.msra.mxu1 %v2522_v39 }
 0x133   : > { %2376 = vmatmul.mubr.f32.vlgmr.msra.gmra.mrb[0].mxu1 %v2939_v41  ;;  %v1621_v41 = vld [vmem:[%s3184_s7 + $0x18] sm:$0xff] }
 0x134   : > { %1629 = vperm.xlu1 %2603, %v1621_v41  }
 0x138   : > { %1890 = vperm.xlu1 %2603, %v1882_v46  }
 0x1e5   : > { %v2419_v49 = vpop.f32.mrb[8].mxu0 }
 0x1e6   : > { %v1167_v50 = vpop.f32.mrb[9].mxu0  ;;  %v1173_v9 = vadd.f32 %v2419_v49, %v2902_v15 }
 0x1e7   : > { %v1168_v52 = vadd.f32 %v1167_v50, %v2904_v16 }
 0x1e9   : > { %v2422_v53 = vpop.f32.mrb[10].mxu0  ;;  %2156 = vmatmul.mubr.msk.f32.vlgmr.msra.gmra.mrb[14].mxu0 %vm537_vm0, %v1168_v52  ;;  %v1879_v52 = vld [vmem:[%s3183_s6 + $0x20] sm:$0xff] }
 0x1ea   : > { %v1183_v54 = vadd.f32 %v2422_v53, %v2908_v18  ;;  %v3092_v55 = vpop.f32.mrb[11].mxu0  ;;  %2569 = vmatpush1.bf16.msra.mxu0 %v3087_v51  ;;  %1345 = vmatprep.mubr.f32.mxu0 %v2625_v43  ;;  %v939_v18 = vpop.permute.xlu0 %938 }
 0x1eb   : > { %v1178_v36 = vadd.f32 %v3092_v55, %v2912_v20 }
 0x1ed   : > { %2157 = vmatmul.mubr.msk.f32.vlgmr.msra.gmra.mrb[16].mxu0 %vm537_vm0, %v1183_v54  ;;  %v3097_v56 = vpop.f32.mrb[12].mxu0  ;;  %v1880_v54 = vld [vmem:[%s3183_s6 + $0x28] sm:$0xff] }
 0x1ee   : > { %v1187_v57 = vpop.f32.mrb[13].mxu0  ;;  %1441 = vmatprep.mubr.f32.mxu0 %v2625_v43  ;;  %v1363_v15 = vpop.permute.xlu0 %1362 }
 0x1ef   : > { %v1188_v10 = vadd.f32 %v1187_v57, %v2906_v17  ;;  %v1368_v17 = vpop.permute.xlu1 %1367 }
 0x1f3   : > { %v1630_v40 = vpop.permute.xlu1 %1629 }
 0x206   : > { %v2377_v16 = vpop.f32.mrb[0].mxu1 }
 0x207   : > { %v947_v59 = vadd.f32 %v2377_v16, %v944_v58  ;;  %v923_v60 = vpop.f32.mrb[1].mxu1 }
 0x208   : > { %v946_v61 = vadd.f32 %v939_v18, %v923_v60  ;;  %v1891_v18 = vpop.permute.xlu1 %1890 }
 0x209   : > { %949 = vst [vmem:[%s492_s26 + $0x8] sm:$0xff] %v947_v59 }
 0x20a   : > { %948 = vst [vmem:[%s492_s26] sm:$0xff] %v946_v61 }
 0x2bc   : > { %v1269_v62 = vpop.f32.mrb[14].mxu0 }
 0x2bd   : > { %v1271_v63 = vpop.f32.mrb[15].mxu0 }
 0x2c0   : > { %v1347_v0 = vpop.f32.mrb[16].mxu0 }
 0x2c1   : > { %v1352_v1 = vsub.f32 %v1269_v62, %v1347_v0  ;;  %v1349_v2 = vpop.f32.mrb[17].mxu0 }
 0x2c2   : > { %v1353_v4 = vsub.f32 %v1271_v63, %v1349_v2 }
 0x2c4   : > { %2604 = vtanh.f32 %v1353_v4 }
 0x2c5   : > { %2606 = vtanh.f32 %v1352_v1 }
 0x2ce   : > { %v2605_v5 = vpop.eup %2604 }
 0x2cf   : > { %v2607_v7 = vpop.eup %2606  ;;  %1377 = vmatprep.subr.mxu0 %v2605_v5 }
 0x2d0   : > { %1378 = vmatpush1.msra.mxu0 %v2607_v7 }
 0x2d1   : > { %2158 = vmatmul.mubr.msk.f32.vlgmr.msra.gmra.mrb[18].mxu0 %vm1370_vm1, %v1356_v6  ;;  %2571 = vmatprep.subr.bf16.mxu0 %v2986_v3 }
 0x2d2   : > { %1447 = vmatprep.mubr.f32.mxu0 %v2625_v43  ;;  %2573 = vmatpush1.bf16.msra.mxu0 %v3007_v12 }
 0x2d3   : > { %2575 = vmatprep.subr.bf16.mxu0 %v3069_v44 }
 0x2d5   : > { %2159 = vmatmul.mubr.msk.f32.gmra.mrb[20].mxu0 %vm1370_vm1, %v1357_v8 }
 0x2d6   : > { %1529 = vmatprep.mubr.f32.mxu0 %v2625_v43 }
 0x2d9   : > { %2160 = vmatmul.mubr.msk.f32.vlgmr.msra.gmra.mrb[22].mxu0 %vm537_vm0, %v1173_v9 }
 0x2da   : > { %2577 = vmatpush1.bf16.msra.mxu0 %v3087_v51  ;;  %1607 = vmatprep.mubr.f32.mxu0 %v2625_v43 }
 0x2dd   : > { %2161 = vmatmul.mubr.msk.f32.vlgmr.msra.gmra.mrb[24].mxu0 %vm537_vm0, %v1188_v10 }
 0x2de   : > { %1702 = vmatprep.mubr.f32.mxu0 %v2625_v43 }
 0x3a4   : > { %v1443_v11 = vpop.f32.mrb[18].mxu0 }
 0x3a5   : > { %v1444_v13 = vadd.f32 %v1443_v11, %v1363_v15  ;;  %v1445_v14 = vpop.f32.mrb[19].mxu0 }
 0x3a6   : > { %v1446_v21 = vadd.f32 %v1445_v14, %v1363_v15 }
 0x3a7   : > { %1454 = vst [vmem:[%s3129_s19] sm:$0xff] %v1444_v13 }
 0x3a8   : > { %1455 = vst [vmem:[%s3129_s19 + $0x8] sm:$0xff] %v1446_v21  ;;  %v1449_v22 = vpop.f32.mrb[20].mxu0 }
 0x3a9   : > { %v1450_v23 = vadd.f32 %v1449_v22, %v1368_v17  ;;  %v1451_v24 = vpop.f32.mrb[21].mxu0 }
 0x3aa   : > { %v1452_v25 = vadd.f32 %v1451_v24, %v1368_v17 }
 0x3ab   : > { %1456 = vst [vmem:[%s3129_s19 + $0x10] sm:$0xff] %v1450_v23 }
 0x3ac   : > { %1457 = vst [vmem:[%s3129_s19 + $0x18] sm:$0xff] %v1452_v25  ;;  %v1531_v26 = vpop.f32.mrb[22].mxu0 }
 0x3ad   : > { %v1533_v27 = vpop.f32.mrb[23].mxu0 }
 0x3b0   : > { %v1609_v28 = vpop.f32.mrb[24].mxu0 }
 0x3b1   : > { %v1614_v29 = vsub.f32 %v1531_v26, %v1609_v28  ;;  %v1611_v30 = vpop.f32.mrb[25].mxu0 }
 0x3b2   : > { %v1615_v31 = vsub.f32 %v1533_v27, %v1611_v30 }
 0x3b4   : > { %2608 = vtanh.f32 %v1615_v31 }
 0x3b5   : > { %2610 = vtanh.f32 %v1614_v29 }
 0x3be   : > { %v2609_v32 = vpop.eup %2608 }
 0x3bf   : > { %v2611_v34 = vpop.eup %2610  ;;  %1638 = vmatprep.subr.mxu0 %v2609_v32 }
 0x3c0   : > { %1639 = vmatpush1.msra.mxu0 %v2611_v34 }
 0x3c1   : > { %2162 = vmatmul.mubr.msk.f32.vlgmr.msra.gmra.mrb[26].mxu0 %vm1370_vm1, %v1618_v33  ;;  %2579 = vmatprep.subr.bf16.mxu0 %v2986_v3  ;;  %v1193_v3 = vadd.f32 %v3097_v56, %v2910_v19 }
 0x3c2   : > { %1708 = vmatprep.mubr.f32.mxu0 %v2625_v43  ;;  %2581 = vmatpush1.bf16.msra.mxu0 %v3007_v12  ;;  %v1625_v12 = vpop.permute.xlu0 %1624 }
 0x3c3   : > { %2583 = vmatprep.subr.bf16.mxu0 %v3069_v44 }
 0x3c5   : > { %2163 = vmatmul.mubr.msk.f32.gmra.mrb[28].mxu0 %vm1370_vm1, %v1619_v35 }
 0x3c6   : > { %1790 = vmatprep.mubr.f32.mxu0 %v2625_v43  ;;  %v1886_v55 = vpop.permute.xlu0 %1885 }
 0x3c9   : > { %2164 = vmatmul.mubr.msk.f32.vlgmr.msra.gmra.mrb[30].mxu0 %vm537_vm0, %v1178_v36 }
 0x3ca   : > { %2585 = vmatpush1.bf16.msra.mxu0 %v3087_v51  ;;  %1868 = vmatprep.mubr.f32.mxu0 %v2625_v43 }
 0x3cd   : > { %2165 = vmatmul.mubr.msk.f32.vlgmr.msra.gmra.mrb[32].mxu0 %vm537_vm0, %v1193_v3 }
 0x3ce   : > { %1963 = vmatprep.mubr.f32.mxu0 %v2625_v43 }
 0x494   : > { %v1704_v37 = vpop.f32.mrb[26].mxu0 }
 0x495   : > { %v1705_v38 = vadd.f32 %v1704_v37, %v1625_v12  ;;  %v1706_v39 = vpop.f32.mrb[27].mxu0 }
 0x496   : > { %v1707_v20 = vadd.f32 %v1706_v39, %v1625_v12 }
 0x497   : > { %1715 = vst [vmem:[%s3129_s19 + $0x20] sm:$0xff] %v1705_v38 }
 0x498   : > { %1716 = vst [vmem:[%s3129_s19 + $0x28] sm:$0xff] %v1707_v20  ;;  %v1710_v42 = vpop.f32.mrb[28].mxu0 }
 0x499   : > { %v1711_v44 = vadd.f32 %v1710_v42, %v1630_v40  ;;  %v1712_v45 = vpop.f32.mrb[29].mxu0 }
 0x49a   : > { %v1713_v41 = vadd.f32 %v1712_v45, %v1630_v40 }
 0x49b   : > { %1717 = vst [vmem:[%s3129_s19 + $0x30] sm:$0xff] %v1711_v44 }
 0x49c   : > { %1718 = vst [vmem:[%s3129_s19 + $0x38] sm:$0xff] %v1713_v41  ;;  %v1792_v19 = vpop.f32.mrb[30].mxu0 }
 0x49d   : > { %v1794_v46 = vpop.f32.mrb[31].mxu0 }
 0x4a0   : > { %v1870_v47 = vpop.f32.mrb[32].mxu0 }
 0x4a1   : > { %v1875_v48 = vsub.f32 %v1792_v19, %v1870_v47  ;;  %v1872_v49 = vpop.f32.mrb[33].mxu0 }
 0x4a2   : > { %v1876_v50 = vsub.f32 %v1794_v46, %v1872_v49 }
 0x4a4   : > { %2612 = vtanh.f32 %v1876_v50 }
 0x4a5   : > { %2614 = vtanh.f32 %v1875_v48 }
 0x4ae   : > { %v2613_v51 = vpop.eup %2612 }
 0x4af   : > { %v2615_v53 = vpop.eup %2614  ;;  %1899 = vmatprep.subr.mxu0 %v2613_v51 }
 0x4b0   : > { %1900 = vmatpush1.msra.mxu0 %v2615_v53 }
 0x4b1   : > { %2166 = vmatmul.mubr.msk.f32.vlgmr.msra.gmra.mrb[34].mxu0 %vm1370_vm1, %v1879_v52 }
 0x4b2   : > { %1969 = vmatprep.mubr.f32.mxu0 %v2625_v43 }
 0x4b5   : > { %2167 = vmatmul.mubr.msk.f32.gmra.mrb[36].mxu0 %vm1370_vm1, %v1880_v54 }
 0x584   : > { %v1965_v56 = vpop.f32.mrb[34].mxu0 }
 0x585   : > { %v1966_v57 = vadd.f32 %v1965_v56, %v1886_v55  ;;  %v1967_v58 = vpop.f32.mrb[35].mxu0 }
 0x586   : > { %v1968_v16 = vadd.f32 %v1967_v58, %v1886_v55 }
 0x587   : > { %1976 = vst [vmem:[%s3129_s19 + $0x40] sm:$0xff] %v1966_v57 }
 0x588   : > { %1977 = vst [vmem:[%s3129_s19 + $0x48] sm:$0xff] %v1968_v16  ;;  %v1971_v59 = vpop.f32.mrb[36].mxu0 }
 0x589   : > { %v1972_v60 = vadd.f32 %v1971_v59, %v1891_v18  ;;  %v1973_v61 = vpop.f32.mrb[37].mxu0 }
 0x58a   : > { %v1974_v62 = vadd.f32 %v1973_v61, %v1891_v18 }
 0x58b   : > { %1978 = vst [vmem:[%s3129_s19 + $0x50] sm:$0xff] %v1972_v60 }
 0x58c   : > { %1979 = vst [vmem:[%s3129_s19 + $0x58] sm:$0xff] %v1974_v62 }
 0x58d PF: > { %s25_s29 = sadd.s32 1, %s2622_s29  }
 0x58e   : > { %p22_p4 = scmp.ge.s32.totalorder %s25_s29, 4  }
 0x590   :  { %24 = sbr.rel (!%p22_p4) target bundleno = 1 (0x1), region = 124 }

// kernel: ctrgcn_block_pallas.4
= control target key start
LH: loop header
LB: loop body
LE: loop exit
PB: predicated region body
PF: predicated region fallthrough
CT: control target
= control target key end

     0   :  { %s5297_s15 = smov 0   ;;  %s5882_s0 = inlined_call_operand.vmem [shape: f32[2,48,8,16], index: 0, kind: input, shape index: {}]   ;;  %s5883_s1 = inlined_call_operand.vmem [shape: f32[2,48,16,16], index: 1, kind: input, shape index: {}]   ;;  %s5884_s2 = inlined_call_operand.vmem [shape: f32[2,16,8,16], index: 2, kind: input, shape index: {}]   ;;  %s5885_s3 = inlined_call_operand.vmem [shape: f32[2,16,8,16], index: 3, kind: input, shape index: {}]   ;;  %s5886_s4 = inlined_call_operand.vmem [shape: f32[2,16,8,16], index: 4, kind: output, shape index: {}]  }
   0x1 LB: > { %s4414_s16 = sadd.s32 4294967295, %s5267_s15   ;;  %p4418_p0 = scmp.ge.s32.totalorder %s5267_s15, 1  ;;  %s5267_s15 = sphi %s5297_s15, %s14_s15  }
   0x2   : > { %p192_p1 = scmp.lt.s32.totalorder %s5267_s15, 3 }
   0x4   : > { %p193_p2 = pnand %p4418_p0, %p192_p1 }
   0x5   : > { %p233_p3 = scmp.lt.s32.totalorder (!%p193_p2), %s4414_s16, 1  ;;  %v5269_v0 = vmov (!%p193_p2), 0.0|0.0   ;;  %vm5270_vm0 = vmmov (!%p193_p2), 0   ;;  %v5271_v1 = vmov (!%p193_p2), 0.0   ;;  %vm402_vm1 = vcmask (!%p193_p2), 130048  }
   0x6   : > { %196 = sbr.rel (%p193_p2) target bundleno = 433 (0x1b1), region = 36  ;;  %5056 = vmatprep.subr.bf16.mxu0 (!%p193_p2), %v5269_v0  ;;  %5060 = vmatprep.subr.bf16.mxu1 (!%p193_p2), %v5269_v0  ;;  %vm5321_vm2 = vmpackc.low (!%p193_p2), %vm402_vm1, %vm402_vm1 }
   0x7   : > { %4724 = vmatprep.mubr.msk.f32.mxu0 (!%p193_p2), %vm5270_vm0, %v5271_v1  ;;  %4731 = vmatprep.mubr.msk.f32.mxu1 (!%p193_p2), %vm5270_vm0, %v5271_v1 }
   0xd   : > { %s5890_s16 = smov (!%p233_p3, %s4414_s16), 1 }
   0xe   : > { %s5249_s17 = smul.u32 768, %s5890_s16  ;;  %s4573_s25 = sshll.u32 %s5890_s16, 7 }
   0xf   : > { %s5248_s21 = smul.u32 384, %s5890_s16  ;;  %s5789_s28 = scalar_lea.vmem %s5884_s2, %s4573_s25 }
  0x10   : > { %s5317_s20 = scalar_lea.vmem %s5883_s1, %s5249_s17  ;;  %s5794_s5 = scalar_lea.vmem %s5885_s3, %s4573_s25 }
  0x11   : > { %v306_v3 = vld [vmem:[%s5317_s20] sm:$0xff]  ;;  %v307_v4 = vld [vmem:[%s5317_s20 + $0x8] sm:$0xff]  ;;  %v308_v5 = vld [vmem:[%s5317_s20 + $0x10] sm:$0xff]  ;;  %s5337_s24 = scalar_lea.vmem %s5882_s0, %s5248_s21  ;;  %s5803_s8 = scalar_lea.vmem %s5886_s4, %s4573_s25 }
  0x12   : > { %v5057_v6 = vpack.c.bf16 %v307_v4, %v306_v3  ;;  %v309_v7 = vld [vmem:[%s5317_s20 + $0x18] sm:$0xff]  ;;  %v310_v9 = vld [vmem:[%s5317_s20 + $0x20] sm:$0xff]  ;;  %v311_v10 = vld [vmem:[%s5317_s20 + $0x28] sm:$0xff] }
  0x13   : > { %v5061_v8 = vpack.c.bf16 %v309_v7, %v308_v5  ;;  %v312_v11 = vld [vmem:[%s5317_s20 + $0x30] sm:$0xff]  ;;  %v313_v12 = vld [vmem:[%s5317_s20 + $0x38] sm:$0xff]  ;;  %v258_v13 = vld [vmem:[%s5337_s24] sm:$0xff]  ;;  %v5065_v14 = vpack.c.bf16 %v311_v10, %v310_v9 }
  0x14   : > { %5059 = vmatpush3.bf16.xpose.msk.msra.mxu0 %vm5321_vm2, %v5057_v6  ;;  %v259_v15 = vld [vmem:[%s5337_s24 + $0x8] sm:$0xff]  ;;  %v5069_v16 = vpack.c.bf16 %v313_v12, %v312_v11  ;;  %v314_v17 = vld [vmem:[%s5317_s20 + $0x40] sm:$0xff]  ;;  %v316_v19 = vld [vmem:[%s5317_s20 + $0x50] sm:$0xff] }
  0x15   : > { %5063 = vmatpush3.bf16.xpose.msk.msra.mxu1 %vm5321_vm2, %v5061_v8  ;;  %5064 = vmatprep.subr.bf16.mxu0 %v5269_v0  ;;  %v315_v18 = vld [vmem:[%s5317_s20 + $0x48] sm:$0xff]  ;;  %v317_v20 = vld [vmem:[%s5317_s20 + $0x58] sm:$0xff]  ;;  %v260_v21 = vld [vmem:[%s5337_s24 + $0x10] sm:$0xff] }
  0x16   : > { %5068 = vmatprep.subr.bf16.mxu1 %v5269_v0  ;;  %v5073_v22 = vpack.c.bf16 %v315_v18, %v314_v17  ;;  %v261_v23 = vld [vmem:[%s5337_s24 + $0x18] sm:$0xff]  ;;  %v5077_v24 = vpack.c.bf16 %v317_v20, %v316_v19  ;;  %v318_v25 = vld [vmem:[%s5317_s20 + $0x60] sm:$0xff]  ;;  %v319_v26 = vld [vmem:[%s5317_s20 + $0x68] sm:$0xff] }
  0x17   : > { %v320_v27 = vld [vmem:[%s5317_s20 + $0x70] sm:$0xff]  ;;  %v321_v28 = vld [vmem:[%s5317_s20 + $0x78] sm:$0xff]  ;;  %v262_v29 = vld [vmem:[%s5337_s24 + $0x20] sm:$0xff]  ;;  %v5081_v30 = vpack.c.bf16 %v319_v26, %v318_v25 }
  0x18   : > { %v263_v31 = vld [vmem:[%s5337_s24 + $0x28] sm:$0xff]  ;;  %v5085_v32 = vpack.c.bf16 %v321_v28, %v320_v27  ;;  %v322_v33 = vld [vmem:[%s5317_s20 + $0x80] sm:$0xff]  ;;  %v324_v35 = vld [vmem:[%s5317_s20 + $0x90] sm:$0xff] }
  0x19   : > { %v323_v34 = vld [vmem:[%s5317_s20 + $0x88] sm:$0xff]  ;;  %v325_v36 = vld [vmem:[%s5317_s20 + $0x98] sm:$0xff]  ;;  %v264_v37 = vld [vmem:[%s5337_s24 + $0x30] sm:$0xff] }
  0x1a   : > { %v5089_v38 = vpack.c.bf16 %v323_v34, %v322_v33  ;;  %v265_v39 = vld [vmem:[%s5337_s24 + $0x38] sm:$0xff]  ;;  %v5093_v40 = vpack.c.bf16 %v325_v36, %v324_v35  ;;  %v326_v41 = vld [vmem:[%s5317_s20 + $0xa0] sm:$0xff]  ;;  %v327_v42 = vld [vmem:[%s5317_s20 + $0xa8] sm:$0xff] }
  0x1b   : > { %4725 = vmatmul.mubr.msk.f32.vlgmr.msra.gmra.mrb[0].mxu0 %vm402_vm1, %v258_v13  ;;  %v328_v43 = vld [vmem:[%s5317_s20 + $0xb0] sm:$0xff]  ;;  %v329_v44 = vld [vmem:[%s5317_s20 + $0xb8] sm:$0xff]  ;;  %v266_v45 = vld [vmem:[%s5337_s24 + $0x40] sm:$0xff]  ;;  %v5097_v46 = vpack.c.bf16 %v327_v42, %v326_v41 }
  0x1c   : > { %4732 = vmatmul.mubr.msk.f32.vlgmr.msra.gmra.mrb[0].mxu1 %vm402_vm1, %v259_v15  ;;  %5067 = vmatpush3.bf16.xpose.msk.msra.mxu0 %vm5321_vm2, %v5065_v14  ;;  %v267_v47 = vld [vmem:[%s5337_s24 + $0x48] sm:$0xff]  ;;  %v5101_v48 = vpack.c.bf16 %v329_v44, %v328_v43  ;;  %v330_v49 = vld [vmem:[%s5317_s20 + $0xc0] sm:$0xff]  ;;  %v332_v51 = vld [vmem:[%s5317_s20 + $0xd0] sm:$0xff] }
  0x1d   : > { %5071 = vmatpush3.bf16.xpose.msk.msra.mxu1 %vm5321_vm2, %v5069_v16  ;;  %4738 = vmatprep.mubr.msk.f32.mxu0 %vm5270_vm0, %v5271_v1  ;;  %v331_v50 = vld [vmem:[%s5317_s20 + $0xc8] sm:$0xff]  ;;  %v333_v52 = vld [vmem:[%s5317_s20 + $0xd8] sm:$0xff]  ;;  %v268_v53 = vld [vmem:[%s5337_s24 + $0x50] sm:$0xff] }
  0x1e   : > { %4745 = vmatprep.mubr.msk.f32.mxu1 %vm5270_vm0, %v5271_v1  ;;  %5072 = vmatprep.subr.bf16.mxu0 %v5269_v0  ;;  %v5105_v54 = vpack.c.bf16 %v331_v50, %v330_v49  ;;  %v269_v55 = vld [vmem:[%s5337_s24 + $0x58] sm:$0xff]  ;;  %v5109_v56 = vpack.c.bf16 %v333_v52, %v332_v51  ;;  %v334_v57 = vld [vmem:[%s5317_s20 + $0xe0] sm:$0xff]  ;;  %v335_v58 = vld [vmem:[%s5317_s20 + $0xe8] sm:$0xff] }
  0x1f   : > { %5076 = vmatprep.subr.bf16.mxu1 %v5269_v0  ;;  %v336_v59 = vld [vmem:[%s5317_s20 + $0xf0] sm:$0xff]  ;;  %v337_v60 = vld [vmem:[%s5317_s20 + $0xf8] sm:$0xff]  ;;  %v270_v61 = vld [vmem:[%s5337_s24 + $0x60] sm:$0xff]  ;;  %v5113_v62 = vpack.c.bf16 %v335_v58, %v334_v57 }
  0x20   : > { %v271_v63 = vld [vmem:[%s5337_s24 + $0x68] sm:$0xff]  ;;  %v5117_v3 = vpack.c.bf16 %v337_v60, %v336_v59  ;;  %v338_v4 = vld [vmem:[%s5317_s20 + $0x100] sm:$0xff]  ;;  %v340_v6 = vld [vmem:[%s5317_s20 + $0x110] sm:$0xff] }
  0x21   : > { %v339_v5 = vld [vmem:[%s5317_s20 + $0x108] sm:$0xff]  ;;  %v341_v7 = vld [vmem:[%s5317_s20 + $0x118] sm:$0xff]  ;;  %v272_v8 = vld [vmem:[%s5337_s24 + $0x70] sm:$0xff] }
  0x22   : > { %v5121_v9 = vpack.c.bf16 %v339_v5, %v338_v4  ;;  %v273_v10 = vld [vmem:[%s5337_s24 + $0x78] sm:$0xff]  ;;  %v5125_v11 = vpack.c.bf16 %v341_v7, %v340_v6  ;;  %v342_v12 = vld [vmem:[%s5317_s20 + $0x120] sm:$0xff]  ;;  %v343_v13 = vld [vmem:[%s5317_s20 + $0x128] sm:$0xff] }
  0x23   : > { %4739 = vmatmul.mubr.msk.f32.vlgmr.msra.gmra.mrb[2].mxu0 %vm402_vm1, %v260_v21  ;;  %v344_v14 = vld [vmem:[%s5317_s20 + $0x130] sm:$0xff]  ;;  %v345_v15 = vld [vmem:[%s5317_s20 + $0x138] sm:$0xff]  ;;  %v274_v16 = vld [vmem:[%s5337_s24 + $0x80] sm:$0xff]  ;;  %v5129_v17 = vpack.c.bf16 %v343_v13, %v342_v12 }
  0x24   : > { %4746 = vmatmul.mubr.msk.f32.vlgmr.msra.gmra.mrb[2].mxu1 %vm402_vm1, %v261_v23  ;;  %5075 = vmatpush3.bf16.xpose.msk.msra.mxu0 %vm5321_vm2, %v5073_v22  ;;  %v275_v18 = vld [vmem:[%s5337_s24 + $0x88] sm:$0xff]  ;;  %v5133_v19 = vpack.c.bf16 %v345_v15, %v344_v14  ;;  %v346_v20 = vld [vmem:[%s5317_s20 + $0x140] sm:$0xff]  ;;  %v348_v22 = vld [vmem:[%s5317_s20 + $0x150] sm:$0xff] }
  0x25   : > { %5079 = vmatpush3.bf16.xpose.msk.msra.mxu1 %vm5321_vm2, %v5077_v24  ;;  %4752 = vmatprep.mubr.msk.f32.mxu0 %vm5270_vm0, %v5271_v1  ;;  %v347_v21 = vld [vmem:[%s5317_s20 + $0x148] sm:$0xff]  ;;  %v349_v23 = vld [vmem:[%s5317_s20 + $0x158] sm:$0xff]  ;;  %v276_v24 = vld [vmem:[%s5337_s24 + $0x90] sm:$0xff] }
  0x26   : > { %4759 = vmatprep.mubr.msk.f32.mxu1 %vm5270_vm0, %v5271_v1  ;;  %5080 = vmatprep.subr.bf16.mxu0 %v5269_v0  ;;  %v5137_v25 = vpack.c.bf16 %v347_v21, %v346_v20  ;;  %v277_v26 = vld [vmem:[%s5337_s24 + $0x98] sm:$0xff]  ;;  %v5141_v27 = vpack.c.bf16 %v349_v23, %v348_v22  ;;  %v350_v28 = vld [vmem:[%s5317_s20 + $0x160] sm:$0xff]  ;;  %v279_v34 = vld [vmem:[%s5337_s24 + $0xa8] sm:$0xff] }
  0x27   : > { %5084 = vmatprep.subr.bf16.mxu1 %v5269_v0  ;;  %v354_v36 = vld [vmem:[%s5317_s20 + $0x180] sm:$0xff]  ;;  %v281_v42 = vld [vmem:[%s5337_s24 + $0xb8] sm:$0xff]  ;;  %v283_v50 = vld [vmem:[%s5337_s24 + $0xc8] sm:$0xff] }
  0x28   : > { %v358_v44 = vld [vmem:[%s5317_s20 + $0x1a0] sm:$0xff]  ;;  %v285_v58 = vld [vmem:[%s5337_s24 + $0xd8] sm:$0xff]  ;;  %v287_v5 = vld [vmem:[%s5337_s24 + $0xe8] sm:$0xff] }
  0x29   : > { %v362_v52 = vld [vmem:[%s5317_s20 + $0x1c0] sm:$0xff]  ;;  %v289_v13 = vld [vmem:[%s5337_s24 + $0xf8] sm:$0xff]  ;;  %v291_v21 = vld [vmem:[%s5337_s24 + $0x108] sm:$0xff] }
  0x2a   : > { %v366_v60 = vld [vmem:[%s5317_s20 + $0x1e0] sm:$0xff] }
  0x2b   : > { %4753 = vmatmul.mubr.msk.f32.vlgmr.msra.gmra.mrb[4].mxu0 %vm402_vm1, %v262_v29  ;;  %v351_v29 = vld [vmem:[%s5317_s20 + $0x168] sm:$0xff]  ;;  %v370_v7 = vld [vmem:[%s5317_s20 + $0x200] sm:$0xff] }
  0x2c   : > { %4760 = vmatmul.mubr.msk.f32.vlgmr.msra.gmra.mrb[4].mxu1 %vm402_vm1, %v263_v31  ;;  %5083 = vmatpush3.bf16.xpose.msk.msra.mxu0 %vm5321_vm2, %v5081_v30  ;;  %v352_v30 = vld [vmem:[%s5317_s20 + $0x170] sm:$0xff]  ;;  %v353_v31 = vld [vmem:[%s5317_s20 + $0x178] sm:$0xff]  ;;  %v5145_v33 = vpack.c.bf16 %v351_v29, %v350_v28  ;;  %v374_v15 = vld [vmem:[%s5317_s20 + $0x220] sm:$0xff] }
  0x2d   : > { %5087 = vmatpush3.bf16.xpose.msk.msra.mxu1 %vm5321_vm2, %v5085_v32  ;;  %4766 = vmatprep.mubr.msk.f32.mxu0 %vm5270_vm0, %v5271_v1  ;;  %v278_v32 = vld [vmem:[%s5337_s24 + $0xa0] sm:$0xff]  ;;  %v5149_v35 = vpack.c.bf16 %v353_v31, %v352_v30  ;;  %v293_v29 = vld [vmem:[%s5337_s24 + $0x118] sm:$0xff] }
  0x2e   : > { %4773 = vmatprep.mubr.msk.f32.mxu1 %vm5270_vm0, %v5271_v1  ;;  %5088 = vmatprep.subr.bf16.mxu0 %v5269_v0  ;;  %v378_v23 = vld [vmem:[%s5317_s20 + $0x240] sm:$0xff] }
  0x2f   : > { %5092 = vmatprep.subr.bf16.mxu1 %v5269_v0  ;;  %v382_v31 = vld [vmem:[%s5317_s20 + $0x260] sm:$0xff] }
  0x33   : > { %4767 = vmatmul.mubr.msk.f32.vlgmr.msra.gmra.mrb[6].mxu0 %vm402_vm1, %v264_v37  ;;  %v355_v37 = vld [vmem:[%s5317_s20 + $0x188] sm:$0xff] }
  0x34   : > { %4774 = vmatmul.mubr.msk.f32.vlgmr.msra.gmra.mrb[6].mxu1 %vm402_vm1, %v265_v39  ;;  %5091 = vmatpush3.bf16.xpose.msk.msra.mxu0 %vm5321_vm2, %v5089_v38  ;;  %v356_v38 = vld [vmem:[%s5317_s20 + $0x190] sm:$0xff]  ;;  %v357_v39 = vld [vmem:[%s5317_s20 + $0x198] sm:$0xff]  ;;  %v5153_v41 = vpack.c.bf16 %v355_v37, %v354_v36  ;;  %v295_v37 = vld [vmem:[%s5337_s24 + $0x128] sm:$0xff] }
  0x35   : > { %5095 = vmatpush3.bf16.xpose.msk.msra.mxu1 %vm5321_vm2, %v5093_v40  ;;  %4780 = vmatprep.mubr.msk.f32.mxu0 %vm5270_vm0, %v5271_v1  ;;  %v280_v40 = vld [vmem:[%s5337_s24 + $0xb0] sm:$0xff]  ;;  %v5157_v43 = vpack.c.bf16 %v357_v39, %v356_v38  ;;  %v386_v39 = vld [vmem:[%s5317_s20 + $0x280] sm:$0xff] }
  0x36   : > { %4787 = vmatprep.mubr.msk.f32.mxu1 %vm5270_vm0, %v5271_v1  ;;  %5096 = vmatprep.subr.bf16.mxu0 %v5269_v0 }
  0x37   : > { %5100 = vmatprep.subr.bf16.mxu1 %v5269_v0 }
  0x3b   : > { %4781 = vmatmul.mubr.msk.f32.vlgmr.msra.gmra.mrb[8].mxu0 %vm402_vm1, %v266_v45  ;;  %v359_v45 = vld [vmem:[%s5317_s20 + $0x1a8] sm:$0xff] }
  0x3c   : > { %4788 = vmatmul.mubr.msk.f32.vlgmr.msra.gmra.mrb[8].mxu1 %vm402_vm1, %v267_v47  ;;  %5099 = vmatpush3.bf16.xpose.msk.msra.mxu0 %vm5321_vm2, %v5097_v46  ;;  %v360_v46 = vld [vmem:[%s5317_s20 + $0x1b0] sm:$0xff]  ;;  %v361_v47 = vld [vmem:[%s5317_s20 + $0x1b8] sm:$0xff]  ;;  %v5161_v49 = vpack.c.bf16 %v359_v45, %v358_v44 }
  0x3d   : > { %5103 = vmatpush3.bf16.xpose.msk.msra.mxu1 %vm5321_vm2, %v5101_v48  ;;  %4794 = vmatprep.mubr.msk.f32.mxu0 %vm5270_vm0, %v5271_v1  ;;  %v282_v48 = vld [vmem:[%s5337_s24 + $0xc0] sm:$0xff]  ;;  %v5165_v51 = vpack.c.bf16 %v361_v47, %v360_v46  ;;  %v297_v45 = vld [vmem:[%s5337_s24 + $0x138] sm:$0xff] }
  0x3e   : > { %4801 = vmatprep.mubr.msk.f32.mxu1 %vm5270_vm0, %v5271_v1  ;;  %5104 = vmatprep.subr.bf16.mxu0 %v5269_v0  ;;  %v390_v47 = vld [vmem:[%s5317_s20 + $0x2a0] sm:$0xff] }
  0x3f   : > { %5108 = vmatprep.subr.bf16.mxu1 %v5269_v0 }
  0x43   : > { %4795 = vmatmul.mubr.msk.f32.vlgmr.msra.gmra.mrb[10].mxu0 %vm402_vm1, %v268_v53  ;;  %v363_v53 = vld [vmem:[%s5317_s20 + $0x1c8] sm:$0xff] }
  0x44   : > { %4802 = vmatmul.mubr.msk.f32.vlgmr.msra.gmra.mrb[10].mxu1 %vm402_vm1, %v269_v55  ;;  %5107 = vmatpush3.bf16.xpose.msk.msra.mxu0 %vm5321_vm2, %v5105_v54  ;;  %v364_v54 = vld [vmem:[%s5317_s20 + $0x1d0] sm:$0xff]  ;;  %v365_v55 = vld [vmem:[%s5317_s20 + $0x1d8] sm:$0xff]  ;;  %v5169_v57 = vpack.c.bf16 %v363_v53, %v362_v52  ;;  %v299_v53 = vld [vmem:[%s5337_s24 + $0x148] sm:$0xff] }
  0x45   : > { %5111 = vmatpush3.bf16.xpose.msk.msra.mxu1 %vm5321_vm2, %v5109_v56  ;;  %4808 = vmatprep.mubr.msk.f32.mxu0 %vm5270_vm0, %v5271_v1  ;;  %v284_v56 = vld [vmem:[%s5337_s24 + $0xd0] sm:$0xff]  ;;  %v5173_v59 = vpack.c.bf16 %v365_v55, %v364_v54  ;;  %v394_v55 = vld [vmem:[%s5317_s20 + $0x2c0] sm:$0xff] }
  0x46   : > { %4815 = vmatprep.mubr.msk.f32.mxu1 %vm5270_vm0, %v5271_v1  ;;  %5112 = vmatprep.subr.bf16.mxu0 %v5269_v0 }
  0x47   : > { %5116 = vmatprep.subr.bf16.mxu1 %v5269_v0 }
  0x4b   : > { %4809 = vmatmul.mubr.msk.f32.vlgmr.msra.gmra.mrb[12].mxu0 %vm402_vm1, %v270_v61  ;;  %v367_v61 = vld [vmem:[%s5317_s20 + $0x1e8] sm:$0xff] }
  0x4c   : > { %4816 = vmatmul.mubr.msk.f32.vlgmr.msra.gmra.mrb[12].mxu1 %vm402_vm1, %v271_v63  ;;  %5115 = vmatpush3.bf16.xpose.msk.msra.mxu0 %vm5321_vm2, %v5113_v62  ;;  %v368_v62 = vld [vmem:[%s5317_s20 + $0x1f0] sm:$0xff]  ;;  %v369_v63 = vld [vmem:[%s5317_s20 + $0x1f8] sm:$0xff]  ;;  %v5177_v4 = vpack.c.bf16 %v367_v61, %v366_v60 }
  0x4d   : > { %5119 = vmatpush3.bf16.xpose.msk.msra.mxu1 %vm5321_vm2, %v5117_v3  ;;  %4822 = vmatprep.mubr.msk.f32.mxu0 %vm5270_vm0, %v5271_v1  ;;  %v286_v3 = vld [vmem:[%s5337_s24 + $0xe0] sm:$0xff]  ;;  %v5181_v6 = vpack.c.bf16 %v369_v63, %v368_v62  ;;  %v301_v61 = vld [vmem:[%s5337_s24 + $0x158] sm:$0xff] }
  0x4e   : > { %4829 = vmatprep.mubr.msk.f32.mxu1 %vm5270_vm0, %v5271_v1  ;;  %5120 = vmatprep.subr.bf16.mxu0 %v5269_v0  ;;  %v398_v63 = vld [vmem:[%s5317_s20 + $0x2e0] sm:$0xff] }
  0x4f   : > { %5124 = vmatprep.subr.bf16.mxu1 %v5269_v0 }
  0x53   : > { %4823 = vmatmul.mubr.msk.f32.vlgmr.msra.gmra.mrb[14].mxu0 %vm402_vm1, %v272_v8  ;;  %v371_v8 = vld [vmem:[%s5317_s20 + $0x208] sm:$0xff] }
  0x54   : > { %4830 = vmatmul.mubr.msk.f32.vlgmr.msra.gmra.mrb[14].mxu1 %vm402_vm1, %v273_v10  ;;  %5123 = vmatpush3.bf16.xpose.msk.msra.mxu0 %vm5321_vm2, %v5121_v9  ;;  %v372_v9 = vld [vmem:[%s5317_s20 + $0x210] sm:$0xff]  ;;  %v373_v10 = vld [vmem:[%s5317_s20 + $0x218] sm:$0xff]  ;;  %v5185_v12 = vpack.c.bf16 %v371_v8, %v370_v7  ;;  %v303_v8 = vld [vmem:[%s5337_s24 + $0x168] sm:$0xff] }
  0x55   : > { %5127 = vmatpush3.bf16.xpose.msk.msra.mxu1 %vm5321_vm2, %v5125_v11  ;;  %4836 = vmatprep.mubr.msk.f32.mxu0 %vm5270_vm0, %v5271_v1  ;;  %v288_v11 = vld [vmem:[%s5337_s24 + $0xf0] sm:$0xff]  ;;  %v5189_v14 = vpack.c.bf16 %v373_v10, %v372_v9  ;;  %v305_v10 = vld [vmem:[%s5337_s24 + $0x178] sm:$0xff] }
  0x56   : > { %4843 = vmatprep.mubr.msk.f32.mxu1 %vm5270_vm0, %v5271_v1  ;;  %5128 = vmatprep.subr.bf16.mxu0 %v5269_v0 }
  0x57   : > { %5132 = vmatprep.subr.bf16.mxu1 %v5269_v0 }
  0x5b   : > { %4837 = vmatmul.mubr.msk.f32.vlgmr.msra.gmra.mrb[16].mxu0 %vm402_vm1, %v274_v16  ;;  %v375_v16 = vld [vmem:[%s5317_s20 + $0x228] sm:$0xff] }
  0x5c   : > { %4844 = vmatmul.mubr.msk.f32.vlgmr.msra.gmra.mrb[16].mxu1 %vm402_vm1, %v275_v18  ;;  %5131 = vmatpush3.bf16.xpose.msk.msra.mxu0 %vm5321_vm2, %v5129_v17  ;;  %v376_v17 = vld [vmem:[%s5317_s20 + $0x230] sm:$0xff]  ;;  %v377_v18 = vld [vmem:[%s5317_s20 + $0x238] sm:$0xff]  ;;  %v5193_v20 = vpack.c.bf16 %v375_v16, %v374_v15 }
  0x5d   : > { %5135 = vmatpush3.bf16.xpose.msk.msra.mxu1 %vm5321_vm2, %v5133_v19  ;;  %4850 = vmatprep.mubr.msk.f32.mxu0 %vm5270_vm0, %v5271_v1  ;;  %v290_v19 = vld [vmem:[%s5337_s24 + $0x100] sm:$0xff]  ;;  %v5197_v22 = vpack.c.bf16 %v377_v18, %v376_v17 }
  0x5e   : > { %4857 = vmatprep.mubr.msk.f32.mxu1 %vm5270_vm0, %v5271_v1  ;;  %5136 = vmatprep.subr.bf16.mxu0 %v5269_v0 }
  0x5f   : > { %5140 = vmatprep.subr.bf16.mxu1 %v5269_v0 }
  0x63   : > { %4851 = vmatmul.mubr.msk.f32.vlgmr.msra.gmra.mrb[18].mxu0 %vm402_vm1, %v276_v24  ;;  %v379_v24 = vld [vmem:[%s5317_s20 + $0x248] sm:$0xff] }
  0x64   : > { %4858 = vmatmul.mubr.msk.f32.vlgmr.msra.gmra.mrb[18].mxu1 %vm402_vm1, %v277_v26  ;;  %5139 = vmatpush3.bf16.xpose.msk.msra.mxu0 %vm5321_vm2, %v5137_v25  ;;  %v380_v25 = vld [vmem:[%s5317_s20 + $0x250] sm:$0xff]  ;;  %v381_v26 = vld [vmem:[%s5317_s20 + $0x258] sm:$0xff]  ;;  %v5201_v28 = vpack.c.bf16 %v379_v24, %v378_v23 }
  0x65   : > { %5143 = vmatpush3.bf16.xpose.msk.msra.mxu1 %vm5321_vm2, %v5141_v27  ;;  %4864 = vmatprep.mubr.msk.f32.mxu0 %vm5270_vm0, %v5271_v1  ;;  %v292_v27 = vld [vmem:[%s5337_s24 + $0x110] sm:$0xff]  ;;  %v5205_v30 = vpack.c.bf16 %v381_v26, %v380_v25 }
  0x66   : > { %4871 = vmatprep.mubr.msk.f32.mxu1 %vm5270_vm0, %v5271_v1  ;;  %5144 = vmatprep.subr.bf16.mxu0 %v5269_v0 }
  0x67   : > { %5148 = vmatprep.subr.bf16.mxu1 %v5269_v0 }
  0x6b   : > { %4865 = vmatmul.mubr.msk.f32.vlgmr.msra.gmra.mrb[20].mxu0 %vm402_vm1, %v278_v32  ;;  %v383_v32 = vld [vmem:[%s5317_s20 + $0x268] sm:$0xff] }
  0x6c   : > { %4872 = vmatmul.mubr.msk.f32.vlgmr.msra.gmra.mrb[20].mxu1 %vm402_vm1, %v279_v34  ;;  %5147 = vmatpush3.bf16.xpose.msk.msra.mxu0 %vm5321_vm2, %v5145_v33  ;;  %v384_v33 = vld [vmem:[%s5317_s20 + $0x270] sm:$0xff]  ;;  %v385_v34 = vld [vmem:[%s5317_s20 + $0x278] sm:$0xff]  ;;  %v5209_v36 = vpack.c.bf16 %v383_v32, %v382_v31 }
  0x6d   : > { %5151 = vmatpush3.bf16.xpose.msk.msra.mxu1 %vm5321_vm2, %v5149_v35  ;;  %4878 = vmatprep.mubr.msk.f32.mxu0 %vm5270_vm0, %v5271_v1  ;;  %v294_v35 = vld [vmem:[%s5337_s24 + $0x120] sm:$0xff]  ;;  %v5213_v38 = vpack.c.bf16 %v385_v34, %v384_v33 }
  0x6e   : > { %4885 = vmatprep.mubr.msk.f32.mxu1 %vm5270_vm0, %v5271_v1  ;;  %5152 = vmatprep.subr.bf16.mxu0 %v5269_v0 }
  0x6f   : > { %5156 = vmatprep.subr.bf16.mxu1 %v5269_v0 }
  0x73   : > { %4879 = vmatmul.mubr.msk.f32.vlgmr.msra.gmra.mrb[22].mxu0 %vm402_vm1, %v280_v40  ;;  %v387_v40 = vld [vmem:[%s5317_s20 + $0x288] sm:$0xff] }
  0x74   : > { %4886 = vmatmul.mubr.msk.f32.vlgmr.msra.gmra.mrb[22].mxu1 %vm402_vm1, %v281_v42  ;;  %5155 = vmatpush3.bf16.xpose.msk.msra.mxu0 %vm5321_vm2, %v5153_v41  ;;  %v388_v41 = vld [vmem:[%s5317_s20 + $0x290] sm:$0xff]  ;;  %v389_v42 = vld [vmem:[%s5317_s20 + $0x298] sm:$0xff]  ;;  %v5217_v44 = vpack.c.bf16 %v387_v40, %v386_v39 }
  0x75   : > { %5159 = vmatpush3.bf16.xpose.msk.msra.mxu1 %vm5321_vm2, %v5157_v43  ;;  %4892 = vmatprep.mubr.msk.f32.mxu0 %vm5270_vm0, %v5271_v1  ;;  %v296_v43 = vld [vmem:[%s5337_s24 + $0x130] sm:$0xff]  ;;  %v5221_v46 = vpack.c.bf16 %v389_v42, %v388_v41 }
  0x76   : > { %4899 = vmatprep.mubr.msk.f32.mxu1 %vm5270_vm0, %v5271_v1  ;;  %5160 = vmatprep.subr.bf16.mxu0 %v5269_v0 }
  0x77   : > { %5164 = vmatprep.subr.bf16.mxu1 %v5269_v0 }
  0x7b   : > { %4893 = vmatmul.mubr.msk.f32.vlgmr.msra.gmra.mrb[24].mxu0 %vm402_vm1, %v282_v48  ;;  %v391_v48 = vld [vmem:[%s5317_s20 + $0x2a8] sm:$0xff] }
  0x7c   : > { %4900 = vmatmul.mubr.msk.f32.vlgmr.msra.gmra.mrb[24].mxu1 %vm402_vm1, %v283_v50  ;;  %5163 = vmatpush3.bf16.xpose.msk.msra.mxu0 %vm5321_vm2, %v5161_v49  ;;  %v392_v49 = vld [vmem:[%s5317_s20 + $0x2b0] sm:$0xff]  ;;  %v393_v50 = vld [vmem:[%s5317_s20 + $0x2b8] sm:$0xff]  ;;  %v5225_v52 = vpack.c.bf16 %v391_v48, %v390_v47 }
  0x7d   : > { %5167 = vmatpush3.bf16.xpose.msk.msra.mxu1 %vm5321_vm2, %v5165_v51  ;;  %4906 = vmatprep.mubr.msk.f32.mxu0 %vm5270_vm0, %v5271_v1  ;;  %v298_v51 = vld [vmem:[%s5337_s24 + $0x140] sm:$0xff]  ;;  %v5229_v54 = vpack.c.bf16 %v393_v50, %v392_v49 }
  0x7e   : > { %4913 = vmatprep.mubr.msk.f32.mxu1 %vm5270_vm0, %v5271_v1  ;;  %5168 = vmatprep.subr.bf16.mxu0 %v5269_v0 }
  0x7f   : > { %5172 = vmatprep.subr.bf16.mxu1 %v5269_v0 }
  0x83   : > { %4907 = vmatmul.mubr.msk.f32.vlgmr.msra.gmra.mrb[26].mxu0 %vm402_vm1, %v284_v56  ;;  %v395_v56 = vld [vmem:[%s5317_s20 + $0x2c8] sm:$0xff] }
  0x84   : > { %4914 = vmatmul.mubr.msk.f32.vlgmr.msra.gmra.mrb[26].mxu1 %vm402_vm1, %v285_v58  ;;  %5171 = vmatpush3.bf16.xpose.msk.msra.mxu0 %vm5321_vm2, %v5169_v57  ;;  %v396_v57 = vld [vmem:[%s5317_s20 + $0x2d0] sm:$0xff]  ;;  %v397_v58 = vld [vmem:[%s5317_s20 + $0x2d8] sm:$0xff]  ;;  %v5233_v60 = vpack.c.bf16 %v395_v56, %v394_v55 }
  0x85   : > { %5175 = vmatpush3.bf16.xpose.msk.msra.mxu1 %vm5321_vm2, %v5173_v59  ;;  %4920 = vmatprep.mubr.msk.f32.mxu0 %vm5270_vm0, %v5271_v1  ;;  %v300_v59 = vld [vmem:[%s5337_s24 + $0x150] sm:$0xff]  ;;  %v5237_v62 = vpack.c.bf16 %v397_v58, %v396_v57 }
  0x86   : > { %4927 = vmatprep.mubr.msk.f32.mxu1 %vm5270_vm0, %v5271_v1  ;;  %5176 = vmatprep.subr.bf16.mxu0 %v5269_v0 }
  0x87   : > { %5180 = vmatprep.subr.bf16.mxu1 %v5269_v0 }
  0x8b   : > { %4921 = vmatmul.mubr.msk.f32.vlgmr.msra.gmra.mrb[28].mxu0 %vm402_vm1, %v286_v3  ;;  %v399_v3 = vld [vmem:[%s5317_s20 + $0x2e8] sm:$0xff] }
  0x8c   : > { %4928 = vmatmul.mubr.msk.f32.vlgmr.msra.gmra.mrb[28].mxu1 %vm402_vm1, %v287_v5  ;;  %5179 = vmatpush3.bf16.xpose.msk.msra.mxu0 %vm5321_vm2, %v5177_v4  ;;  %v400_v4 = vld [vmem:[%s5317_s20 + $0x2f0] sm:$0xff]  ;;  %v401_v5 = vld [vmem:[%s5317_s20 + $0x2f8] sm:$0xff]  ;;  %v5241_v7 = vpack.c.bf16 %v399_v3, %v398_v63 }
  0x8d   : > { %5183 = vmatpush3.bf16.xpose.msk.msra.mxu1 %vm5321_vm2, %v5181_v6  ;;  %4934 = vmatprep.mubr.msk.f32.mxu0 %vm5270_vm0, %v5271_v1  ;;  %v302_v6 = vld [vmem:[%s5337_s24 + $0x160] sm:$0xff]  ;;  %v5245_v9 = vpack.c.bf16 %v401_v5, %v400_v4 }
  0x8e   : > { %4941 = vmatprep.mubr.msk.f32.mxu1 %vm5270_vm0, %v5271_v1  ;;  %5184 = vmatprep.subr.bf16.mxu0 %v5269_v0 }
  0x8f   : > { %5188 = vmatprep.subr.bf16.mxu1 %v5269_v0 }
  0x93   : > { %4935 = vmatmul.mubr.msk.f32.vlgmr.msra.gmra.mrb[30].mxu0 %vm402_vm1, %v288_v11 }
  0x94   : > { %4942 = vmatmul.mubr.msk.f32.vlgmr.msra.gmra.mrb[30].mxu1 %vm402_vm1, %v289_v13  ;;  %5187 = vmatpush3.bf16.xpose.msk.msra.mxu0 %vm5321_vm2, %v5185_v12 }
  0x95   : > { %5191 = vmatpush3.bf16.xpose.msk.msra.mxu1 %vm5321_vm2, %v5189_v14  ;;  %4948 = vmatprep.mubr.msk.f32.mxu0 %vm5270_vm0, %v5271_v1 }
  0x96   : > { %4955 = vmatprep.mubr.msk.f32.mxu1 %vm5270_vm0, %v5271_v1  ;;  %5192 = vmatprep.subr.bf16.mxu0 %v5269_v0 }
  0x97   : > { %5196 = vmatprep.subr.bf16.mxu1 %v5269_v0 }
  0x9b   : > { %4949 = vmatmul.mubr.msk.f32.vlgmr.msra.gmra.mrb[32].mxu0 %vm402_vm1, %v290_v19 }
  0x9c   : > { %4956 = vmatmul.mubr.msk.f32.vlgmr.msra.gmra.mrb[32].mxu1 %vm402_vm1, %v291_v21  ;;  %5195 = vmatpush3.bf16.xpose.msk.msra.mxu0 %vm5321_vm2, %v5193_v20 }
  0x9d   : > { %5199 = vmatpush3.bf16.xpose.msk.msra.mxu1 %vm5321_vm2, %v5197_v22  ;;  %4962 = vmatprep.mubr.msk.f32.mxu0 %vm5270_vm0, %v5271_v1 }
  0x9e   : > { %4969 = vmatprep.mubr.msk.f32.mxu1 %vm5270_vm0, %v5271_v1  ;;  %5200 = vmatprep.subr.bf16.mxu0 %v5269_v0 }
  0x9f   : > { %5204 = vmatprep.subr.bf16.mxu1 %v5269_v0 }
  0xa3   : > { %4963 = vmatmul.mubr.msk.f32.vlgmr.msra.gmra.mrb[34].mxu0 %vm402_vm1, %v292_v27 }
  0xa4   : > { %4970 = vmatmul.mubr.msk.f32.vlgmr.msra.gmra.mrb[34].mxu1 %vm402_vm1, %v293_v29  ;;  %5203 = vmatpush3.bf16.xpose.msk.msra.mxu0 %vm5321_vm2, %v5201_v28 }
  0xa5   : > { %5207 = vmatpush3.bf16.xpose.msk.msra.mxu1 %vm5321_vm2, %v5205_v30  ;;  %4976 = vmatprep.mubr.msk.f32.mxu0 %vm5270_vm0, %v5271_v1 }
  0xa6   : > { %4983 = vmatprep.mubr.msk.f32.mxu1 %vm5270_vm0, %v5271_v1  ;;  %5208 = vmatprep.subr.bf16.mxu0 %v5269_v0 }
  0xa7   : > { %5212 = vmatprep.subr.bf16.mxu1 %v5269_v0 }
  0xab   : > { %4977 = vmatmul.mubr.msk.f32.vlgmr.msra.gmra.mrb[36].mxu0 %vm402_vm1, %v294_v35 }
  0xac   : > { %4984 = vmatmul.mubr.msk.f32.vlgmr.msra.gmra.mrb[36].mxu1 %vm402_vm1, %v295_v37  ;;  %5211 = vmatpush3.bf16.xpose.msk.msra.mxu0 %vm5321_vm2, %v5209_v36 }
  0xad   : > { %5215 = vmatpush3.bf16.xpose.msk.msra.mxu1 %vm5321_vm2, %v5213_v38  ;;  %4990 = vmatprep.mubr.msk.f32.mxu0 %vm5270_vm0, %v5271_v1 }
  0xae   : > { %4997 = vmatprep.mubr.msk.f32.mxu1 %vm5270_vm0, %v5271_v1  ;;  %5216 = vmatprep.subr.bf16.mxu0 %v5269_v0 }
  0xaf   : > { %5220 = vmatprep.subr.bf16.mxu1 %v5269_v0 }
  0xb3   : > { %4991 = vmatmul.mubr.msk.f32.vlgmr.msra.gmra.mrb[38].mxu0 %vm402_vm1, %v296_v43 }
  0xb4   : > { %4998 = vmatmul.mubr.msk.f32.vlgmr.msra.gmra.mrb[38].mxu1 %vm402_vm1, %v297_v45  ;;  %5219 = vmatpush3.bf16.xpose.msk.msra.mxu0 %vm5321_vm2, %v5217_v44 }
  0xb5   : > { %5223 = vmatpush3.bf16.xpose.msk.msra.mxu1 %vm5321_vm2, %v5221_v46  ;;  %5004 = vmatprep.mubr.msk.f32.mxu0 %vm5270_vm0, %v5271_v1 }
  0xb6   : > { %5011 = vmatprep.mubr.msk.f32.mxu1 %vm5270_vm0, %v5271_v1  ;;  %5224 = vmatprep.subr.bf16.mxu0 %v5269_v0 }
  0xb7   : > { %5228 = vmatprep.subr.bf16.mxu1 %v5269_v0 }
  0xbb   : > { %5005 = vmatmul.mubr.msk.f32.vlgmr.msra.gmra.mrb[40].mxu0 %vm402_vm1, %v298_v51 }
  0xbc   : > { %5012 = vmatmul.mubr.msk.f32.vlgmr.msra.gmra.mrb[40].mxu1 %vm402_vm1, %v299_v53  ;;  %5227 = vmatpush3.bf16.xpose.msk.msra.mxu0 %vm5321_vm2, %v5225_v52 }
  0xbd   : > { %5231 = vmatpush3.bf16.xpose.msk.msra.mxu1 %vm5321_vm2, %v5229_v54  ;;  %5018 = vmatprep.mubr.msk.f32.mxu0 %vm5270_vm0, %v5271_v1 }
  0xbe   : > { %5025 = vmatprep.mubr.msk.f32.mxu1 %vm5270_vm0, %v5271_v1  ;;  %5232 = vmatprep.subr.bf16.mxu0 %v5269_v0 }
  0xbf   : > { %5236 = vmatprep.subr.bf16.mxu1 %v5269_v0 }
  0xc3   : > { %5019 = vmatmul.mubr.msk.f32.vlgmr.msra.gmra.mrb[42].mxu0 %vm402_vm1, %v300_v59 }
  0xc4   : > { %5026 = vmatmul.mubr.msk.f32.vlgmr.msra.gmra.mrb[42].mxu1 %vm402_vm1, %v301_v61  ;;  %5235 = vmatpush3.bf16.xpose.msk.msra.mxu0 %vm5321_vm2, %v5233_v60 }
  0xc5   : > { %5239 = vmatpush3.bf16.xpose.msk.msra.mxu1 %vm5321_vm2, %v5237_v62  ;;  %5032 = vmatprep.mubr.msk.f32.mxu0 %vm5270_vm0, %v5271_v1 }
  0xc6   : > { %5039 = vmatprep.mubr.msk.f32.mxu1 %vm5270_vm0, %v5271_v1  ;;  %5240 = vmatprep.subr.bf16.mxu0 %v5269_v0 }
  0xc7   : > { %5244 = vmatprep.subr.bf16.mxu1 %v5269_v0  ;;  %v304_v0 = vld [vmem:[%s5337_s24 + $0x170] sm:$0xff] }
  0xcb   : > { %5033 = vmatmul.mubr.msk.f32.vlgmr.msra.gmra.mrb[44].mxu0 %vm402_vm1, %v302_v6 }
  0xcc   : > { %5040 = vmatmul.mubr.msk.f32.vlgmr.msra.gmra.mrb[44].mxu1 %vm402_vm1, %v303_v8  ;;  %5243 = vmatpush3.bf16.xpose.msk.msra.mxu0 %vm5321_vm2, %v5241_v7 }
  0xcd   : > { %5247 = vmatpush3.bf16.xpose.msk.msra.mxu1 %vm5321_vm2, %v5245_v9  ;;  %5046 = vmatprep.mubr.msk.f32.mxu0 %vm5270_vm0, %v5271_v1 }
  0xce   : > { %5053 = vmatprep.mubr.msk.f32.mxu1 %vm5270_vm0, %v5271_v1 }
  0xd3   : > { %5047 = vmatmul.mubr.msk.f32.vlgmr.msra.gmra.mrb[46].mxu0 %vm402_vm1, %v304_v0 }
  0xd4   : > { %5054 = vmatmul.mubr.msk.f32.vlgmr.msra.gmra.mrb[46].mxu1 %vm402_vm1, %v305_v10 }
  0xee   : > { %v478_v11 = vpop.f32.mrb[0].mxu0 }
  0xef   : > { %v557_v12 = vpop.f32.mrb[0].mxu1  ;;  %v4726_v13 = vpop.f32.mrb[1].mxu0 }
  0xf0   : > { %v4733_v14 = vpop.f32.mrb[1].mxu1 }
  0xf6   : > { %v636_v15 = vpop.f32.mrb[2].mxu0 }
  0xf7   : > { %v715_v16 = vpop.f32.mrb[2].mxu1  ;;  %v4740_v2 = vpop.f32.mrb[3].mxu0 }
  0xf8   : > { %v4747_v17 = vpop.f32.mrb[3].mxu1 }
  0xfe   : > { %v794_v18 = vpop.f32.mrb[4].mxu0 }
  0xff   : > { %v873_v19 = vpop.f32.mrb[4].mxu1  ;;  %v4754_v20 = vpop.f32.mrb[5].mxu0 }
 0x100   : > { %v4761_v21 = vpop.f32.mrb[5].mxu1 }
 0x106   : > { %v952_v22 = vpop.f32.mrb[6].mxu0 }
 0x107   : > { %v1031_v1 = vpop.f32.mrb[6].mxu1  ;;  %v4768_v23 = vpop.f32.mrb[7].mxu0 }
 0x108   : > { %v4775_v24 = vpop.f32.mrb[7].mxu1 }
 0x10e   : > { %v1110_v25 = vpop.f32.mrb[8].mxu0 }
 0x10f   : > { %v1189_v26 = vpop.f32.mrb[8].mxu1  ;;  %v4782_v27 = vpop.f32.mrb[9].mxu0 }
 0x110   : > { %v4789_v28 = vpop.f32.mrb[9].mxu1 }
 0x116   : > { %v1268_v29 = vpop.f32.mrb[10].mxu0 }
 0x117   : > { %v1347_v30 = vpop.f32.mrb[10].mxu1  ;;  %v4796_v31 = vpop.f32.mrb[11].mxu0 }
 0x118   : > { %v4803_v32 = vpop.f32.mrb[11].mxu1  ;;  %v4259_v31 = vld [vmem:[%s5794_s5] sm:$0xff] }
 0x11e   : > { %v1426_v33 = vpop.f32.mrb[12].mxu0 }
 0x11f   : > { %v1505_v34 = vpop.f32.mrb[12].mxu1  ;;  %v4810_v35 = vpop.f32.mrb[13].mxu0 }
 0x120   : > { %v4817_v36 = vpop.f32.mrb[13].mxu1  ;;  %v4260_v35 = vld [vmem:[%s5794_s5 + $0x8] sm:$0xff] }
 0x126   : > { %v1584_v37 = vpop.f32.mrb[14].mxu0 }
 0x127   : > { %v1663_v38 = vpop.f32.mrb[14].mxu1  ;;  %v4824_v39 = vpop.f32.mrb[15].mxu0 }
 0x128   : > { %v4831_v40 = vpop.f32.mrb[15].mxu1 }
 0x12e   : > { %v1742_v41 = vpop.f32.mrb[16].mxu0 }
 0x12f   : > { %v4195_v42 = vadd.f32 %v1742_v41, %v478_v11  ;;  %v1821_v43 = vpop.f32.mrb[16].mxu1  ;;  %v4838_v44 = vpop.f32.mrb[17].mxu0 }
 0x130   : > { %v4196_v45 = vadd.f32 %v1821_v43, %v557_v12  ;;  %v4845_v46 = vpop.f32.mrb[17].mxu1 }
 0x136   : > { %v1900_v47 = vpop.f32.mrb[18].mxu0 }
 0x137   : > { %v5757_v48 = vadd.f32 %v1900_v47, %v636_v15  ;;  %v1979_v49 = vpop.f32.mrb[18].mxu1  ;;  %v4852_v50 = vpop.f32.mrb[19].mxu0  ;;  %v4261_v47 = vld [vmem:[%s5794_s5 + $0x10] sm:$0xff] }
 0x138   : > { %v5759_v51 = vadd.f32 %v1979_v49, %v715_v16  ;;  %v4859_v52 = vpop.f32.mrb[19].mxu1 }
 0x13e   : > { %v2058_v53 = vpop.f32.mrb[20].mxu0 }
 0x13f   : > { %v5761_v54 = vadd.f32 %v2058_v53, %v794_v18  ;;  %v2137_v55 = vpop.f32.mrb[20].mxu1  ;;  %v4866_v56 = vpop.f32.mrb[21].mxu0  ;;  %v4262_v53 = vld [vmem:[%s5794_s5 + $0x18] sm:$0xff] }
 0x140   : > { %v5763_v57 = vadd.f32 %v2137_v55, %v873_v19  ;;  %v4873_v58 = vpop.f32.mrb[21].mxu1 }
 0x146   : > { %v2216_v59 = vpop.f32.mrb[22].mxu0 }
 0x147   : > { %v5765_v60 = vadd.f32 %v2216_v59, %v952_v22  ;;  %v2295_v61 = vpop.f32.mrb[22].mxu1  ;;  %v4880_v62 = vpop.f32.mrb[23].mxu0 }
 0x148   : > { %v5767_v63 = vadd.f32 %v2295_v61, %v1031_v1  ;;  %v4887_v3 = vpop.f32.mrb[23].mxu1  ;;  %v4231_v62 = vld [vmem:[%s5789_s28 + $0x20] sm:$0xff] }
 0x14e   : > { %v2374_v4 = vpop.f32.mrb[24].mxu0 }
 0x14f   : > { %v5769_v5 = vadd.f32 %v2374_v4, %v1110_v25  ;;  %v2453_v6 = vpop.f32.mrb[24].mxu1  ;;  %v4894_v7 = vpop.f32.mrb[25].mxu0 }
 0x150   : > { %v5771_v8 = vadd.f32 %v2453_v6, %v1189_v26  ;;  %v4901_v9 = vpop.f32.mrb[25].mxu1  ;;  %v4227_v26 = vld [vmem:[%s5789_s28] sm:$0xff] }
 0x151   : > { %v4263_v7 = vld [vmem:[%s5794_s5 + $0x20] sm:$0xff] }
 0x156   : > { %v2532_v0 = vpop.f32.mrb[26].mxu0 }
 0x157   : > { %v5773_v10 = vadd.f32 %v2532_v0, %v1268_v29  ;;  %v2611_v11 = vpop.f32.mrb[26].mxu1  ;;  %v4908_v12 = vpop.f32.mrb[27].mxu0  ;;  %v4228_v29 = vld [vmem:[%s5789_s28 + $0x8] sm:$0xff] }
 0x158   : > { %v5775_v13 = vadd.f32 %v2611_v11, %v1347_v30  ;;  %v4915_v14 = vpop.f32.mrb[27].mxu1  ;;  %v4264_v12 = vld [vmem:[%s5794_s5 + $0x28] sm:$0xff] }
 0x15e   : > { %v2690_v15 = vpop.f32.mrb[28].mxu0 }
 0x15f   : > { %v5777_v16 = vadd.f32 %v2690_v15, %v1426_v33  ;;  %v2769_v2 = vpop.f32.mrb[28].mxu1  ;;  %v4922_v17 = vpop.f32.mrb[29].mxu0 }
 0x160   : > { %v5779_v18 = vadd.f32 %v2769_v2, %v1505_v34  ;;  %v4929_v19 = vpop.f32.mrb[29].mxu1 }
 0x166   : > { %v2848_v20 = vpop.f32.mrb[30].mxu0 }
 0x167   : > { %v5781_v21 = vadd.f32 %v2848_v20, %v1584_v37  ;;  %v2927_v22 = vpop.f32.mrb[30].mxu1  ;;  %v4936_v1 = vpop.f32.mrb[31].mxu0  ;;  %v4233_v20 = vld [vmem:[%s5789_s28 + $0x30] sm:$0xff] }
 0x168   : > { %v5783_v23 = vadd.f32 %v2927_v22, %v1663_v38  ;;  %v4943_v24 = vpop.f32.mrb[31].mxu1 }
 0x16e   : > { %v3006_v25 = vpop.f32.mrb[32].mxu0 }
 0x16f   : > { %v4211_v27 = vadd.f32 %v4195_v42, %v3006_v25  ;;  %v3085_v28 = vpop.f32.mrb[32].mxu1  ;;  %v4950_v30 = vpop.f32.mrb[33].mxu0  ;;  %v4229_v42 = vld [vmem:[%s5789_s28 + $0x10] sm:$0xff] }
 0x170   : > { %v4212_v32 = vadd.f32 %v4196_v45, %v3085_v28  ;;  %v4957_v33 = vpop.f32.mrb[33].mxu1  ;;  %v4230_v45 = vld [vmem:[%s5789_s28 + $0x18] sm:$0xff]  ;;  %v4265_v25 = vld [vmem:[%s5794_s5 + $0x30] sm:$0xff] }
 0x171   : > { %v4243_v34 = vadd.f32 %v4227_v26, %v4211_v27 }
 0x172   : > { %v4244_v36 = vadd.f32 %v4228_v29, %v4212_v32  ;;  %v4266_v29 = vld [vmem:[%s5794_s5 + $0x38] sm:$0xff] }
 0x173   : > { %v4275_v37 = vadd.f32 %v4259_v31, %v4243_v34 }
 0x174   : > { %v4276_v38 = vadd.f32 %v4260_v35, %v4244_v36  ;;  %v4235_v35 = vld [vmem:[%s5789_s28 + $0x40] sm:$0xff] }
 0x175   : > { %v4291_v39 = vmax.f32 %v4275_v37, 0.0 }
 0x176   : > { %v4292_v40 = vmax.f32 %v4276_v38, 0.0  ;;  %v3164_v41 = vpop.f32.mrb[34].mxu0 }
 0x177   : > { %4307 = vst.msk [vmem:[%s5803_s8] sm:$0xff] %vm402_vm1, %v4291_v39  ;;  %v4213_v43 = vadd.f32 %v5757_v48, %v3164_v41  ;;  %v3243_v44 = vpop.f32.mrb[34].mxu1  ;;  %v4964_v46 = vpop.f32.mrb[35].mxu0  ;;  %v4267_v39 = vld [vmem:[%s5794_s5 + $0x40] sm:$0xff] }
 0x178   : > { %4308 = vst.msk [vmem:[%s5803_s8 + $0x8] sm:$0xff] %vm402_vm1, %v4292_v40  ;;  %v4214_v49 = vadd.f32 %v5759_v51, %v3243_v44  ;;  %v4971_v50 = vpop.f32.mrb[35].mxu1  ;;  %v4232_v51 = vld [vmem:[%s5789_s28 + $0x28] sm:$0xff] }
 0x179   : > { %v4245_v52 = vadd.f32 %v4229_v42, %v4213_v43  ;;  %v4268_v43 = vld [vmem:[%s5794_s5 + $0x48] sm:$0xff]  ;;  %v4237_v50 = vld [vmem:[%s5789_s28 + $0x50] sm:$0xff] }
 0x17a   : > { %v4246_v55 = vadd.f32 %v4230_v45, %v4214_v49 }
 0x17b   : > { %v4277_v56 = vadd.f32 %v4261_v47, %v4245_v52 }
 0x17c   : > { %v4278_v48 = vadd.f32 %v4262_v53, %v4246_v55 }
 0x17d   : > { %v4293_v58 = vmax.f32 %v4277_v56, 0.0  ;;  %v4269_v56 = vld [vmem:[%s5794_s5 + $0x50] sm:$0xff] }
 0x17e   : > { %v4294_v59 = vmax.f32 %v4278_v48, 0.0  ;;  %v3322_v61 = vpop.f32.mrb[36].mxu0 }
 0x17f   : > { %4309 = vst.msk [vmem:[%s5803_s8 + $0x10] sm:$0xff] %vm402_vm1, %v4293_v58  ;;  %v4215_v3 = vadd.f32 %v5761_v54, %v3322_v61  ;;  %v3401_v4 = vpop.f32.mrb[36].mxu1  ;;  %v4978_v6 = vpop.f32.mrb[37].mxu0  ;;  %v4270_v61 = vld [vmem:[%s5794_s5 + $0x58] sm:$0xff] }
 0x180   : > { %4310 = vst.msk [vmem:[%s5803_s8 + $0x18] sm:$0xff] %vm402_vm1, %v4294_v59  ;;  %v4216_v9 = vadd.f32 %v5763_v57, %v3401_v4  ;;  %v4985_v0 = vpop.f32.mrb[37].mxu1  ;;  %v4234_v57 = vld [vmem:[%s5789_s28 + $0x38] sm:$0xff] }
 0x181   : > { %v4247_v11 = vadd.f32 %v4231_v62, %v4215_v3 }
 0x182   : > { %v4248_v14 = vadd.f32 %v4232_v51, %v4216_v9 }
 0x183   : > { %v4279_v15 = vadd.f32 %v4263_v7, %v4247_v11  ;;  %v4239_v7 = vld [vmem:[%s5789_s28 + $0x60] sm:$0xff] }
 0x184   : > { %v4280_v54 = vadd.f32 %v4264_v12, %v4248_v14  ;;  %v4271_v12 = vld [vmem:[%s5794_s5 + $0x60] sm:$0xff] }
 0x185   : > { %v4295_v2 = vmax.f32 %v4279_v15, 0.0 }
 0x186   : > { %v4296_v17 = vmax.f32 %v4280_v54, 0.0  ;;  %v3480_v19 = vpop.f32.mrb[38].mxu0 }
 0x187   : > { %4311 = vst.msk [vmem:[%s5803_s8 + $0x20] sm:$0xff] %vm402_vm1, %v4295_v2  ;;  %v4217_v22 = vadd.f32 %v5765_v60, %v3480_v19  ;;  %v3559_v1 = vpop.f32.mrb[38].mxu1  ;;  %v4992_v24 = vpop.f32.mrb[39].mxu0  ;;  %v4272_v2 = vld [vmem:[%s5794_s5 + $0x68] sm:$0xff] }
 0x188   : > { %4312 = vst.msk [vmem:[%s5803_s8 + $0x28] sm:$0xff] %vm402_vm1, %v4296_v17  ;;  %v4218_v26 = vadd.f32 %v5767_v63, %v3559_v1  ;;  %v4999_v27 = vpop.f32.mrb[39].mxu1  ;;  %v4236_v63 = vld [vmem:[%s5789_s28 + $0x48] sm:$0xff] }
 0x189   : > { %v4249_v28 = vadd.f32 %v4233_v20, %v4217_v22  ;;  %v4273_v27 = vld [vmem:[%s5794_s5 + $0x70] sm:$0xff] }
 0x18a   : > { %v4250_v30 = vadd.f32 %v4234_v57, %v4218_v26  ;;  %v4241_v57 = vld [vmem:[%s5789_s28 + $0x70] sm:$0xff] }
 0x18b   : > { %v4281_v31 = vadd.f32 %v4265_v25, %v4249_v28  ;;  %v4242_v25 = vld [vmem:[%s5789_s28 + $0x78] sm:$0xff] }
 0x18c   : > { %v4282_v60 = vadd.f32 %v4266_v29, %v4250_v30 }
 0x18d   : > { %v4297_v32 = vmax.f32 %v4281_v31, 0.0  ;;  %v4274_v31 = vld [vmem:[%s5794_s5 + $0x78] sm:$0xff] }
 0x18e   : > { %v4298_v33 = vmax.f32 %v4282_v60, 0.0  ;;  %v3638_v34 = vpop.f32.mrb[40].mxu0 }
 0x18f   : > { %4313 = vst.msk [vmem:[%s5803_s8 + $0x30] sm:$0xff] %vm402_vm1, %v4297_v32  ;;  %v4219_v36 = vadd.f32 %v5769_v5, %v3638_v34  ;;  %v3717_v37 = vpop.f32.mrb[40].mxu1  ;;  %v5006_v38 = vpop.f32.mrb[41].mxu0 }
 0x190   : > { %4314 = vst.msk [vmem:[%s5803_s8 + $0x38] sm:$0xff] %vm402_vm1, %v4298_v33  ;;  %v4220_v40 = vadd.f32 %v5771_v8, %v3717_v37  ;;  %v5013_v41 = vpop.f32.mrb[41].mxu1  ;;  %v4238_v8 = vld [vmem:[%s5789_s28 + $0x58] sm:$0xff] }
 0x191   : > { %v4251_v42 = vadd.f32 %v4235_v35, %v4219_v36 }
 0x192   : > { %v4252_v44 = vadd.f32 %v4236_v63, %v4220_v40 }
 0x193   : > { %v4283_v45 = vadd.f32 %v4267_v39, %v4251_v42 }
 0x194   : > { %v4284_v5 = vadd.f32 %v4268_v43, %v4252_v44 }
 0x195   : > { %v4299_v46 = vmax.f32 %v4283_v45, 0.0 }
 0x196   : > { %v4300_v47 = vmax.f32 %v4284_v5, 0.0  ;;  %v3796_v49 = vpop.f32.mrb[42].mxu0 }
 0x197   : > { %4315 = vst.msk [vmem:[%s5803_s8 + $0x40] sm:$0xff] %vm402_vm1, %v4299_v46  ;;  %v4221_v52 = vadd.f32 %v5773_v10, %v3796_v49  ;;  %v3875_v53 = vpop.f32.mrb[42].mxu1  ;;  %v5020_v55 = vpop.f32.mrb[43].mxu0 }
 0x198   : > { %4316 = vst.msk [vmem:[%s5803_s8 + $0x48] sm:$0xff] %vm402_vm1, %v4300_v47  ;;  %v4222_v48 = vadd.f32 %v5775_v13, %v3875_v53  ;;  %v5027_v58 = vpop.f32.mrb[43].mxu1  ;;  %v4240_v13 = vld [vmem:[%s5789_s28 + $0x68] sm:$0xff] }
 0x199   : > { %v4253_v59 = vadd.f32 %v4237_v50, %v4221_v52 }
 0x19a   : > { %v4254_v62 = vadd.f32 %v4238_v8, %v4222_v48 }
 0x19b   : > { %v4285_v3 = vadd.f32 %v4269_v56, %v4253_v59 }
 0x19c   : > { %v4286_v10 = vadd.f32 %v4270_v61, %v4254_v62 }
 0x19d   : > { %v4301_v4 = vmax.f32 %v4285_v3, 0.0 }
 0x19e   : > { %v4302_v51 = vmax.f32 %v4286_v10, 0.0  ;;  %v3954_v6 = vpop.f32.mrb[44].mxu0 }
 0x19f   : > { %4317 = vst.msk [vmem:[%s5803_s8 + $0x50] sm:$0xff] %vm402_vm1, %v4301_v4  ;;  %v4223_v9 = vadd.f32 %v5777_v16, %v3954_v6  ;;  %v4033_v0 = vpop.f32.mrb[44].mxu1  ;;  %v5034_v11 = vpop.f32.mrb[45].mxu0 }
 0x1a0   : > { %4318 = vst.msk [vmem:[%s5803_s8 + $0x58] sm:$0xff] %vm402_vm1, %v4302_v51  ;;  %v4224_v14 = vadd.f32 %v5779_v18, %v4033_v0  ;;  %v5041_v15 = vpop.f32.mrb[45].mxu1 }
 0x1a1   : > { %v4255_v54 = vadd.f32 %v4239_v7, %v4223_v9 }
 0x1a2   : > { %v4256_v17 = vadd.f32 %v4240_v13, %v4224_v14 }
 0x1a3   : > { %v4287_v19 = vadd.f32 %v4271_v12, %v4255_v54 }
 0x1a4   : > { %v4288_v16 = vadd.f32 %v4272_v2, %v4256_v17 }
 0x1a5   : > { %v4303_v20 = vmax.f32 %v4287_v19, 0.0 }
 0x1a6   : > { %v4304_v22 = vmax.f32 %v4288_v16, 0.0  ;;  %v4112_v1 = vpop.f32.mrb[46].mxu0 }
 0x1a7   : > { %4319 = vst.msk [vmem:[%s5803_s8 + $0x60] sm:$0xff] %vm402_vm1, %v4303_v20  ;;  %v4225_v24 = vadd.f32 %v5781_v21, %v4112_v1  ;;  %v4191_v18 = vpop.f32.mrb[46].mxu1  ;;  %v5048_v26 = vpop.f32.mrb[47].mxu0 }
 0x1a8   : > { %4320 = vst.msk [vmem:[%s5803_s8 + $0x68] sm:$0xff] %vm402_vm1, %v4304_v22  ;;  %v4226_v28 = vadd.f32 %v5783_v23, %v4191_v18  ;;  %v5055_v29 = vpop.f32.mrb[47].mxu1 }
 0x1a9   : > { %v4257_v30 = vadd.f32 %v4241_v57, %v4225_v24 }
 0x1aa   : > { %v4258_v60 = vadd.f32 %v4242_v25, %v4226_v28 }
 0x1ab   : > { %v4289_v32 = vadd.f32 %v4273_v27, %v4257_v30 }
 0x1ac   : > { %v4290_v33 = vadd.f32 %v4274_v31, %v4258_v60 }
 0x1ad   : > { %v4305_v34 = vmax.f32 %v4289_v32, 0.0 }
 0x1ae   : > { %v4306_v35 = vmax.f32 %v4290_v33, 0.0 }
 0x1af   : > { %4321 = vst.msk [vmem:[%s5803_s8 + $0x70] sm:$0xff] %vm402_vm1, %v4305_v34 }
 0x1b0   : > { %4322 = vst.msk [vmem:[%s5803_s8 + $0x78] sm:$0xff] %vm402_vm1, %v4306_v35 }
 0x1b1 PF: > { %s14_s15 = sadd.s32 1, %s5267_s15  }
 0x1b2   : > { %p11_p4 = scmp.ge.s32.totalorder %s14_s15, 4  }
 0x1b4   :  { %13 = sbr.rel (!%p11_p4) target bundleno = 1 (0x1), region = 75 }

</bundles_post_ra>
